<compile_context>
chip_gen: v7x
topology: tpu7x:2x2x1
jax: 0.10.0
libtpu: 0.0.40
codegen_flags: <defaults>
</compile_context>

<pallas_src>
import jax
import jax.numpy as jnp
import numpy as np
from jax.experimental import pallas as pl
from jax.experimental.pallas import tpu as pltpu


def _round_up(x, m):
    return ((x + m - 1) // m) * m


# ----------------------------------------------------------------------------
# Pallas kernel
# ----------------------------------------------------------------------------
def sgf_kernel(x_ref, xhat_ref,
               wih_v_ref, whh_v_ref, bi_v_ref, bhn_v_ref,
               wih_s_ref, whh_s_ref, bi_s_ref, bhn_s_ref,
               wlin_ref, blin_ref,
               out_ref,
               gi_v_ref, gi_s_ref):
    seq, bt, hp = x_ref.shape
    h3 = 3 * hp
    cdt = wih_v_ref.dtype  # matmul feed dtype (f32 or bf16); gate math stays f32

    # ---- Hoisted input projections: one big matmul per GRU over all timesteps.
    xf = x_ref[...].reshape(seq * bt, hp).astype(cdt)
    xhf = xhat_ref[...].reshape(seq * bt, hp).astype(cdt)
    gi_v = jnp.dot(xf, wih_v_ref[...], preferred_element_type=jnp.float32) + bi_v_ref[...]
    gi_s = jnp.dot(xhf, wih_s_ref[...], preferred_element_type=jnp.float32) + bi_s_ref[...]
    gi_v_ref[...] = gi_v.reshape(seq, bt, h3)
    gi_s_ref[...] = gi_s.reshape(seq, bt, h3)

    # Hoist weight loads and bias broadcasts out of the recurrence.
    whh_v = whh_v_ref[...]
    whh_s = whh_s_ref[...]
    bhn_v = jnp.broadcast_to(bhn_v_ref[...], (bt, hp))
    bhn_s = jnp.broadcast_to(bhn_s_ref[...], (bt, hp))

    def cell(gi_t, h, whh, bhn):
        # PyTorch GRU: r = s(gi_r+gh_r), z = s(gi_z+gh_z), n = tanh(gi_n + r*(gh_n+b_hn))
        # gi_t already contains b_ih (all gates) + b_hh (r,z gates).
        gh = jnp.dot(h.astype(cdt), whh, preferred_element_type=jnp.float32)
        r = jax.nn.sigmoid(gi_t[:, :hp] + gh[:, :hp])
        z = jax.nn.sigmoid(gi_t[:, hp:2 * hp] + gh[:, hp:2 * hp])
        n = jnp.tanh(gi_t[:, 2 * hp:] + r * (gh[:, 2 * hp:] + bhn))
        return (1.0 - z) * n + z * h

    def step(t, carry):
        h_v, h_s = carry
        h_v = cell(gi_v_ref[t], h_v, whh_v, bhn_v)   # vertex GRU
        h_s = cell(gi_s_ref[t], h_s, whh_s, bhn_s)   # spectral GRU (interleaved)
        return (h_v, h_s)

    h0 = jnp.zeros((bt, hp), jnp.float32)
    unroll = True if seq <= 16 else 4
    h_v, h_s = jax.lax.fori_loop(0, seq, step, (h0, h0), unroll=unroll)

    # cat((xtilde, x1), dim=1) @ W_lin.T + b_lin  -> single MXU push, lane-dense store.
    hc = jnp.concatenate([h_s, h_v], axis=-1).astype(cdt)
    out_ref[...] = (jnp.dot(hc, wlin_ref[...], preferred_element_type=jnp.float32)
                    + blin_ref[...]).astype(out_ref.dtype)


# ----------------------------------------------------------------------------
# Wrapper: padding, layout prep, pallas_call
# ----------------------------------------------------------------------------
def spectral_graph_forecast(inp, kparams, N, hp, *, batch_tile=256):
    """inp: (bz, seq, 2N) float32. Returns (bz, N). kparams from prepare_kernel_params."""
    bz, seq, two_n = inp.shape
    assert two_n == 2 * N

    bp0 = _round_up(bz, 8)
    bt = min(_round_up(batch_tile, 8), bp0)
    bp = _round_up(bp0, bt)

    x = inp[:, :, :N]        # vertex-domain samples
    x_hat = inp[:, :, N:]    # spectral-domain coefficients

    def pad_tm(a):
        a = jnp.pad(a, ((0, bp - bz), (0, 0), (0, hp - N)))
        return jnp.transpose(a, (1, 0, 2))   # time-major (seq, bp, hp)

    x_tm = pad_tm(x)
    xh_tm = pad_tm(x_hat)

    nb = bp // bt

    def full_spec(shape):
        zeros = tuple(0 for _ in shape)
        return pl.BlockSpec(shape, lambda b, _z=zeros: _z)

    in_specs = [
        pl.BlockSpec((seq, bt, hp), lambda b: (0, b, 0)),   # x
        pl.BlockSpec((seq, bt, hp), lambda b: (0, b, 0)),   # x_hat
        full_spec((hp, 3 * hp)),   # wih_v (transposed, gate-tiled)
        full_spec((hp, 3 * hp)),   # whh_v
        full_spec((1, 3 * hp)),    # bi_v  (b_ih + b_hh[r,z] folded)
        full_spec((1, hp)),        # bhn_v (b_hh[n])
        full_spec((hp, 3 * hp)),   # wih_s
        full_spec((hp, 3 * hp)),   # whh_s
        full_spec((1, 3 * hp)),    # bi_s
        full_spec((1, hp)),        # bhn_s
        full_spec((2 * hp, hp)),   # wlin (transposed, padded)
        full_spec((1, hp)),        # blin
    ]
    out_spec = pl.BlockSpec((bt, hp), lambda b: (b, 0))
    scratch = [pltpu.VMEM((seq, bt, 3 * hp), jnp.float32),
               pltpu.VMEM((seq, bt, 3 * hp), jnp.float32)]

    # Re-derived VMEM budget (keeps us inside v7x's smaller VMEM as well).
    est = (4 * seq * bt * hp * 4            # x / x_hat, double buffered
           + 2 * seq * bt * 3 * hp * 4      # gi scratch
           + 6 * hp * 3 * hp * 4            # weights (f32 upper bound)
           + 6 * bt * hp * 4)               # output + accumul. headroom
    vmem_limit = int(min(max(2 * est, 16 * 1024 * 1024), 48 * 1024 * 1024))

    out = pl.pallas_call(
        sgf_kernel,
        out_shape=jax.ShapeDtypeStruct((bp, hp), jnp.float32),
        grid=(nb,),
        in_specs=in_specs,
        out_specs=out_spec,
        scratch_shapes=scratch,
        compiler_params=pltpu.CompilerParams(
            dimension_semantics=("parallel",),
            vmem_limit_bytes=vmem_limit),
    )(x_tm, xh_tm,
      kparams["wih_v"], kparams["whh_v"], kparams["bi_v"], kparams["bhn_v"],
      kparams["wih_s"], kparams["whh_s"], kparams["bi_s"], kparams["bhn_s"],
      kparams["wlin"], kparams["blin"])

    return out[:bz, :N]


# ----------------------------------------------------------------------------
# Parameter preparation: transpose, fold biases, zero-pad to 128-lane tiles.
# Zero padding is mathematically inert (padded h lanes stay exactly 0).
# ----------------------------------------------------------------------------
def prepare_kernel_params(cp, N, hp, compute_dtype=jnp.float32):
    def gate_w_t(w):  # (3N, N) PyTorch -> (hp, 3hp), gate blocks at lane offsets 0,hp,2hp
        out = jnp.zeros((hp, 3 * hp), jnp.float32)
        for g in range(3):
            out = out.at[:N, g * hp:g * hp + N].set(w[g * N:(g + 1) * N, :].T)
        return out.astype(compute_dtype)

    def gate_b(b):    # (3N,) -> (1, 3hp)
        out = jnp.zeros((1, 3 * hp), jnp.float32)
        for g in range(3):
            out = out.at[0, g * hp:g * hp + N].set(b[g * N:(g + 1) * N])
        return out

    kp = {}
    for tag in ("v", "s"):
        wih, whh = cp[f"wih_{tag}"], cp[f"whh_{tag}"]
        bih, bhh = cp[f"bih_{tag}"], cp[f"bhh_{tag}"]
        # Fold b_hh into the hoisted input-side bias for the r,z gates; keep b_hh[n]
        # separate because PyTorch applies r * (W_hn h + b_hn).
        bi = bih.at[:2 * N].add(bhh[:2 * N])
        kp[f"wih_{tag}"] = gate_w_t(wih)
        kp[f"whh_{tag}"] = gate_w_t(whh)
        kp[f"bi_{tag}"] = gate_b(bi)
        kp[f"bhn_{tag}"] = jnp.zeros((1, hp), jnp.float32).at[0, :N].set(bhh[2 * N:])

    wlin, blin = cp["wlin"], cp["blin"]
    wlin_t = jnp.zeros((2 * hp, hp), jnp.float32)
    wlin_t = wlin_t.at[:N, :N].set(wlin[:, :N].T)          # spectral (xtilde) half
    wlin_t = wlin_t.at[hp:hp + N, :N].set(wlin[:, N:].T)   # vertex (x1) half
    kp["wlin"] = wlin_t.astype(compute_dtype)
    kp["blin"] = jnp.zeros((1, hp), jnp.float32).at[0, :N].set(blin)
    return kp


# ----------------------------------------------------------------------------
# Deterministic canonical params (PyTorch layout / init ranges)
# ----------------------------------------------------------------------------
def init_params(key, N):
    ks = jax.random.split(key, 10)

    def u(k, shape, scale):
        return jax.random.uniform(k, shape, jnp.float32, -scale, scale)

    s = 1.0 / float(np.sqrt(N))
    p = dict(
        wih_s=u(ks[0], (3 * N, N), s), whh_s=u(ks[1], (3 * N, N), s),
        bih_s=u(ks[2], (3 * N,), s), bhh_s=u(ks[3], (3 * N,), s),
        wih_v=u(ks[4], (3 * N, N), s), whh_v=u(ks[5], (3 * N, N), s),
        bih_v=u(ks[6], (3 * N,), s), bhh_v=u(ks[7], (3 * N,), s),
    )
    sl = 1.0 / float(np.sqrt(2 * N))
    p["wlin"] = u(ks[8], (N, 2 * N), sl)
    p["blin"] = u(ks[9], (N,), sl)
    return p


# ----------------------------------------------------------------------------
# Pure-JAX reference (unpadded, PyTorch semantics)
# ----------------------------------------------------------------------------
def reference_forward(inp, cp, N):
    bz, seq, _ = inp.shape
    x = inp[:, :, :N]
    x_hat = inp[:, :, N:]

    def gru(xs, wih, whh, bih, bhh):
        h = jnp.zeros((bz, N), jnp.float32)
        for t in range(seq):
            gi = xs[:, t, :] @ wih.T + bih
            gh = h @ whh.T + bhh
            r = jax.nn.sigmoid(gi[:, :N] + gh[:, :N])
            z = jax.nn.sigmoid(gi[:, N:2 * N] + gh[:, N:2 * N])
            n = jnp.tanh(gi[:, 2 * N:] + r * gh[:, 2 * N:])
            h = (1.0 - z) * n + z * h
        return h

    h_hat = gru(x_hat, cp["wih_s"], cp["whh_s"], cp["bih_s"], cp["bhh_s"])
    h_v = gru(x, cp["wih_v"], cp["whh_v"], cp["bih_v"], cp["bhh_v"])
    cat = jnp.concatenate([h_hat, h_v], axis=1)
    return cat @ cp["wlin"].T + cp["blin"]


if __name__ == "__main__":
    N = 16          # N == n == d  (all nodes sampled, all freqs kept)
    bz, seq = 2, 8  # small shapes
    hp = _round_up(N, 128)

    key = jax.random.PRNGKey(0)
    k_in, k_p = jax.random.split(key)
    inp = jax.random.normal(k_in, (bz, seq, 2 * N), dtype=jnp.float32)
    cp = init_params(k_p, N)

    ref = reference_forward(inp, cp, N)

    # f32 MXU feed (v5e-friendly, exact check).
    kp32 = prepare_kernel_params(cp, N, hp, jnp.float32)
    out32 = jax.block_until_ready(spectral_graph_forecast(inp, kp32, N, hp))
    assert out32.shape == (bz, N), out32.shape
    np.testing.assert_allclose(np.asarray(out32), np.asarray(ref), rtol=2e-3, atol=2e-3)

    # bf16 MXU feed (v6e/v7x path): f32 accumulation + f32 gate math, loose tolerance.
    kpb16 = prepare_kernel_params(cp, N, hp, jnp.bfloat16)
    outb16 = jax.block_until_ready(spectral_graph_forecast(inp, kpb16, N, hp))
    np.testing.assert_allclose(np.asarray(outb16), np.asarray(ref), rtol=7e-2, atol=7e-2)

    print("KERNEL_OK")
</pallas_src>

<mosaic_0001>
module attributes {stable_mosaic.version = 11 : i64} {
  func.func @sgf_kernel(%arg0: i32, %arg1: memref<8x8x128xf32, #tpu.memory_space<vmem>>, %arg2: memref<8x8x128xf32, #tpu.memory_space<vmem>>, %arg3: memref<128x384xf32, #tpu.memory_space<vmem>>, %arg4: memref<128x384xf32, #tpu.memory_space<vmem>>, %arg5: memref<1x384xf32, #tpu.memory_space<vmem>>, %arg6: memref<1x128xf32, #tpu.memory_space<vmem>>, %arg7: memref<128x384xf32, #tpu.memory_space<vmem>>, %arg8: memref<128x384xf32, #tpu.memory_space<vmem>>, %arg9: memref<1x384xf32, #tpu.memory_space<vmem>>, %arg10: memref<1x128xf32, #tpu.memory_space<vmem>>, %arg11: memref<256x128xf32, #tpu.memory_space<vmem>>, %arg12: memref<1x128xf32, #tpu.memory_space<vmem>>, %arg13: memref<8x128xf32, #tpu.memory_space<vmem>>, %arg14: memref<8x8x384xf32, #tpu.memory_space<vmem>>, %arg15: memref<8x8x384xf32, #tpu.memory_space<vmem>>) attributes {dimension_semantics = [#tpu.dimension_semantics<parallel>], iteration_bounds = array<i64: 1>, scalar_prefetch = 0 : i64, scratch_operands = 2 : i64, tpu.core_type = #tpu.core_type<tc>, window_params = [{transform_indices = @transform_0, window_bounds = array<i64: 8, 8, 128>}, {transform_indices = @transform_1, window_bounds = array<i64: 8, 8, 128>}, {pipeline_mode = #tpu.pipeline_mode<synchronous>, transform_indices = @transform_2, window_bounds = array<i64: 128, 384>}, {pipeline_mode = #tpu.pipeline_mode<synchronous>, transform_indices = @transform_3, window_bounds = array<i64: 128, 384>}, {pipeline_mode = #tpu.pipeline_mode<synchronous>, transform_indices = @transform_4, window_bounds = array<i64: 1, 384>}, {pipeline_mode = #tpu.pipeline_mode<synchronous>, transform_indices = @transform_5, window_bounds = array<i64: 1, 128>}, {pipeline_mode = #tpu.pipeline_mode<synchronous>, transform_indices = @transform_6, window_bounds = array<i64: 128, 384>}, {pipeline_mode = #tpu.pipeline_mode<synchronous>, transform_indices = @transform_7, window_bounds = array<i64: 128, 384>}, {pipeline_mode = #tpu.pipeline_mode<synchronous>, transform_indices = @transform_8, window_bounds = array<i64: 1, 384>}, {pipeline_mode = #tpu.pipeline_mode<synchronous>, transform_indices = @transform_9, window_bounds = array<i64: 1, 128>}, {pipeline_mode = #tpu.pipeline_mode<synchronous>, transform_indices = @transform_10, window_bounds = array<i64: 256, 128>}, {pipeline_mode = #tpu.pipeline_mode<synchronous>, transform_indices = @transform_11, window_bounds = array<i64: 1, 128>}, {transform_indices = @transform_12, window_bounds = array<i64: 8, 128>}]} {
    %c0 = arith.constant 0 : index
    %c0_0 = arith.constant 0 : index
    %c0_1 = arith.constant 0 : index
    %0 = vector.load %arg1[%c0, %c0_0, %c0_1] : memref<8x8x128xf32, #tpu.memory_space<vmem>>, vector<8x8x128xf32>
    %1 = vector.shape_cast %0 : vector<8x8x128xf32> to vector<64x128xf32>
    %c0_2 = arith.constant 0 : index
    %c0_3 = arith.constant 0 : index
    %c0_4 = arith.constant 0 : index
    %2 = vector.load %arg2[%c0_2, %c0_3, %c0_4] : memref<8x8x128xf32, #tpu.memory_space<vmem>>, vector<8x8x128xf32>
    %3 = vector.shape_cast %2 : vector<8x8x128xf32> to vector<64x128xf32>
    %c0_5 = arith.constant 0 : index
    %c0_6 = arith.constant 0 : index
    %4 = vector.load %arg3[%c0_5, %c0_6] : memref<128x384xf32, #tpu.memory_space<vmem>>, vector<128x384xf32>
    %cst = arith.constant dense<0.000000e+00> : vector<64x384xf32>
    %5 = tpu.matmul %1, %4, %cst {dimension_numbers = #tpu.dot_dimension_numbers<[1], [0], [0], [1], [0, 0, 1, 1], [], []>} : vector<64x128xf32>, vector<128x384xf32>, vector<64x384xf32> -> vector<64x384xf32>
    %c0_7 = arith.constant 0 : index
    %c0_8 = arith.constant 0 : index
    %6 = vector.load %arg5[%c0_7, %c0_8] : memref<1x384xf32, #tpu.memory_space<vmem>>, vector<1x384xf32>
    %7 = vector.broadcast %6 : vector<1x384xf32> to vector<64x384xf32>
    %8 = arith.addf %5, %7 : vector<64x384xf32>
    %c0_9 = arith.constant 0 : index
    %c0_10 = arith.constant 0 : index
    %9 = vector.load %arg7[%c0_9, %c0_10] : memref<128x384xf32, #tpu.memory_space<vmem>>, vector<128x384xf32>
    %cst_11 = arith.constant dense<0.000000e+00> : vector<64x384xf32>
    %10 = tpu.matmul %3, %9, %cst_11 {dimension_numbers = #tpu.dot_dimension_numbers<[1], [0], [0], [1], [0, 0, 1, 1], [], []>} : vector<64x128xf32>, vector<128x384xf32>, vector<64x384xf32> -> vector<64x384xf32>
    %c0_12 = arith.constant 0 : index
    %c0_13 = arith.constant 0 : index
    %11 = vector.load %arg9[%c0_12, %c0_13] : memref<1x384xf32, #tpu.memory_space<vmem>>, vector<1x384xf32>
    %12 = vector.broadcast %11 : vector<1x384xf32> to vector<64x384xf32>
    %13 = arith.addf %10, %12 : vector<64x384xf32>
    %14 = vector.shape_cast %8 : vector<64x384xf32> to vector<8x8x384xf32>
    %c0_14 = arith.constant 0 : index
    %c0_15 = arith.constant 0 : index
    %c0_16 = arith.constant 0 : index
    %15 = vector.load %arg14[%c0_14, %c0_15, %c0_16] : memref<8x8x384xf32, #tpu.memory_space<vmem>>, vector<8x8x384xf32>
    tpu.vector_store %arg14[%c0_14, %c0_15, %c0_16], %14 {strides = array<i32>} : memref<8x8x384xf32, #tpu.memory_space<vmem>>, vector<8x8x384xf32>,
    %16 = vector.shape_cast %13 : vector<64x384xf32> to vector<8x8x384xf32>
    %c0_17 = arith.constant 0 : index
    %c0_18 = arith.constant 0 : index
    %c0_19 = arith.constant 0 : index
    %17 = vector.load %arg15[%c0_17, %c0_18, %c0_19] : memref<8x8x384xf32, #tpu.memory_space<vmem>>, vector<8x8x384xf32>
    tpu.vector_store %arg15[%c0_17, %c0_18, %c0_19], %16 {strides = array<i32>} : memref<8x8x384xf32, #tpu.memory_space<vmem>>, vector<8x8x384xf32>,
    %c0_20 = arith.constant 0 : index
    %c0_21 = arith.constant 0 : index
    %18 = vector.load %arg4[%c0_20, %c0_21] : memref<128x384xf32, #tpu.memory_space<vmem>>, vector<128x384xf32>
    %c0_22 = arith.constant 0 : index
    %c0_23 = arith.constant 0 : index
    %19 = vector.load %arg8[%c0_22, %c0_23] : memref<128x384xf32, #tpu.memory_space<vmem>>, vector<128x384xf32>
    %c0_24 = arith.constant 0 : index
    %c0_25 = arith.constant 0 : index
    %20 = vector.load %arg6[%c0_24, %c0_25] : memref<1x128xf32, #tpu.memory_space<vmem>>, vector<1x128xf32>
    %21 = vector.shape_cast %20 : vector<1x128xf32> to vector<1x128xf32>
    %22 = vector.broadcast %21 : vector<1x128xf32> to vector<8x128xf32>
    %c0_26 = arith.constant 0 : index
    %c0_27 = arith.constant 0 : index
    %23 = vector.load %arg10[%c0_26, %c0_27] : memref<1x128xf32, #tpu.memory_space<vmem>>, vector<1x128xf32>
    %24 = vector.shape_cast %23 : vector<1x128xf32> to vector<1x128xf32>
    %25 = vector.broadcast %24 : vector<1x128xf32> to vector<8x128xf32>
    %cst_28 = arith.constant 0.000000e+00 : f32
    %26 = vector.broadcast %cst_28 : f32 to vector<8x128xf32>
    %c0_i32 = arith.constant 0 : i32
    %27 = arith.index_cast %c0_i32 : i32 to index
    %c0_29 = arith.constant 0 : index
    %c0_30 = arith.constant 0 : index
    %28 = vector.load %arg14[%27, %c0_29, %c0_30] : memref<8x8x384xf32, #tpu.memory_space<vmem>>, vector<1x8x384xf32>
    %29 = vector.shape_cast %28 : vector<1x8x384xf32> to vector<8x384xf32>
    %cst_31 = arith.constant dense<0.000000e+00> : vector<8x384xf32>
    %30 = tpu.matmul %26, %18, %cst_31 {dimension_numbers = #tpu.dot_dimension_numbers<[1], [0], [0], [1], [0, 0, 1, 1], [], []>} : vector<8x128xf32>, vector<128x384xf32>, vector<8x384xf32> -> vector<8x384xf32>
    %31 = vector.extract_strided_slice %29 {offsets = [0, 0], sizes = [8, 128], strides = [1, 1]} : vector<8x384xf32> to vector<8x128xf32>
    %32 = vector.extract_strided_slice %30 {offsets = [0, 0], sizes = [8, 128], strides = [1, 1]} : vector<8x384xf32> to vector<8x128xf32>
    %33 = arith.addf %31, %32 : vector<8x128xf32>
    %34 = arith.negf %33 : vector<8x128xf32>
    %35 = math.exp %34 : vector<8x128xf32>
    %cst_32 = arith.constant 1.000000e+00 : f32
    %36 = vector.broadcast %cst_32 : f32 to vector<8x128xf32>
    %37 = arith.addf %36, %35 : vector<8x128xf32>
    %38 = arith.divf %36, %37 : vector<8x128xf32>
    %39 = vector.extract_strided_slice %29 {offsets = [0, 128], sizes = [8, 128], strides = [1, 1]} : vector<8x384xf32> to vector<8x128xf32>
    %40 = vector.extract_strided_slice %30 {offsets = [0, 128], sizes = [8, 128], strides = [1, 1]} : vector<8x384xf32> to vector<8x128xf32>
    %41 = arith.addf %39, %40 : vector<8x128xf32>
    %42 = arith.negf %41 : vector<8x128xf32>
    %43 = math.exp %42 : vector<8x128xf32>
    %cst_33 = arith.constant 1.000000e+00 : f32
    %44 = vector.broadcast %cst_33 : f32 to vector<8x128xf32>
    %45 = arith.addf %44, %43 : vector<8x128xf32>
    %46 = arith.divf %44, %45 : vector<8x128xf32>
    %47 = vector.extract_strided_slice %29 {offsets = [0, 256], sizes = [8, 128], strides = [1, 1]} : vector<8x384xf32> to vector<8x128xf32>
    %48 = vector.extract_strided_slice %30 {offsets = [0, 256], sizes = [8, 128], strides = [1, 1]} : vector<8x384xf32> to vector<8x128xf32>
    %49 = arith.addf %48, %22 : vector<8x128xf32>
    %50 = arith.mulf %38, %49 : vector<8x128xf32>
    %51 = arith.addf %47, %50 : vector<8x128xf32>
    %52 = math.tanh %51 : vector<8x128xf32>
    %cst_34 = arith.constant 1.000000e+00 : f32
    %53 = vector.broadcast %cst_34 : f32 to vector<8x128xf32>
    %54 = arith.subf %53, %46 : vector<8x128xf32>
    %55 = arith.mulf %54, %52 : vector<8x128xf32>
    %56 = arith.mulf %46, %26 : vector<8x128xf32>
    %57 = arith.addf %55, %56 : vector<8x128xf32>
    %58 = arith.index_cast %c0_i32 : i32 to index
    %c0_35 = arith.constant 0 : index
    %c0_36 = arith.constant 0 : index
    %59 = vector.load %arg15[%58, %c0_35, %c0_36] : memref<8x8x384xf32, #tpu.memory_space<vmem>>, vector<1x8x384xf32>
    %60 = vector.shape_cast %59 : vector<1x8x384xf32> to vector<8x384xf32>
    %cst_37 = arith.constant dense<0.000000e+00> : vector<8x384xf32>
    %61 = tpu.matmul %26, %19, %cst_37 {dimension_numbers = #tpu.dot_dimension_numbers<[1], [0], [0], [1], [0, 0, 1, 1], [], []>} : vector<8x128xf32>, vector<128x384xf32>, vector<8x384xf32> -> vector<8x384xf32>
    %62 = vector.extract_strided_slice %60 {offsets = [0, 0], sizes = [8, 128], strides = [1, 1]} : vector<8x384xf32> to vector<8x128xf32>
    %63 = vector.extract_strided_slice %61 {offsets = [0, 0], sizes = [8, 128], strides = [1, 1]} : vector<8x384xf32> to vector<8x128xf32>
    %64 = arith.addf %62, %63 : vector<8x128xf32>
    %65 = arith.negf %64 : vector<8x128xf32>
    %66 = math.exp %65 : vector<8x128xf32>
    %cst_38 = arith.constant 1.000000e+00 : f32
    %67 = vector.broadcast %cst_38 : f32 to vector<8x128xf32>
    %68 = arith.addf %67, %66 : vector<8x128xf32>
    %69 = arith.divf %67, %68 : vector<8x128xf32>
    %70 = vector.extract_strided_slice %60 {offsets = [0, 128], sizes = [8, 128], strides = [1, 1]} : vector<8x384xf32> to vector<8x128xf32>
    %71 = vector.extract_strided_slice %61 {offsets = [0, 128], sizes = [8, 128], strides = [1, 1]} : vector<8x384xf32> to vector<8x128xf32>
    %72 = arith.addf %70, %71 : vector<8x128xf32>
    %73 = arith.negf %72 : vector<8x128xf32>
    %74 = math.exp %73 : vector<8x128xf32>
    %cst_39 = arith.constant 1.000000e+00 : f32
    %75 = vector.broadcast %cst_39 : f32 to vector<8x128xf32>
    %76 = arith.addf %75, %74 : vector<8x128xf32>
    %77 = arith.divf %75, %76 : vector<8x128xf32>
    %78 = vector.extract_strided_slice %60 {offsets = [0, 256], sizes = [8, 128], strides = [1, 1]} : vector<8x384xf32> to vector<8x128xf32>
    %79 = vector.extract_strided_slice %61 {offsets = [0, 256], sizes = [8, 128], strides = [1, 1]} : vector<8x384xf32> to vector<8x128xf32>
    %80 = arith.addf %79, %25 : vector<8x128xf32>
    %81 = arith.mulf %69, %80 : vector<8x128xf32>
    %82 = arith.addf %78, %81 : vector<8x128xf32>
    %83 = math.tanh %82 : vector<8x128xf32>
    %cst_40 = arith.constant 1.000000e+00 : f32
    %84 = vector.broadcast %cst_40 : f32 to vector<8x128xf32>
    %85 = arith.subf %84, %77 : vector<8x128xf32>
    %86 = arith.mulf %85, %83 : vector<8x128xf32>
    %87 = arith.mulf %77, %26 : vector<8x128xf32>
    %88 = arith.addf %86, %87 : vector<8x128xf32>
    %c1_i32 = arith.constant 1 : i32
    %89 = arith.index_cast %c1_i32 : i32 to index
    %c0_41 = arith.constant 0 : index
    %c0_42 = arith.constant 0 : index
    %90 = vector.load %arg14[%89, %c0_41, %c0_42] : memref<8x8x384xf32, #tpu.memory_space<vmem>>, vector<1x8x384xf32>
    %91 = vector.shape_cast %90 : vector<1x8x384xf32> to vector<8x384xf32>
    %cst_43 = arith.constant dense<0.000000e+00> : vector<8x384xf32>
    %92 = tpu.matmul %57, %18, %cst_43 {dimension_numbers = #tpu.dot_dimension_numbers<[1], [0], [0], [1], [0, 0, 1, 1], [], []>} : vector<8x128xf32>, vector<128x384xf32>, vector<8x384xf32> -> vector<8x384xf32>
    %93 = vector.extract_strided_slice %91 {offsets = [0, 0], sizes = [8, 128], strides = [1, 1]} : vector<8x384xf32> to vector<8x128xf32>
    %94 = vector.extract_strided_slice %92 {offsets = [0, 0], sizes = [8, 128], strides = [1, 1]} : vector<8x384xf32> to vector<8x128xf32>
    %95 = arith.addf %93, %94 : vector<8x128xf32>
    %96 = arith.negf %95 : vector<8x128xf32>
    %97 = math.exp %96 : vector<8x128xf32>
    %cst_44 = arith.constant 1.000000e+00 : f32
    %98 = vector.broadcast %cst_44 : f32 to vector<8x128xf32>
    %99 = arith.addf %98, %97 : vector<8x128xf32>
    %100 = arith.divf %98, %99 : vector<8x128xf32>
    %101 = vector.extract_strided_slice %91 {offsets = [0, 128], sizes = [8, 128], strides = [1, 1]} : vector<8x384xf32> to vector<8x128xf32>
    %102 = vector.extract_strided_slice %92 {offsets = [0, 128], sizes = [8, 128], strides = [1, 1]} : vector<8x384xf32> to vector<8x128xf32>
    %103 = arith.addf %101, %102 : vector<8x128xf32>
    %104 = arith.negf %103 : vector<8x128xf32>
    %105 = math.exp %104 : vector<8x128xf32>
    %cst_45 = arith.constant 1.000000e+00 : f32
    %106 = vector.broadcast %cst_45 : f32 to vector<8x128xf32>
    %107 = arith.addf %106, %105 : vector<8x128xf32>
    %108 = arith.divf %106, %107 : vector<8x128xf32>
    %109 = vector.extract_strided_slice %91 {offsets = [0, 256], sizes = [8, 128], strides = [1, 1]} : vector<8x384xf32> to vector<8x128xf32>
    %110 = vector.extract_strided_slice %92 {offsets = [0, 256], sizes = [8, 128], strides = [1, 1]} : vector<8x384xf32> to vector<8x128xf32>
    %111 = arith.addf %110, %22 : vector<8x128xf32>
    %112 = arith.mulf %100, %111 : vector<8x128xf32>
    %113 = arith.addf %109, %112 : vector<8x128xf32>
    %114 = math.tanh %113 : vector<8x128xf32>
    %cst_46 = arith.constant 1.000000e+00 : f32
    %115 = vector.broadcast %cst_46 : f32 to vector<8x128xf32>
    %116 = arith.subf %115, %108 : vector<8x128xf32>
    %117 = arith.mulf %116, %114 : vector<8x128xf32>
    %118 = arith.mulf %108, %57 : vector<8x128xf32>
    %119 = arith.addf %117, %118 : vector<8x128xf32>
    %120 = arith.index_cast %c1_i32 : i32 to index
    %c0_47 = arith.constant 0 : index
    %c0_48 = arith.constant 0 : index
    %121 = vector.load %arg15[%120, %c0_47, %c0_48] : memref<8x8x384xf32, #tpu.memory_space<vmem>>, vector<1x8x384xf32>
    %122 = vector.shape_cast %121 : vector<1x8x384xf32> to vector<8x384xf32>
    %cst_49 = arith.constant dense<0.000000e+00> : vector<8x384xf32>
    %123 = tpu.matmul %88, %19, %cst_49 {dimension_numbers = #tpu.dot_dimension_numbers<[1], [0], [0], [1], [0, 0, 1, 1], [], []>} : vector<8x128xf32>, vector<128x384xf32>, vector<8x384xf32> -> vector<8x384xf32>
    %124 = vector.extract_strided_slice %122 {offsets = [0, 0], sizes = [8, 128], strides = [1, 1]} : vector<8x384xf32> to vector<8x128xf32>
    %125 = vector.extract_strided_slice %123 {offsets = [0, 0], sizes = [8, 128], strides = [1, 1]} : vector<8x384xf32> to vector<8x128xf32>
    %126 = arith.addf %124, %125 : vector<8x128xf32>
    %127 = arith.negf %126 : vector<8x128xf32>
    %128 = math.exp %127 : vector<8x128xf32>
    %cst_50 = arith.constant 1.000000e+00 : f32
    %129 = vector.broadcast %cst_50 : f32 to vector<8x128xf32>
    %130 = arith.addf %129, %128 : vector<8x128xf32>
    %131 = arith.divf %129, %130 : vector<8x128xf32>
    %132 = vector.extract_strided_slice %122 {offsets = [0, 128], sizes = [8, 128], strides = [1, 1]} : vector<8x384xf32> to vector<8x128xf32>
    %133 = vector.extract_strided_slice %123 {offsets = [0, 128], sizes = [8, 128], strides = [1, 1]} : vector<8x384xf32> to vector<8x128xf32>
    %134 = arith.addf %132, %133 : vector<8x128xf32>
    %135 = arith.negf %134 : vector<8x128xf32>
    %136 = math.exp %135 : vector<8x128xf32>
    %cst_51 = arith.constant 1.000000e+00 : f32
    %137 = vector.broadcast %cst_51 : f32 to vector<8x128xf32>
    %138 = arith.addf %137, %136 : vector<8x128xf32>
    %139 = arith.divf %137, %138 : vector<8x128xf32>
    %140 = vector.extract_strided_slice %122 {offsets = [0, 256], sizes = [8, 128], strides = [1, 1]} : vector<8x384xf32> to vector<8x128xf32>
    %141 = vector.extract_strided_slice %123 {offsets = [0, 256], sizes = [8, 128], strides = [1, 1]} : vector<8x384xf32> to vector<8x128xf32>
    %142 = arith.addf %141, %25 : vector<8x128xf32>
    %143 = arith.mulf %131, %142 : vector<8x128xf32>
    %144 = arith.addf %140, %143 : vector<8x128xf32>
    %145 = math.tanh %144 : vector<8x128xf32>
    %cst_52 = arith.constant 1.000000e+00 : f32
    %146 = vector.broadcast %cst_52 : f32 to vector<8x128xf32>
    %147 = arith.subf %146, %139 : vector<8x128xf32>
    %148 = arith.mulf %147, %145 : vector<8x128xf32>
    %149 = arith.mulf %139, %88 : vector<8x128xf32>
    %150 = arith.addf %148, %149 : vector<8x128xf32>
    %c2_i32 = arith.constant 2 : i32
    %151 = arith.index_cast %c2_i32 : i32 to index
    %c0_53 = arith.constant 0 : index
    %c0_54 = arith.constant 0 : index
    %152 = vector.load %arg14[%151, %c0_53, %c0_54] : memref<8x8x384xf32, #tpu.memory_space<vmem>>, vector<1x8x384xf32>
    %153 = vector.shape_cast %152 : vector<1x8x384xf32> to vector<8x384xf32>
    %cst_55 = arith.constant dense<0.000000e+00> : vector<8x384xf32>
    %154 = tpu.matmul %119, %18, %cst_55 {dimension_numbers = #tpu.dot_dimension_numbers<[1], [0], [0], [1], [0, 0, 1, 1], [], []>} : vector<8x128xf32>, vector<128x384xf32>, vector<8x384xf32> -> vector<8x384xf32>
    %155 = vector.extract_strided_slice %153 {offsets = [0, 0], sizes = [8, 128], strides = [1, 1]} : vector<8x384xf32> to vector<8x128xf32>
    %156 = vector.extract_strided_slice %154 {offsets = [0, 0], sizes = [8, 128], strides = [1, 1]} : vector<8x384xf32> to vector<8x128xf32>
    %157 = arith.addf %155, %156 : vector<8x128xf32>
    %158 = arith.negf %157 : vector<8x128xf32>
    %159 = math.exp %158 : vector<8x128xf32>
    %cst_56 = arith.constant 1.000000e+00 : f32
    %160 = vector.broadcast %cst_56 : f32 to vector<8x128xf32>
    %161 = arith.addf %160, %159 : vector<8x128xf32>
    %162 = arith.divf %160, %161 : vector<8x128xf32>
    %163 = vector.extract_strided_slice %153 {offsets = [0, 128], sizes = [8, 128], strides = [1, 1]} : vector<8x384xf32> to vector<8x128xf32>
    %164 = vector.extract_strided_slice %154 {offsets = [0, 128], sizes = [8, 128], strides = [1, 1]} : vector<8x384xf32> to vector<8x128xf32>
    %165 = arith.addf %163, %164 : vector<8x128xf32>
    %166 = arith.negf %165 : vector<8x128xf32>
    %167 = math.exp %166 : vector<8x128xf32>
    %cst_57 = arith.constant 1.000000e+00 : f32
    %168 = vector.broadcast %cst_57 : f32 to vector<8x128xf32>
    %169 = arith.addf %168, %167 : vector<8x128xf32>
    %170 = arith.divf %168, %169 : vector<8x128xf32>
    %171 = vector.extract_strided_slice %153 {offsets = [0, 256], sizes = [8, 128], strides = [1, 1]} : vector<8x384xf32> to vector<8x128xf32>
    %172 = vector.extract_strided_slice %154 {offsets = [0, 256], sizes = [8, 128], strides = [1, 1]} : vector<8x384xf32> to vector<8x128xf32>
    %173 = arith.addf %172, %22 : vector<8x128xf32>
    %174 = arith.mulf %162, %173 : vector<8x128xf32>
    %175 = arith.addf %171, %174 : vector<8x128xf32>
    %176 = math.tanh %175 : vector<8x128xf32>
    %cst_58 = arith.constant 1.000000e+00 : f32
    %177 = vector.broadcast %cst_58 : f32 to vector<8x128xf32>
    %178 = arith.subf %177, %170 : vector<8x128xf32>
    %179 = arith.mulf %178, %176 : vector<8x128xf32>
    %180 = arith.mulf %170, %119 : vector<8x128xf32>
    %181 = arith.addf %179, %180 : vector<8x128xf32>
    %182 = arith.index_cast %c2_i32 : i32 to index
    %c0_59 = arith.constant 0 : index
    %c0_60 = arith.constant 0 : index
    %183 = vector.load %arg15[%182, %c0_59, %c0_60] : memref<8x8x384xf32, #tpu.memory_space<vmem>>, vector<1x8x384xf32>
    %184 = vector.shape_cast %183 : vector<1x8x384xf32> to vector<8x384xf32>
    %cst_61 = arith.constant dense<0.000000e+00> : vector<8x384xf32>
    %185 = tpu.matmul %150, %19, %cst_61 {dimension_numbers = #tpu.dot_dimension_numbers<[1], [0], [0], [1], [0, 0, 1, 1], [], []>} : vector<8x128xf32>, vector<128x384xf32>, vector<8x384xf32> -> vector<8x384xf32>
    %186 = vector.extract_strided_slice %184 {offsets = [0, 0], sizes = [8, 128], strides = [1, 1]} : vector<8x384xf32> to vector<8x128xf32>
    %187 = vector.extract_strided_slice %185 {offsets = [0, 0], sizes = [8, 128], strides = [1, 1]} : vector<8x384xf32> to vector<8x128xf32>
    %188 = arith.addf %186, %187 : vector<8x128xf32>
    %189 = arith.negf %188 : vector<8x128xf32>
    %190 = math.exp %189 : vector<8x128xf32>
    %cst_62 = arith.constant 1.000000e+00 : f32
    %191 = vector.broadcast %cst_62 : f32 to vector<8x128xf32>
    %192 = arith.addf %191, %190 : vector<8x128xf32>
    %193 = arith.divf %191, %192 : vector<8x128xf32>
    %194 = vector.extract_strided_slice %184 {offsets = [0, 128], sizes = [8, 128], strides = [1, 1]} : vector<8x384xf32> to vector<8x128xf32>
    %195 = vector.extract_strided_slice %185 {offsets = [0, 128], sizes = [8, 128], strides = [1, 1]} : vector<8x384xf32> to vector<8x128xf32>
    %196 = arith.addf %194, %195 : vector<8x128xf32>
    %197 = arith.negf %196 : vector<8x128xf32>
    %198 = math.exp %197 : vector<8x128xf32>
    %cst_63 = arith.constant 1.000000e+00 : f32
    %199 = vector.broadcast %cst_63 : f32 to vector<8x128xf32>
    %200 = arith.addf %199, %198 : vector<8x128xf32>
    %201 = arith.divf %199, %200 : vector<8x128xf32>
    %202 = vector.extract_strided_slice %184 {offsets = [0, 256], sizes = [8, 128], strides = [1, 1]} : vector<8x384xf32> to vector<8x128xf32>
    %203 = vector.extract_strided_slice %185 {offsets = [0, 256], sizes = [8, 128], strides = [1, 1]} : vector<8x384xf32> to vector<8x128xf32>
    %204 = arith.addf %203, %25 : vector<8x128xf32>
    %205 = arith.mulf %193, %204 : vector<8x128xf32>
    %206 = arith.addf %202, %205 : vector<8x128xf32>
    %207 = math.tanh %206 : vector<8x128xf32>
    %cst_64 = arith.constant 1.000000e+00 : f32
    %208 = vector.broadcast %cst_64 : f32 to vector<8x128xf32>
    %209 = arith.subf %208, %201 : vector<8x128xf32>
    %210 = arith.mulf %209, %207 : vector<8x128xf32>
    %211 = arith.mulf %201, %150 : vector<8x128xf32>
    %212 = arith.addf %210, %211 : vector<8x128xf32>
    %c3_i32 = arith.constant 3 : i32
    %213 = arith.index_cast %c3_i32 : i32 to index
    %c0_65 = arith.constant 0 : index
    %c0_66 = arith.constant 0 : index
    %214 = vector.load %arg14[%213, %c0_65, %c0_66] : memref<8x8x384xf32, #tpu.memory_space<vmem>>, vector<1x8x384xf32>
    %215 = vector.shape_cast %214 : vector<1x8x384xf32> to vector<8x384xf32>
    %cst_67 = arith.constant dense<0.000000e+00> : vector<8x384xf32>
    %216 = tpu.matmul %181, %18, %cst_67 {dimension_numbers = #tpu.dot_dimension_numbers<[1], [0], [0], [1], [0, 0, 1, 1], [], []>} : vector<8x128xf32>, vector<128x384xf32>, vector<8x384xf32> -> vector<8x384xf32>
    %217 = vector.extract_strided_slice %215 {offsets = [0, 0], sizes = [8, 128], strides = [1, 1]} : vector<8x384xf32> to vector<8x128xf32>
    %218 = vector.extract_strided_slice %216 {offsets = [0, 0], sizes = [8, 128], strides = [1, 1]} : vector<8x384xf32> to vector<8x128xf32>
    %219 = arith.addf %217, %218 : vector<8x128xf32>
    %220 = arith.negf %219 : vector<8x128xf32>
    %221 = math.exp %220 : vector<8x128xf32>
    %cst_68 = arith.constant 1.000000e+00 : f32
    %222 = vector.broadcast %cst_68 : f32 to vector<8x128xf32>
    %223 = arith.addf %222, %221 : vector<8x128xf32>
    %224 = arith.divf %222, %223 : vector<8x128xf32>
    %225 = vector.extract_strided_slice %215 {offsets = [0, 128], sizes = [8, 128], strides = [1, 1]} : vector<8x384xf32> to vector<8x128xf32>
    %226 = vector.extract_strided_slice %216 {offsets = [0, 128], sizes = [8, 128], strides = [1, 1]} : vector<8x384xf32> to vector<8x128xf32>
    %227 = arith.addf %225, %226 : vector<8x128xf32>
    %228 = arith.negf %227 : vector<8x128xf32>
    %229 = math.exp %228 : vector<8x128xf32>
    %cst_69 = arith.constant 1.000000e+00 : f32
    %230 = vector.broadcast %cst_69 : f32 to vector<8x128xf32>
    %231 = arith.addf %230, %229 : vector<8x128xf32>
    %232 = arith.divf %230, %231 : vector<8x128xf32>
    %233 = vector.extract_strided_slice %215 {offsets = [0, 256], sizes = [8, 128], strides = [1, 1]} : vector<8x384xf32> to vector<8x128xf32>
    %234 = vector.extract_strided_slice %216 {offsets = [0, 256], sizes = [8, 128], strides = [1, 1]} : vector<8x384xf32> to vector<8x128xf32>
    %235 = arith.addf %234, %22 : vector<8x128xf32>
    %236 = arith.mulf %224, %235 : vector<8x128xf32>
    %237 = arith.addf %233, %236 : vector<8x128xf32>
    %238 = math.tanh %237 : vector<8x128xf32>
    %cst_70 = arith.constant 1.000000e+00 : f32
    %239 = vector.broadcast %cst_70 : f32 to vector<8x128xf32>
    %240 = arith.subf %239, %232 : vector<8x128xf32>
    %241 = arith.mulf %240, %238 : vector<8x128xf32>
    %242 = arith.mulf %232, %181 : vector<8x128xf32>
    %243 = arith.addf %241, %242 : vector<8x128xf32>
    %244 = arith.index_cast %c3_i32 : i32 to index
    %c0_71 = arith.constant 0 : index
    %c0_72 = arith.constant 0 : index
    %245 = vector.load %arg15[%244, %c0_71, %c0_72] : memref<8x8x384xf32, #tpu.memory_space<vmem>>, vector<1x8x384xf32>
    %246 = vector.shape_cast %245 : vector<1x8x384xf32> to vector<8x384xf32>
    %cst_73 = arith.constant dense<0.000000e+00> : vector<8x384xf32>
    %247 = tpu.matmul %212, %19, %cst_73 {dimension_numbers = #tpu.dot_dimension_numbers<[1], [0], [0], [1], [0, 0, 1, 1], [], []>} : vector<8x128xf32>, vector<128x384xf32>, vector<8x384xf32> -> vector<8x384xf32>
    %248 = vector.extract_strided_slice %246 {offsets = [0, 0], sizes = [8, 128], strides = [1, 1]} : vector<8x384xf32> to vector<8x128xf32>
    %249 = vector.extract_strided_slice %247 {offsets = [0, 0], sizes = [8, 128], strides = [1, 1]} : vector<8x384xf32> to vector<8x128xf32>
    %250 = arith.addf %248, %249 : vector<8x128xf32>
    %251 = arith.negf %250 : vector<8x128xf32>
    %252 = math.exp %251 : vector<8x128xf32>
    %cst_74 = arith.constant 1.000000e+00 : f32
    %253 = vector.broadcast %cst_74 : f32 to vector<8x128xf32>
    %254 = arith.addf %253, %252 : vector<8x128xf32>
    %255 = arith.divf %253, %254 : vector<8x128xf32>
    %256 = vector.extract_strided_slice %246 {offsets = [0, 128], sizes = [8, 128], strides = [1, 1]} : vector<8x384xf32> to vector<8x128xf32>
    %257 = vector.extract_strided_slice %247 {offsets = [0, 128], sizes = [8, 128], strides = [1, 1]} : vector<8x384xf32> to vector<8x128xf32>
    %258 = arith.addf %256, %257 : vector<8x128xf32>
    %259 = arith.negf %258 : vector<8x128xf32>
    %260 = math.exp %259 : vector<8x128xf32>
    %cst_75 = arith.constant 1.000000e+00 : f32
    %261 = vector.broadcast %cst_75 : f32 to vector<8x128xf32>
    %262 = arith.addf %261, %260 : vector<8x128xf32>
    %263 = arith.divf %261, %262 : vector<8x128xf32>
    %264 = vector.extract_strided_slice %246 {offsets = [0, 256], sizes = [8, 128], strides = [1, 1]} : vector<8x384xf32> to vector<8x128xf32>
    %265 = vector.extract_strided_slice %247 {offsets = [0, 256], sizes = [8, 128], strides = [1, 1]} : vector<8x384xf32> to vector<8x128xf32>
    %266 = arith.addf %265, %25 : vector<8x128xf32>
    %267 = arith.mulf %255, %266 : vector<8x128xf32>
    %268 = arith.addf %264, %267 : vector<8x128xf32>
    %269 = math.tanh %268 : vector<8x128xf32>
    %cst_76 = arith.constant 1.000000e+00 : f32
    %270 = vector.broadcast %cst_76 : f32 to vector<8x128xf32>
    %271 = arith.subf %270, %263 : vector<8x128xf32>
    %272 = arith.mulf %271, %269 : vector<8x128xf32>
    %273 = arith.mulf %263, %212 : vector<8x128xf32>
    %274 = arith.addf %272, %273 : vector<8x128xf32>
    %c4_i32 = arith.constant 4 : i32
    %275 = arith.index_cast %c4_i32 : i32 to index
    %c0_77 = arith.constant 0 : index
    %c0_78 = arith.constant 0 : index
    %276 = vector.load %arg14[%275, %c0_77, %c0_78] : memref<8x8x384xf32, #tpu.memory_space<vmem>>, vector<1x8x384xf32>
    %277 = vector.shape_cast %276 : vector<1x8x384xf32> to vector<8x384xf32>
    %cst_79 = arith.constant dense<0.000000e+00> : vector<8x384xf32>
    %278 = tpu.matmul %243, %18, %cst_79 {dimension_numbers = #tpu.dot_dimension_numbers<[1], [0], [0], [1], [0, 0, 1, 1], [], []>} : vector<8x128xf32>, vector<128x384xf32>, vector<8x384xf32> -> vector<8x384xf32>
    %279 = vector.extract_strided_slice %277 {offsets = [0, 0], sizes = [8, 128], strides = [1, 1]} : vector<8x384xf32> to vector<8x128xf32>
    %280 = vector.extract_strided_slice %278 {offsets = [0, 0], sizes = [8, 128], strides = [1, 1]} : vector<8x384xf32> to vector<8x128xf32>
    %281 = arith.addf %279, %280 : vector<8x128xf32>
    %282 = arith.negf %281 : vector<8x128xf32>
    %283 = math.exp %282 : vector<8x128xf32>
    %cst_80 = arith.constant 1.000000e+00 : f32
    %284 = vector.broadcast %cst_80 : f32 to vector<8x128xf32>
    %285 = arith.addf %284, %283 : vector<8x128xf32>
    %286 = arith.divf %284, %285 : vector<8x128xf32>
    %287 = vector.extract_strided_slice %277 {offsets = [0, 128], sizes = [8, 128], strides = [1, 1]} : vector<8x384xf32> to vector<8x128xf32>
    %288 = vector.extract_strided_slice %278 {offsets = [0, 128], sizes = [8, 128], strides = [1, 1]} : vector<8x384xf32> to vector<8x128xf32>
    %289 = arith.addf %287, %288 : vector<8x128xf32>
    %290 = arith.negf %289 : vector<8x128xf32>
    %291 = math.exp %290 : vector<8x128xf32>
    %cst_81 = arith.constant 1.000000e+00 : f32
    %292 = vector.broadcast %cst_81 : f32 to vector<8x128xf32>
    %293 = arith.addf %292, %291 : vector<8x128xf32>
    %294 = arith.divf %292, %293 : vector<8x128xf32>
    %295 = vector.extract_strided_slice %277 {offsets = [0, 256], sizes = [8, 128], strides = [1, 1]} : vector<8x384xf32> to vector<8x128xf32>
    %296 = vector.extract_strided_slice %278 {offsets = [0, 256], sizes = [8, 128], strides = [1, 1]} : vector<8x384xf32> to vector<8x128xf32>
    %297 = arith.addf %296, %22 : vector<8x128xf32>
    %298 = arith.mulf %286, %297 : vector<8x128xf32>
    %299 = arith.addf %295, %298 : vector<8x128xf32>
    %300 = math.tanh %299 : vector<8x128xf32>
    %cst_82 = arith.constant 1.000000e+00 : f32
    %301 = vector.broadcast %cst_82 : f32 to vector<8x128xf32>
    %302 = arith.subf %301, %294 : vector<8x128xf32>
    %303 = arith.mulf %302, %300 : vector<8x128xf32>
    %304 = arith.mulf %294, %243 : vector<8x128xf32>
    %305 = arith.addf %303, %304 : vector<8x128xf32>
    %306 = arith.index_cast %c4_i32 : i32 to index
    %c0_83 = arith.constant 0 : index
    %c0_84 = arith.constant 0 : index
    %307 = vector.load %arg15[%306, %c0_83, %c0_84] : memref<8x8x384xf32, #tpu.memory_space<vmem>>, vector<1x8x384xf32>
    %308 = vector.shape_cast %307 : vector<1x8x384xf32> to vector<8x384xf32>
    %cst_85 = arith.constant dense<0.000000e+00> : vector<8x384xf32>
    %309 = tpu.matmul %274, %19, %cst_85 {dimension_numbers = #tpu.dot_dimension_numbers<[1], [0], [0], [1], [0, 0, 1, 1], [], []>} : vector<8x128xf32>, vector<128x384xf32>, vector<8x384xf32> -> vector<8x384xf32>
    %310 = vector.extract_strided_slice %308 {offsets = [0, 0], sizes = [8, 128], strides = [1, 1]} : vector<8x384xf32> to vector<8x128xf32>
    %311 = vector.extract_strided_slice %309 {offsets = [0, 0], sizes = [8, 128], strides = [1, 1]} : vector<8x384xf32> to vector<8x128xf32>
    %312 = arith.addf %310, %311 : vector<8x128xf32>
    %313 = arith.negf %312 : vector<8x128xf32>
    %314 = math.exp %313 : vector<8x128xf32>
    %cst_86 = arith.constant 1.000000e+00 : f32
    %315 = vector.broadcast %cst_86 : f32 to vector<8x128xf32>
    %316 = arith.addf %315, %314 : vector<8x128xf32>
    %317 = arith.divf %315, %316 : vector<8x128xf32>
    %318 = vector.extract_strided_slice %308 {offsets = [0, 128], sizes = [8, 128], strides = [1, 1]} : vector<8x384xf32> to vector<8x128xf32>
    %319 = vector.extract_strided_slice %309 {offsets = [0, 128], sizes = [8, 128], strides = [1, 1]} : vector<8x384xf32> to vector<8x128xf32>
    %320 = arith.addf %318, %319 : vector<8x128xf32>
    %321 = arith.negf %320 : vector<8x128xf32>
    %322 = math.exp %321 : vector<8x128xf32>
    %cst_87 = arith.constant 1.000000e+00 : f32
    %323 = vector.broadcast %cst_87 : f32 to vector<8x128xf32>
    %324 = arith.addf %323, %322 : vector<8x128xf32>
    %325 = arith.divf %323, %324 : vector<8x128xf32>
    %326 = vector.extract_strided_slice %308 {offsets = [0, 256], sizes = [8, 128], strides = [1, 1]} : vector<8x384xf32> to vector<8x128xf32>
    %327 = vector.extract_strided_slice %309 {offsets = [0, 256], sizes = [8, 128], strides = [1, 1]} : vector<8x384xf32> to vector<8x128xf32>
    %328 = arith.addf %327, %25 : vector<8x128xf32>
    %329 = arith.mulf %317, %328 : vector<8x128xf32>
    %330 = arith.addf %326, %329 : vector<8x128xf32>
    %331 = math.tanh %330 : vector<8x128xf32>
    %cst_88 = arith.constant 1.000000e+00 : f32
    %332 = vector.broadcast %cst_88 : f32 to vector<8x128xf32>
    %333 = arith.subf %332, %325 : vector<8x128xf32>
    %334 = arith.mulf %333, %331 : vector<8x128xf32>
    %335 = arith.mulf %325, %274 : vector<8x128xf32>
    %336 = arith.addf %334, %335 : vector<8x128xf32>
    %c5_i32 = arith.constant 5 : i32
    %337 = arith.index_cast %c5_i32 : i32 to index
    %c0_89 = arith.constant 0 : index
    %c0_90 = arith.constant 0 : index
    %338 = vector.load %arg14[%337, %c0_89, %c0_90] : memref<8x8x384xf32, #tpu.memory_space<vmem>>, vector<1x8x384xf32>
    %339 = vector.shape_cast %338 : vector<1x8x384xf32> to vector<8x384xf32>
    %cst_91 = arith.constant dense<0.000000e+00> : vector<8x384xf32>
    %340 = tpu.matmul %305, %18, %cst_91 {dimension_numbers = #tpu.dot_dimension_numbers<[1], [0], [0], [1], [0, 0, 1, 1], [], []>} : vector<8x128xf32>, vector<128x384xf32>, vector<8x384xf32> -> vector<8x384xf32>
    %341 = vector.extract_strided_slice %339 {offsets = [0, 0], sizes = [8, 128], strides = [1, 1]} : vector<8x384xf32> to vector<8x128xf32>
    %342 = vector.extract_strided_slice %340 {offsets = [0, 0], sizes = [8, 128], strides = [1, 1]} : vector<8x384xf32> to vector<8x128xf32>
    %343 = arith.addf %341, %342 : vector<8x128xf32>
    %344 = arith.negf %343 : vector<8x128xf32>
    %345 = math.exp %344 : vector<8x128xf32>
    %cst_92 = arith.constant 1.000000e+00 : f32
    %346 = vector.broadcast %cst_92 : f32 to vector<8x128xf32>
    %347 = arith.addf %346, %345 : vector<8x128xf32>
    %348 = arith.divf %346, %347 : vector<8x128xf32>
    %349 = vector.extract_strided_slice %339 {offsets = [0, 128], sizes = [8, 128], strides = [1, 1]} : vector<8x384xf32> to vector<8x128xf32>
    %350 = vector.extract_strided_slice %340 {offsets = [0, 128], sizes = [8, 128], strides = [1, 1]} : vector<8x384xf32> to vector<8x128xf32>
    %351 = arith.addf %349, %350 : vector<8x128xf32>
    %352 = arith.negf %351 : vector<8x128xf32>
    %353 = math.exp %352 : vector<8x128xf32>
    %cst_93 = arith.constant 1.000000e+00 : f32
    %354 = vector.broadcast %cst_93 : f32 to vector<8x128xf32>
    %355 = arith.addf %354, %353 : vector<8x128xf32>
    %356 = arith.divf %354, %355 : vector<8x128xf32>
    %357 = vector.extract_strided_slice %339 {offsets = [0, 256], sizes = [8, 128], strides = [1, 1]} : vector<8x384xf32> to vector<8x128xf32>
    %358 = vector.extract_strided_slice %340 {offsets = [0, 256], sizes = [8, 128], strides = [1, 1]} : vector<8x384xf32> to vector<8x128xf32>
    %359 = arith.addf %358, %22 : vector<8x128xf32>
    %360 = arith.mulf %348, %359 : vector<8x128xf32>
    %361 = arith.addf %357, %360 : vector<8x128xf32>
    %362 = math.tanh %361 : vector<8x128xf32>
    %cst_94 = arith.constant 1.000000e+00 : f32
    %363 = vector.broadcast %cst_94 : f32 to vector<8x128xf32>
    %364 = arith.subf %363, %356 : vector<8x128xf32>
    %365 = arith.mulf %364, %362 : vector<8x128xf32>
    %366 = arith.mulf %356, %305 : vector<8x128xf32>
    %367 = arith.addf %365, %366 : vector<8x128xf32>
    %368 = arith.index_cast %c5_i32 : i32 to index
    %c0_95 = arith.constant 0 : index
    %c0_96 = arith.constant 0 : index
    %369 = vector.load %arg15[%368, %c0_95, %c0_96] : memref<8x8x384xf32, #tpu.memory_space<vmem>>, vector<1x8x384xf32>
    %370 = vector.shape_cast %369 : vector<1x8x384xf32> to vector<8x384xf32>
    %cst_97 = arith.constant dense<0.000000e+00> : vector<8x384xf32>
    %371 = tpu.matmul %336, %19, %cst_97 {dimension_numbers = #tpu.dot_dimension_numbers<[1], [0], [0], [1], [0, 0, 1, 1], [], []>} : vector<8x128xf32>, vector<128x384xf32>, vector<8x384xf32> -> vector<8x384xf32>
    %372 = vector.extract_strided_slice %370 {offsets = [0, 0], sizes = [8, 128], strides = [1, 1]} : vector<8x384xf32> to vector<8x128xf32>
    %373 = vector.extract_strided_slice %371 {offsets = [0, 0], sizes = [8, 128], strides = [1, 1]} : vector<8x384xf32> to vector<8x128xf32>
    %374 = arith.addf %372, %373 : vector<8x128xf32>
    %375 = arith.negf %374 : vector<8x128xf32>
    %376 = math.exp %375 : vector<8x128xf32>
    %cst_98 = arith.constant 1.000000e+00 : f32
    %377 = vector.broadcast %cst_98 : f32 to vector<8x128xf32>
    %378 = arith.addf %377, %376 : vector<8x128xf32>
    %379 = arith.divf %377, %378 : vector<8x128xf32>
    %380 = vector.extract_strided_slice %370 {offsets = [0, 128], sizes = [8, 128], strides = [1, 1]} : vector<8x384xf32> to vector<8x128xf32>
    %381 = vector.extract_strided_slice %371 {offsets = [0, 128], sizes = [8, 128], strides = [1, 1]} : vector<8x384xf32> to vector<8x128xf32>
    %382 = arith.addf %380, %381 : vector<8x128xf32>
    %383 = arith.negf %382 : vector<8x128xf32>
    %384 = math.exp %383 : vector<8x128xf32>
    %cst_99 = arith.constant 1.000000e+00 : f32
    %385 = vector.broadcast %cst_99 : f32 to vector<8x128xf32>
    %386 = arith.addf %385, %384 : vector<8x128xf32>
    %387 = arith.divf %385, %386 : vector<8x128xf32>
    %388 = vector.extract_strided_slice %370 {offsets = [0, 256], sizes = [8, 128], strides = [1, 1]} : vector<8x384xf32> to vector<8x128xf32>
    %389 = vector.extract_strided_slice %371 {offsets = [0, 256], sizes = [8, 128], strides = [1, 1]} : vector<8x384xf32> to vector<8x128xf32>
    %390 = arith.addf %389, %25 : vector<8x128xf32>
    %391 = arith.mulf %379, %390 : vector<8x128xf32>
    %392 = arith.addf %388, %391 : vector<8x128xf32>
    %393 = math.tanh %392 : vector<8x128xf32>
    %cst_100 = arith.constant 1.000000e+00 : f32
    %394 = vector.broadcast %cst_100 : f32 to vector<8x128xf32>
    %395 = arith.subf %394, %387 : vector<8x128xf32>
    %396 = arith.mulf %395, %393 : vector<8x128xf32>
    %397 = arith.mulf %387, %336 : vector<8x128xf32>
    %398 = arith.addf %396, %397 : vector<8x128xf32>
    %c6_i32 = arith.constant 6 : i32
    %399 = arith.index_cast %c6_i32 : i32 to index
    %c0_101 = arith.constant 0 : index
    %c0_102 = arith.constant 0 : index
    %400 = vector.load %arg14[%399, %c0_101, %c0_102] : memref<8x8x384xf32, #tpu.memory_space<vmem>>, vector<1x8x384xf32>
    %401 = vector.shape_cast %400 : vector<1x8x384xf32> to vector<8x384xf32>
    %cst_103 = arith.constant dense<0.000000e+00> : vector<8x384xf32>
    %402 = tpu.matmul %367, %18, %cst_103 {dimension_numbers = #tpu.dot_dimension_numbers<[1], [0], [0], [1], [0, 0, 1, 1], [], []>} : vector<8x128xf32>, vector<128x384xf32>, vector<8x384xf32> -> vector<8x384xf32>
    %403 = vector.extract_strided_slice %401 {offsets = [0, 0], sizes = [8, 128], strides = [1, 1]} : vector<8x384xf32> to vector<8x128xf32>
    %404 = vector.extract_strided_slice %402 {offsets = [0, 0], sizes = [8, 128], strides = [1, 1]} : vector<8x384xf32> to vector<8x128xf32>
    %405 = arith.addf %403, %404 : vector<8x128xf32>
    %406 = arith.negf %405 : vector<8x128xf32>
    %407 = math.exp %406 : vector<8x128xf32>
    %cst_104 = arith.constant 1.000000e+00 : f32
    %408 = vector.broadcast %cst_104 : f32 to vector<8x128xf32>
    %409 = arith.addf %408, %407 : vector<8x128xf32>
    %410 = arith.divf %408, %409 : vector<8x128xf32>
    %411 = vector.extract_strided_slice %401 {offsets = [0, 128], sizes = [8, 128], strides = [1, 1]} : vector<8x384xf32> to vector<8x128xf32>
    %412 = vector.extract_strided_slice %402 {offsets = [0, 128], sizes = [8, 128], strides = [1, 1]} : vector<8x384xf32> to vector<8x128xf32>
    %413 = arith.addf %411, %412 : vector<8x128xf32>
    %414 = arith.negf %413 : vector<8x128xf32>
    %415 = math.exp %414 : vector<8x128xf32>
    %cst_105 = arith.constant 1.000000e+00 : f32
    %416 = vector.broadcast %cst_105 : f32 to vector<8x128xf32>
    %417 = arith.addf %416, %415 : vector<8x128xf32>
    %418 = arith.divf %416, %417 : vector<8x128xf32>
    %419 = vector.extract_strided_slice %401 {offsets = [0, 256], sizes = [8, 128], strides = [1, 1]} : vector<8x384xf32> to vector<8x128xf32>
    %420 = vector.extract_strided_slice %402 {offsets = [0, 256], sizes = [8, 128], strides = [1, 1]} : vector<8x384xf32> to vector<8x128xf32>
    %421 = arith.addf %420, %22 : vector<8x128xf32>
    %422 = arith.mulf %410, %421 : vector<8x128xf32>
    %423 = arith.addf %419, %422 : vector<8x128xf32>
    %424 = math.tanh %423 : vector<8x128xf32>
    %cst_106 = arith.constant 1.000000e+00 : f32
    %425 = vector.broadcast %cst_106 : f32 to vector<8x128xf32>
    %426 = arith.subf %425, %418 : vector<8x128xf32>
    %427 = arith.mulf %426, %424 : vector<8x128xf32>
    %428 = arith.mulf %418, %367 : vector<8x128xf32>
    %429 = arith.addf %427, %428 : vector<8x128xf32>
    %430 = arith.index_cast %c6_i32 : i32 to index
    %c0_107 = arith.constant 0 : index
    %c0_108 = arith.constant 0 : index
    %431 = vector.load %arg15[%430, %c0_107, %c0_108] : memref<8x8x384xf32, #tpu.memory_space<vmem>>, vector<1x8x384xf32>
    %432 = vector.shape_cast %431 : vector<1x8x384xf32> to vector<8x384xf32>
    %cst_109 = arith.constant dense<0.000000e+00> : vector<8x384xf32>
    %433 = tpu.matmul %398, %19, %cst_109 {dimension_numbers = #tpu.dot_dimension_numbers<[1], [0], [0], [1], [0, 0, 1, 1], [], []>} : vector<8x128xf32>, vector<128x384xf32>, vector<8x384xf32> -> vector<8x384xf32>
    %434 = vector.extract_strided_slice %432 {offsets = [0, 0], sizes = [8, 128], strides = [1, 1]} : vector<8x384xf32> to vector<8x128xf32>
    %435 = vector.extract_strided_slice %433 {offsets = [0, 0], sizes = [8, 128], strides = [1, 1]} : vector<8x384xf32> to vector<8x128xf32>
    %436 = arith.addf %434, %435 : vector<8x128xf32>
    %437 = arith.negf %436 : vector<8x128xf32>
    %438 = math.exp %437 : vector<8x128xf32>
    %cst_110 = arith.constant 1.000000e+00 : f32
    %439 = vector.broadcast %cst_110 : f32 to vector<8x128xf32>
    %440 = arith.addf %439, %438 : vector<8x128xf32>
    %441 = arith.divf %439, %440 : vector<8x128xf32>
    %442 = vector.extract_strided_slice %432 {offsets = [0, 128], sizes = [8, 128], strides = [1, 1]} : vector<8x384xf32> to vector<8x128xf32>
    %443 = vector.extract_strided_slice %433 {offsets = [0, 128], sizes = [8, 128], strides = [1, 1]} : vector<8x384xf32> to vector<8x128xf32>
    %444 = arith.addf %442, %443 : vector<8x128xf32>
    %445 = arith.negf %444 : vector<8x128xf32>
    %446 = math.exp %445 : vector<8x128xf32>
    %cst_111 = arith.constant 1.000000e+00 : f32
    %447 = vector.broadcast %cst_111 : f32 to vector<8x128xf32>
    %448 = arith.addf %447, %446 : vector<8x128xf32>
    %449 = arith.divf %447, %448 : vector<8x128xf32>
    %450 = vector.extract_strided_slice %432 {offsets = [0, 256], sizes = [8, 128], strides = [1, 1]} : vector<8x384xf32> to vector<8x128xf32>
    %451 = vector.extract_strided_slice %433 {offsets = [0, 256], sizes = [8, 128], strides = [1, 1]} : vector<8x384xf32> to vector<8x128xf32>
    %452 = arith.addf %451, %25 : vector<8x128xf32>
    %453 = arith.mulf %441, %452 : vector<8x128xf32>
    %454 = arith.addf %450, %453 : vector<8x128xf32>
    %455 = math.tanh %454 : vector<8x128xf32>
    %cst_112 = arith.constant 1.000000e+00 : f32
    %456 = vector.broadcast %cst_112 : f32 to vector<8x128xf32>
    %457 = arith.subf %456, %449 : vector<8x128xf32>
    %458 = arith.mulf %457, %455 : vector<8x128xf32>
    %459 = arith.mulf %449, %398 : vector<8x128xf32>
    %460 = arith.addf %458, %459 : vector<8x128xf32>
    %c7_i32 = arith.constant 7 : i32
    %461 = arith.index_cast %c7_i32 : i32 to index
    %c0_113 = arith.constant 0 : index
    %c0_114 = arith.constant 0 : index
    %462 = vector.load %arg14[%461, %c0_113, %c0_114] : memref<8x8x384xf32, #tpu.memory_space<vmem>>, vector<1x8x384xf32>
    %463 = vector.shape_cast %462 : vector<1x8x384xf32> to vector<8x384xf32>
    %cst_115 = arith.constant dense<0.000000e+00> : vector<8x384xf32>
    %464 = tpu.matmul %429, %18, %cst_115 {dimension_numbers = #tpu.dot_dimension_numbers<[1], [0], [0], [1], [0, 0, 1, 1], [], []>} : vector<8x128xf32>, vector<128x384xf32>, vector<8x384xf32> -> vector<8x384xf32>
    %465 = vector.extract_strided_slice %463 {offsets = [0, 0], sizes = [8, 128], strides = [1, 1]} : vector<8x384xf32> to vector<8x128xf32>
    %466 = vector.extract_strided_slice %464 {offsets = [0, 0], sizes = [8, 128], strides = [1, 1]} : vector<8x384xf32> to vector<8x128xf32>
    %467 = arith.addf %465, %466 : vector<8x128xf32>
    %468 = arith.negf %467 : vector<8x128xf32>
    %469 = math.exp %468 : vector<8x128xf32>
    %cst_116 = arith.constant 1.000000e+00 : f32
    %470 = vector.broadcast %cst_116 : f32 to vector<8x128xf32>
    %471 = arith.addf %470, %469 : vector<8x128xf32>
    %472 = arith.divf %470, %471 : vector<8x128xf32>
    %473 = vector.extract_strided_slice %463 {offsets = [0, 128], sizes = [8, 128], strides = [1, 1]} : vector<8x384xf32> to vector<8x128xf32>
    %474 = vector.extract_strided_slice %464 {offsets = [0, 128], sizes = [8, 128], strides = [1, 1]} : vector<8x384xf32> to vector<8x128xf32>
    %475 = arith.addf %473, %474 : vector<8x128xf32>
    %476 = arith.negf %475 : vector<8x128xf32>
    %477 = math.exp %476 : vector<8x128xf32>
    %cst_117 = arith.constant 1.000000e+00 : f32
    %478 = vector.broadcast %cst_117 : f32 to vector<8x128xf32>
    %479 = arith.addf %478, %477 : vector<8x128xf32>
    %480 = arith.divf %478, %479 : vector<8x128xf32>
    %481 = vector.extract_strided_slice %463 {offsets = [0, 256], sizes = [8, 128], strides = [1, 1]} : vector<8x384xf32> to vector<8x128xf32>
    %482 = vector.extract_strided_slice %464 {offsets = [0, 256], sizes = [8, 128], strides = [1, 1]} : vector<8x384xf32> to vector<8x128xf32>
    %483 = arith.addf %482, %22 : vector<8x128xf32>
    %484 = arith.mulf %472, %483 : vector<8x128xf32>
    %485 = arith.addf %481, %484 : vector<8x128xf32>
    %486 = math.tanh %485 : vector<8x128xf32>
    %cst_118 = arith.constant 1.000000e+00 : f32
    %487 = vector.broadcast %cst_118 : f32 to vector<8x128xf32>
    %488 = arith.subf %487, %480 : vector<8x128xf32>
    %489 = arith.mulf %488, %486 : vector<8x128xf32>
    %490 = arith.mulf %480, %429 : vector<8x128xf32>
    %491 = arith.addf %489, %490 : vector<8x128xf32>
    %492 = arith.index_cast %c7_i32 : i32 to index
    %c0_119 = arith.constant 0 : index
    %c0_120 = arith.constant 0 : index
    %493 = vector.load %arg15[%492, %c0_119, %c0_120] : memref<8x8x384xf32, #tpu.memory_space<vmem>>, vector<1x8x384xf32>
    %494 = vector.shape_cast %493 : vector<1x8x384xf32> to vector<8x384xf32>
    %cst_121 = arith.constant dense<0.000000e+00> : vector<8x384xf32>
    %495 = tpu.matmul %460, %19, %cst_121 {dimension_numbers = #tpu.dot_dimension_numbers<[1], [0], [0], [1], [0, 0, 1, 1], [], []>} : vector<8x128xf32>, vector<128x384xf32>, vector<8x384xf32> -> vector<8x384xf32>
    %496 = vector.extract_strided_slice %494 {offsets = [0, 0], sizes = [8, 128], strides = [1, 1]} : vector<8x384xf32> to vector<8x128xf32>
    %497 = vector.extract_strided_slice %495 {offsets = [0, 0], sizes = [8, 128], strides = [1, 1]} : vector<8x384xf32> to vector<8x128xf32>
    %498 = arith.addf %496, %497 : vector<8x128xf32>
    %499 = arith.negf %498 : vector<8x128xf32>
    %500 = math.exp %499 : vector<8x128xf32>
    %cst_122 = arith.constant 1.000000e+00 : f32
    %501 = vector.broadcast %cst_122 : f32 to vector<8x128xf32>
    %502 = arith.addf %501, %500 : vector<8x128xf32>
    %503 = arith.divf %501, %502 : vector<8x128xf32>
    %504 = vector.extract_strided_slice %494 {offsets = [0, 128], sizes = [8, 128], strides = [1, 1]} : vector<8x384xf32> to vector<8x128xf32>
    %505 = vector.extract_strided_slice %495 {offsets = [0, 128], sizes = [8, 128], strides = [1, 1]} : vector<8x384xf32> to vector<8x128xf32>
    %506 = arith.addf %504, %505 : vector<8x128xf32>
    %507 = arith.negf %506 : vector<8x128xf32>
    %508 = math.exp %507 : vector<8x128xf32>
    %cst_123 = arith.constant 1.000000e+00 : f32
    %509 = vector.broadcast %cst_123 : f32 to vector<8x128xf32>
    %510 = arith.addf %509, %508 : vector<8x128xf32>
    %511 = arith.divf %509, %510 : vector<8x128xf32>
    %512 = vector.extract_strided_slice %494 {offsets = [0, 256], sizes = [8, 128], strides = [1, 1]} : vector<8x384xf32> to vector<8x128xf32>
    %513 = vector.extract_strided_slice %495 {offsets = [0, 256], sizes = [8, 128], strides = [1, 1]} : vector<8x384xf32> to vector<8x128xf32>
    %514 = arith.addf %513, %25 : vector<8x128xf32>
    %515 = arith.mulf %503, %514 : vector<8x128xf32>
    %516 = arith.addf %512, %515 : vector<8x128xf32>
    %517 = math.tanh %516 : vector<8x128xf32>
    %cst_124 = arith.constant 1.000000e+00 : f32
    %518 = vector.broadcast %cst_124 : f32 to vector<8x128xf32>
    %519 = arith.subf %518, %511 : vector<8x128xf32>
    %520 = arith.mulf %519, %517 : vector<8x128xf32>
    %521 = arith.mulf %511, %460 : vector<8x128xf32>
    %522 = arith.addf %520, %521 : vector<8x128xf32>
    %c8_i32 = arith.constant 8 : i32
    %523 = tpu.concatenate %522, %491 in 1 : vector<8x128xf32>, vector<8x128xf32> -> vector<8x256xf32>
    %c0_125 = arith.constant 0 : index
    %c0_126 = arith.constant 0 : index
    %524 = vector.load %arg11[%c0_125, %c0_126] : memref<256x128xf32, #tpu.memory_space<vmem>>, vector<256x128xf32>
    %cst_127 = arith.constant dense<0.000000e+00> : vector<8x128xf32>
    %525 = tpu.matmul %523, %524, %cst_127 {dimension_numbers = #tpu.dot_dimension_numbers<[1], [0], [0], [1], [0, 0, 1, 1], [], []>} : vector<8x256xf32>, vector<256x128xf32>, vector<8x128xf32> -> vector<8x128xf32>
    %c0_128 = arith.constant 0 : index
    %c0_129 = arith.constant 0 : index
    %526 = vector.load %arg12[%c0_128, %c0_129] : memref<1x128xf32, #tpu.memory_space<vmem>>, vector<1x128xf32>
    %527 = vector.broadcast %526 : vector<1x128xf32> to vector<8x128xf32>
    %528 = arith.addf %525, %527 : vector<8x128xf32>
    %c0_130 = arith.constant 0 : index
    %c0_131 = arith.constant 0 : index
    %529 = vector.load %arg13[%c0_130, %c0_131] : memref<8x128xf32, #tpu.memory_space<vmem>>, vector<8x128xf32>
    tpu.vector_store %arg13[%c0_130, %c0_131], %528 {strides = array<i32>} : memref<8x128xf32, #tpu.memory_space<vmem>>, vector<8x128xf32>,
    return
  }
  func.func @transform_0(%arg0: i32) -> (i32, i32, i32) {
    %c0_i32 = arith.constant 0 : i32
    %c0_i32_0 = arith.constant 0 : i32
    %c0_i32_1 = arith.constant 0 : i32
    return %c0_i32, %arg0, %c0_i32_0 : i32, i32, i32
  }
  func.func @transform_1(%arg0: i32) -> (i32, i32, i32) {
    %c0_i32 = arith.constant 0 : i32
    %c0_i32_0 = arith.constant 0 : i32
    %c0_i32_1 = arith.constant 0 : i32
    return %c0_i32, %arg0, %c0_i32_0 : i32, i32, i32
  }
  func.func @transform_2(%arg0: i32) -> (i32, i32) {
    %c0_i32 = arith.constant 0 : i32
    %c0_i32_0 = arith.constant 0 : i32
    %c0_i32_1 = arith.constant 0 : i32
    return %c0_i32, %c0_i32_0 : i32, i32
  }
  func.func @transform_3(%arg0: i32) -> (i32, i32) {
    %c0_i32 = arith.constant 0 : i32
    %c0_i32_0 = arith.constant 0 : i32
    %c0_i32_1 = arith.constant 0 : i32
    return %c0_i32, %c0_i32_0 : i32, i32
  }
  func.func @transform_4(%arg0: i32) -> (i32, i32) {
    %c0_i32 = arith.constant 0 : i32
    %c0_i32_0 = arith.constant 0 : i32
    %c0_i32_1 = arith.constant 0 : i32
    return %c0_i32, %c0_i32_0 : i32, i32
  }
  func.func @transform_5(%arg0: i32) -> (i32, i32) {
    %c0_i32 = arith.constant 0 : i32
    %c0_i32_0 = arith.constant 0 : i32
    %c0_i32_1 = arith.constant 0 : i32
    return %c0_i32, %c0_i32_0 : i32, i32
  }
  func.func @transform_6(%arg0: i32) -> (i32, i32) {
    %c0_i32 = arith.constant 0 : i32
    %c0_i32_0 = arith.constant 0 : i32
    %c0_i32_1 = arith.constant 0 : i32
    return %c0_i32, %c0_i32_0 : i32, i32
  }
  func.func @transform_7(%arg0: i32) -> (i32, i32) {
    %c0_i32 = arith.constant 0 : i32
    %c0_i32_0 = arith.constant 0 : i32
    %c0_i32_1 = arith.constant 0 : i32
    return %c0_i32, %c0_i32_0 : i32, i32
  }
  func.func @transform_8(%arg0: i32) -> (i32, i32) {
    %c0_i32 = arith.constant 0 : i32
    %c0_i32_0 = arith.constant 0 : i32
    %c0_i32_1 = arith.constant 0 : i32
    return %c0_i32, %c0_i32_0 : i32, i32
  }
  func.func @transform_9(%arg0: i32) -> (i32, i32) {
    %c0_i32 = arith.constant 0 : i32
    %c0_i32_0 = arith.constant 0 : i32
    %c0_i32_1 = arith.constant 0 : i32
    return %c0_i32, %c0_i32_0 : i32, i32
  }
  func.func @transform_10(%arg0: i32) -> (i32, i32) {
    %c0_i32 = arith.constant 0 : i32
    %c0_i32_0 = arith.constant 0 : i32
    %c0_i32_1 = arith.constant 0 : i32
    return %c0_i32, %c0_i32_0 : i32, i32
  }
  func.func @transform_11(%arg0: i32) -> (i32, i32) {
    %c0_i32 = arith.constant 0 : i32
    %c0_i32_0 = arith.constant 0 : i32
    %c0_i32_1 = arith.constant 0 : i32
    return %c0_i32, %c0_i32_0 : i32, i32
  }
  func.func @transform_12(%arg0: i32) -> (i32, i32) {
    %c0_i32 = arith.constant 0 : i32
    %c0_i32_0 = arith.constant 0 : i32
    return %arg0, %c0_i32 : i32, i32
  }
}

</mosaic_0001>

<bundles_post_ra>
// kernel: tpu_custom_call.1
= control target key start
LH: loop header
LB: loop body
LE: loop exit
PB: predicated region body
PF: predicated region fallthrough
CT: control target
= control target key end

     0   :  { %17 = vsyncpa [#allocation5], 0  ;;  %s7288_s0 = inlined_call_operand.hbm [shape: f32[8,8,128], index: 0, kind: input, shape index: {}]   ;;  %s7289_s1 = inlined_call_operand.hbm [shape: f32[8,8,128], index: 1, kind: input, shape index: {}]   ;;  %s7290_s2 = inlined_call_operand.hbm [shape: f32[128,384], index: 2, kind: input, shape index: {}]   ;;  %s7291_s3 = inlined_call_operand.hbm [shape: f32[128,384], index: 3, kind: input, shape index: {}]   ;;  %s7292_s4 = inlined_call_operand.vmem [shape: f32[1,384], index: 4, kind: input, shape index: {}]   ;;  %s7293_s5 = inlined_call_operand.vmem [shape: f32[1,128], index: 5, kind: input, shape index: {}]   ;;  %s7294_s6 = inlined_call_operand.hbm [shape: f32[128,384], index: 6, kind: input, shape index: {}]   ;;  %s7295_s7 = inlined_call_operand.hbm [shape: f32[128,384], index: 7, kind: input, shape index: {}]   ;;  %s7296_s8 = inlined_call_operand.vmem [shape: f32[1,384], index: 8, kind: input, shape index: {}]   ;;  %s7297_s9 = inlined_call_operand.vmem [shape: f32[1,128], index: 9, kind: input, shape index: {}]   ;;  %s7298_s10 = inlined_call_operand.hbm [shape: f32[256,128], index: 10, kind: input, shape index: {}]   ;;  %s7299_s11 = inlined_call_operand.vmem [shape: f32[1,128], index: 11, kind: input, shape index: {}]   ;;  %s7300_s12 = inlined_call_operand.hbm [shape: f32[8,128], index: 12, kind: output, shape index: {}]  }
   0x1   :  { %18 = vsyncpa [#allocation8], 0 }
   0x2   :  { %19 = vsyncpa [#allocation11], 0 }
   0x3   :  { %20 = vsyncpa [#allocation14], 0 }
   0x4   :  { %21 = vsyncpa [#allocation6], 0  ;;  %s6196_s21 = smov [#allocation7]   ;;  %s6010_s25 = scalar_lea.hbm %s7289_s1, 1024 }
   0x5   :  { %s39_s22 = sshll.u32 %s6196_s21, 4  ;;  %p6011_p0 = scmp.ne.s32.totalorder %s7289_s1, %s6010_s25  ;;  %s40_s22 = int_to_ptr.vmem [resolvable:$true] %s39_s22 }
   0x6   :  { %p6014_p1 = scmp.lt.u32.totalorder %s6010_s25, %s7289_s1 }
   0x8   :  { %p6016_p2 = pnand %p6014_p1, %p6011_p0 }
   0xa   :  { %6019 = shalt.err (!%p6016_p2)
}
   0xb   :  { %s6020_s30 = scalar_lea.vmem %s40_s22, 1024  ;;  %p6025_p4 = scmp.lt.s32.totalorder %s40_s22, %s40_s22 }
   0xc   :  { %p6021_p3 = scmp.ne.s32.totalorder %s40_s22, %s6020_s30  ;;  %p6026_p5 = scmp.lt.s32.totalorder %s6020_s30, %s6020_s30 }
   0xe   :  { %p6027_p6 = por %p6026_p5, %p6025_p4 }
  0x10   :  { %p6028_p7 = pnand %p6027_p6, %p6021_p3 }
  0x12   :  { %6031 = shalt.err (!%p6028_p7)
}
  0x13   :  { %s6197_s13 = smov 128   ;;  %s6198_s14 = smov 8  }
  0x14   :  { %45 = dma.hbm_to_vmem [thread:$0]  %s7289_s1, 1024, %s40_s22, [#allocation8], %s6197_s13, %s6197_s13, %s6198_s14  }
  0x15   :  { %s6199_s17 = smov [#allocation10]   ;;  %s6200_s19 = smov [#allocation13]  }
  0x16   :  { %s63_s18 = sshll.u32 %s6199_s17, 4  ;;  %s91_s20 = sshll.u32 %s6200_s19, 4  ;;  %s64_s18 = int_to_ptr.vmem [resolvable:$true] %s63_s18  ;;  %s92_s20 = int_to_ptr.vmem [resolvable:$true] %s91_s20 }
  0x17   :  { %s6032_s24 = scalar_lea.hbm %s7291_s3, 6144 }
  0x18   :  { %p6033_p8 = scmp.ne.s32.totalorder %s7291_s3, %s6032_s24  ;;  %p6036_p9 = scmp.lt.u32.totalorder %s6032_s24, %s7291_s3 }
  0x1a   :  { %p6038_p10 = pnand %p6036_p9, %p6033_p8 }
  0x1c   :  { %6041 = shalt.err (!%p6038_p10)
}
  0x1d   :  { %s6042_s1 = scalar_lea.vmem %s64_s18, 6144  ;;  %p6047_p12 = scmp.lt.s32.totalorder %s64_s18, %s64_s18 }
  0x1e   :  { %p6043_p11 = scmp.ne.s32.totalorder %s64_s18, %s6042_s1  ;;  %p6048_p13 = scmp.lt.s32.totalorder %s6042_s1, %s6042_s1 }
  0x20   :  { %p6049_p0 = por %p6048_p13, %p6047_p12 }
  0x22   :  { %p6050_p1 = pnand %p6049_p0, %p6043_p11 }
  0x24   :  { %6053 = shalt.err (!%p6050_p1)
}
  0x25   :  { %s6201_s22 = smov 384   ;;  %s6202_s29 = smov 24  }
  0x26   :  { %69 = dma.hbm_to_vmem [thread:$0]  %s7291_s3, 6144, %s64_s18, [#allocation11], %s6201_s22, %s6201_s22, %s6202_s29  }
  0x27   :  { %s6054_s19 = scalar_lea.hbm %s7295_s7, 6144 }
  0x28   :  { %p6055_p2 = scmp.ne.s32.totalorder %s7295_s7, %s6054_s19  ;;  %p6058_p3 = scmp.lt.u32.totalorder %s6054_s19, %s7295_s7 }
  0x2a   :  { %p6060_p4 = pnand %p6058_p3, %p6055_p2 }
  0x2c   :  { %6063 = shalt.err (!%p6060_p4)
}
  0x2d   :  { %s6064_s26 = scalar_lea.vmem %s92_s20, 6144  ;;  %p6069_p6 = scmp.lt.s32.totalorder %s92_s20, %s92_s20 }
  0x2e   :  { %p6065_p5 = scmp.ne.s32.totalorder %s92_s20, %s6064_s26  ;;  %p6070_p7 = scmp.lt.s32.totalorder %s6064_s26, %s6064_s26 }
  0x30   :  { %p6071_p8 = por %p6070_p7, %p6069_p6 }
  0x32   :  { %p6072_p9 = pnand %p6071_p8, %p6065_p5 }
  0x34   :  { %6075 = shalt.err (!%p6072_p9)
}
  0x35   :  { %97 = dma.hbm_to_vmem [thread:$0]  %s7295_s7, 6144, %s92_s20, [#allocation14], %s6201_s22, %s6201_s22, %s6202_s29  }
  0x36   :  { %s6203_s27 = smov [#allocation4]   ;;  %s6204_s1 = smov [#allocation9]  }
  0x37   :  { %s27_s28 = sshll.u32 %s6203_s27, 4  ;;  %s51_s30 = sshll.u32 %s6204_s1, 4  ;;  %s28_s28 = int_to_ptr.vmem [resolvable:$true] %s27_s28  ;;  %s52_s30 = int_to_ptr.vmem [resolvable:$true] %s51_s30 }
  0x38   :  { %s6076_s17 = scalar_lea.hbm %s7288_s0, 1024 }
  0x39   :  { %p6077_p10 = scmp.ne.s32.totalorder %s7288_s0, %s6076_s17  ;;  %p6080_p11 = scmp.lt.u32.totalorder %s6076_s17, %s7288_s0 }
  0x3b   :  { %p6082_p12 = pnand %p6080_p11, %p6077_p10 }
  0x3d   :  { %6085 = shalt.err (!%p6082_p12)
}
  0x3e   :  { %s6086_s7 = scalar_lea.vmem %s28_s28, 1024  ;;  %p6091_p0 = scmp.lt.s32.totalorder %s28_s28, %s28_s28 }
  0x3f   :  { %p6087_p13 = scmp.ne.s32.totalorder %s28_s28, %s6086_s7  ;;  %p6092_p1 = scmp.lt.s32.totalorder %s6086_s7, %s6086_s7 }
  0x41   :  { %p6093_p2 = por %p6092_p1, %p6091_p0 }
  0x43   :  { %p6094_p3 = pnand %p6093_p2, %p6087_p13 }
  0x45   :  { %6097 = shalt.err (!%p6094_p3)
}
  0x46   :  { %33 = dma.hbm_to_vmem [thread:$0]  %s7288_s0, 1024, %s28_s28, [#allocation5], %s6197_s13, %s6197_s13, %s6198_s14  }
  0x47   :  { %s6098_s18 = scalar_lea.hbm %s7290_s2, 6144 }
  0x48   :  { %p6099_p4 = scmp.ne.s32.totalorder %s7290_s2, %s6098_s18  ;;  %p6102_p5 = scmp.lt.u32.totalorder %s6098_s18, %s7290_s2 }
  0x4a   :  { %p6104_p6 = pnand %p6102_p5, %p6099_p4 }
  0x4c   :  { %6107 = shalt.err (!%p6104_p6)
}
  0x4d   :  { %s6108_s17 = scalar_lea.vmem %s52_s30, 6144  ;;  %p6113_p8 = scmp.lt.s32.totalorder %s52_s30, %s52_s30 }
  0x4e   :  { %p6109_p7 = scmp.ne.s32.totalorder %s52_s30, %s6108_s17  ;;  %p6114_p9 = scmp.lt.s32.totalorder %s6108_s17, %s6108_s17 }
  0x50   :  { %p6115_p10 = por %p6114_p9, %p6113_p8 }
  0x52   :  { %p6116_p11 = pnand %p6115_p10, %p6109_p7 }
  0x54   :  { %6119 = shalt.err (!%p6116_p11)
}
  0x55   :  { %57 = dma.hbm_to_vmem [thread:$0]  %s7290_s2, 6144, %s52_s30, [#allocation8], %s6201_s22, %s6201_s22, %s6202_s29  }
  0x56   :  { %s6205_s19 = smov [#allocation12]   ;;  %s6206_s23 = smov [#allocation15]  }
  0x57   :  { %s79_s21 = sshll.u32 %s6205_s19, 4  ;;  %s107_s24 = sshll.u32 %s6206_s23, 4  ;;  %s80_s21 = int_to_ptr.vmem [resolvable:$true] %s79_s21  ;;  %s108_s24 = int_to_ptr.vmem [resolvable:$true] %s107_s24 }
  0x58   :  { %s6120_s25 = scalar_lea.hbm %s7294_s6, 6144 }
  0x59   :  { %p6121_p12 = scmp.ne.s32.totalorder %s7294_s6, %s6120_s25  ;;  %p6124_p13 = scmp.lt.u32.totalorder %s6120_s25, %s7294_s6 }
  0x5b   :  { %p6126_p0 = pnand %p6124_p13, %p6121_p12 }
  0x5d   :  { %6129 = shalt.err (!%p6126_p0)
}
  0x5e   :  { %s6130_s2 = scalar_lea.vmem %s80_s21, 6144  ;;  %p6135_p2 = scmp.lt.s32.totalorder %s80_s21, %s80_s21 }
  0x5f   :  { %p6131_p1 = scmp.ne.s32.totalorder %s80_s21, %s6130_s2  ;;  %p6136_p3 = scmp.lt.s32.totalorder %s6130_s2, %s6130_s2 }
  0x61   :  { %p6137_p4 = por %p6136_p3, %p6135_p2 }
  0x63   :  { %p6138_p5 = pnand %p6137_p4, %p6131_p1 }
  0x65   :  { %6141 = shalt.err (!%p6138_p5)
}
  0x66   :  { %85 = dma.hbm_to_vmem [thread:$0]  %s7294_s6, 6144, %s80_s21, [#allocation11], %s6201_s22, %s6201_s22, %s6202_s29  }
  0x67   :  { %s6142_s17 = scalar_lea.hbm %s7298_s10, 4096 }
  0x68   :  { %p6143_p6 = scmp.ne.s32.totalorder %s7298_s10, %s6142_s17  ;;  %p6146_p7 = scmp.lt.u32.totalorder %s6142_s17, %s7298_s10 }
  0x6a   :  { %p6148_p8 = pnand %p6146_p7, %p6143_p6 }
  0x6c   :  { %6151 = shalt.err (!%p6148_p8)
}
  0x6d   :  { %s6152_s7 = scalar_lea.vmem %s108_s24, 4096  ;;  %p6157_p10 = scmp.lt.s32.totalorder %s108_s24, %s108_s24 }
  0x6e   :  { %p6153_p9 = scmp.ne.s32.totalorder %s108_s24, %s6152_s7  ;;  %p6158_p11 = scmp.lt.s32.totalorder %s6152_s7, %s6152_s7 }
  0x70   :  { %p6159_p12 = por %p6158_p11, %p6157_p10 }
  0x72   :  { %p6160_p13 = pnand %p6159_p12, %p6153_p9 }
  0x74   :  { %6163 = shalt.err (!%p6160_p13)
}
  0x75   :  { %113 = dma.hbm_to_vmem [thread:$0]  %s7298_s10, 4096, %s108_s24, [#allocation14], %s6197_s13, %s6197_s13, %s6198_s14  }
  0x76   :  { %6186 = dma.done.wait [#allocation5], 1024  }
  0x77   :  { %6187 = vsyncadd [#allocation5], 4294966272 }
  0x78   :  { %6188 = dma.done.wait [#allocation8], 7168  }
  0x79   :  { %6189 = vsyncadd [#allocation8], 4294960128 }
  0x7a   :  { %6190 = dma.done.wait [#allocation11], 12288  }
  0x7b   :  { %6191 = vsyncadd [#allocation11], 4294955008 }
  0x7c   :  { %6192 = dma.done.wait [#allocation14], 10240  }
  0x7d   :  { %6193 = vsyncadd [#allocation14], 4294957056  ;;  %v7301_v0 = vmov 0.0   ;;  %v154_v1 = vld [vmem:[#allocation9 + $0x8] sm:$0xff]  ;;  %v157_v2 = vld [vmem:[#allocation9 + $0x20] sm:$0xff]  ;;  %vm6209_vm0 = vmmov 0  }
  0x7e   :  { %282 = vmatprep.mubr.f32.mxu0 %v7301_v0  ;;  %v153_v3 = vld [vmem:[#allocation9] sm:$0xff]  ;;  %v4713_v4 = vpack.c.bf16 %v157_v2, %v154_v1  ;;  %v156_v5 = vld [vmem:[#allocation9 + $0x18] sm:$0xff]  ;;  %v163_v7 = vld [vmem:[#allocation9 + $0x50] sm:$0xff]  ;;  %s6210_s18 = smov [#allocation16]  }
  0x7f   :  { %v160_v6 = vld [vmem:[#allocation9 + $0x38] sm:$0xff]  ;;  %v4715_v8 = vpack.c.bf16 %v156_v5, %v153_v3  ;;  %v159_v10 = vld [vmem:[#allocation9 + $0x30] sm:$0xff]  ;;  %v162_v11 = vld [vmem:[#allocation9 + $0x48] sm:$0xff]  ;;  %s3663_s27 = sshll.u32 %s6210_s18, 4  ;;  %s3664_s27 = int_to_ptr.vmem [resolvable:$true] %s3663_s27 }
  0x80   :  { %v4717_v9 = vpack.c.bf16 %v163_v7, %v160_v6  ;;  %v166_v12 = vld [vmem:[#allocation9 + $0x68] sm:$0xff]  ;;  %4714 = vmatprep.subr.bf16.mxu0 %v4713_v4  ;;  %v169_v13 = vld [vmem:[#allocation9 + $0x80] sm:$0xff]  ;;  %v4719_v14 = vpack.c.bf16 %v162_v11, %v159_v10  ;;  %v168_v17 = vld [vmem:[#allocation9 + $0x78] sm:$0xff]  ;;  %s6164_s2 = scalar_lea.vmem %s3664_s27, 128  ;;  %p6169_p1 = scmp.lt.s32.totalorder %s3664_s27, %s3664_s27 }
  0x81   :  { %4716 = vmatpush1.bf16.msra.mxu0 %v4715_v8  ;;  %v4721_v15 = vpack.c.bf16 %v169_v13, %v166_v12  ;;  %v165_v16 = vld [vmem:[#allocation9 + $0x60] sm:$0xff]  ;;  %v172_v18 = vld [vmem:[#allocation9 + $0x98] sm:$0xff]  ;;  %v175_v19 = vld [vmem:[#allocation9 + $0xb0] sm:$0xff]  ;;  %p6165_p0 = scmp.ne.s32.totalorder %s3664_s27, %s6164_s2  ;;  %p6170_p2 = scmp.lt.s32.totalorder %s6164_s2, %s6164_s2 }
  0x82   :  { %4718 = vmatprep.subr.bf16.mxu0 %v4717_v9  ;;  %v4723_v20 = vpack.c.bf16 %v168_v17, %v165_v16  ;;  %v171_v21 = vld [vmem:[#allocation9 + $0x90] sm:$0xff]  ;;  %v4725_v22 = vpack.c.bf16 %v175_v19, %v172_v18  ;;  %v174_v23 = vld [vmem:[#allocation9 + $0xa8] sm:$0xff]  ;;  %v181_v27 = vld [vmem:[#allocation9 + $0xe0] sm:$0xff] }
  0x83   :  { %v155_v24 = vld [vmem:[#allocation9 + $0x10] sm:$0xff]  ;;  %v158_v25 = vld [vmem:[#allocation9 + $0x28] sm:$0xff]  ;;  %v161_v29 = vld [vmem:[#allocation9 + $0x40] sm:$0xff]  ;;  %v4727_v31 = vpack.c.bf16 %v174_v23, %v171_v21  ;;  %p6171_p3 = por %p6170_p2, %p6169_p1 }
  0x84   :  { %v178_v26 = vld [vmem:[#allocation9 + $0xc8] sm:$0xff]  ;;  %v4745_v28 = vpack.c.bf16 %v158_v25, %v155_v24  ;;  %v164_v30 = vld [vmem:[#allocation9 + $0x58] sm:$0xff]  ;;  %v177_v32 = vld [vmem:[#allocation9 + $0xc0] sm:$0xff] }
  0x85   :  { %4720 = vmatpush1.bf16.msra.mxu0 %v4719_v14  ;;  %v180_v33 = vld [vmem:[#allocation9 + $0xd8] sm:$0xff]  ;;  %v4749_v34 = vpack.c.bf16 %v164_v30, %v161_v29  ;;  %v4729_v35 = vpack.c.bf16 %v181_v27, %v178_v26  ;;  %v6382_v36 = vld [vmem:[#allocation4] sm:$0xff]  ;;  %v167_v37 = vld [vmem:[#allocation9 + $0x70] sm:$0xff]  ;;  %p6172_p4 = pnand %p6171_p3, %p6165_p0 }
  0x86   :  { %4722 = vmatprep.subr.bf16.mxu0 %v4721_v15  ;;  %4746 = vmatprep.subr.bf16.mxu1 %v4745_v28  ;;  %v170_v38 = vld [vmem:[#allocation9 + $0x88] sm:$0xff]  ;;  %v184_v39 = vld [vmem:[#allocation9 + $0xf8] sm:$0xff]  ;;  %v187_v40 = vld [vmem:[#allocation9 + $0x110] sm:$0xff]  ;;  %v4731_v44 = vpack.c.bf16 %v180_v33, %v177_v32 }
  0x87   :  { %4748 = vmatpush3.bf16.msra.mxu1 %v4745_v28  ;;  %v4753_v41 = vpack.c.bf16 %v170_v38, %v167_v37  ;;  %4097 = vmatprep.mubr.f32.mxu1 %v6382_v36  ;;  %v173_v42 = vld [vmem:[#allocation9 + $0xa0] sm:$0xff]  ;;  %v176_v43 = vld [vmem:[#allocation9 + $0xb8] sm:$0xff]  ;;  %v4733_v45 = vpack.c.bf16 %v187_v40, %v184_v39  ;;  %v183_v46 = vld [vmem:[#allocation9 + $0xf0] sm:$0xff] }
  0x88   :  { %4750 = vmatprep.subr.bf16.mxu1 %v4749_v34  ;;  %v186_v47 = vld [vmem:[#allocation9 + $0x108] sm:$0xff]  ;;  %v193_v49 = vld [vmem:[#allocation9 + $0x140] sm:$0xff]  ;;  %v4757_v50 = vpack.c.bf16 %v176_v43, %v173_v42  ;;  %v179_v51 = vld [vmem:[#allocation9 + $0xd0] sm:$0xff] }
  0x89   :  { %4724 = vmatpush1.bf16.msra.mxu0 %v4723_v20  ;;  %v190_v48 = vld [vmem:[#allocation9 + $0x128] sm:$0xff]  ;;  %v4735_v53 = vpack.c.bf16 %v186_v47, %v183_v46  ;;  %v189_v55 = vld [vmem:[#allocation9 + $0x120] sm:$0xff]  ;;  %v192_v56 = vld [vmem:[#allocation9 + $0x138] sm:$0xff] }
  0x8a   :  { %4726 = vmatprep.subr.bf16.mxu0 %v4725_v22  ;;  %v182_v52 = vld [vmem:[#allocation9 + $0xe8] sm:$0xff]  ;;  %v4737_v54 = vpack.c.bf16 %v193_v49, %v190_v48  ;;  %v196_v57 = vld [vmem:[#allocation9 + $0x158] sm:$0xff]  ;;  %v199_v58 = vld [vmem:[#allocation9 + $0x170] sm:$0xff]  ;;  %v4739_v62 = vpack.c.bf16 %v192_v56, %v189_v55 }
  0x8b   :  { %4752 = vmatpush3.bf16.msra.mxu1 %v4749_v34  ;;  %v4761_v59 = vpack.c.bf16 %v182_v52, %v179_v51  ;;  %v185_v60 = vld [vmem:[#allocation9 + $0x100] sm:$0xff]  ;;  %v188_v61 = vld [vmem:[#allocation9 + $0x118] sm:$0xff]  ;;  %v4741_v63 = vpack.c.bf16 %v199_v58, %v196_v57  ;;  %v195_v1 = vld [vmem:[#allocation9 + $0x150] sm:$0xff] }
  0x8c   :  { %4754 = vmatprep.subr.bf16.mxu1 %v4753_v41  ;;  %v198_v2 = vld [vmem:[#allocation9 + $0x168] sm:$0xff]  ;;  %v440_v4 = vld [vmem:[#allocation12 + $0x20] sm:$0xff]  ;;  %v4765_v5 = vpack.c.bf16 %v188_v61, %v185_v60  ;;  %v191_v6 = vld [vmem:[#allocation9 + $0x130] sm:$0xff] }
  0x8d   :  { %4728 = vmatpush1.bf16.msra.mxu0 %v4727_v31  ;;  %v437_v3 = vld [vmem:[#allocation12 + $0x8] sm:$0xff]  ;;  %v4743_v8 = vpack.c.bf16 %v198_v2, %v195_v1  ;;  %v436_v10 = vld [vmem:[#allocation12] sm:$0xff]  ;;  %v439_v11 = vld [vmem:[#allocation12 + $0x18] sm:$0xff] }
  0x8e   :  { %4730 = vmatprep.subr.bf16.mxu0 %v4729_v35  ;;  %v194_v7 = vld [vmem:[#allocation9 + $0x148] sm:$0xff]  ;;  %v4777_v9 = vpack.c.bf16 %v440_v4, %v437_v3  ;;  %v443_v12 = vld [vmem:[#allocation12 + $0x38] sm:$0xff]  ;;  %v446_v13 = vld [vmem:[#allocation12 + $0x50] sm:$0xff]  ;;  %v4779_v17 = vpack.c.bf16 %v439_v11, %v436_v10 }
  0x8f   :  { %4756 = vmatpush3.bf16.msra.mxu1 %v4753_v41  ;;  %v4769_v14 = vpack.c.bf16 %v194_v7, %v191_v6  ;;  %v197_v15 = vld [vmem:[#allocation9 + $0x160] sm:$0xff]  ;;  %v200_v16 = vld [vmem:[#allocation9 + $0x178] sm:$0xff]  ;;  %v4781_v18 = vpack.c.bf16 %v446_v13, %v443_v12  ;;  %v442_v19 = vld [vmem:[#allocation12 + $0x30] sm:$0xff] }
  0x90   :  { %4758 = vmatprep.subr.bf16.mxu1 %v4757_v50  ;;  %v445_v20 = vld [vmem:[#allocation12 + $0x48] sm:$0xff]  ;;  %v452_v22 = vld [vmem:[#allocation12 + $0x80] sm:$0xff]  ;;  %v4773_v23 = vpack.c.bf16 %v200_v16, %v197_v15  ;;  %v438_v24 = vld [vmem:[#allocation12 + $0x10] sm:$0xff] }
  0x91   :  { %4732 = vmatpush1.bf16.msra.mxu0 %v4731_v44  ;;  %v449_v21 = vld [vmem:[#allocation12 + $0x68] sm:$0xff]  ;;  %v4783_v27 = vpack.c.bf16 %v445_v20, %v442_v19  ;;  %v448_v29 = vld [vmem:[#allocation12 + $0x60] sm:$0xff]  ;;  %v451_v30 = vld [vmem:[#allocation12 + $0x78] sm:$0xff] }
  0x92   :  { %4734 = vmatprep.subr.bf16.mxu0 %v4733_v45  ;;  %v441_v25 = vld [vmem:[#allocation12 + $0x28] sm:$0xff]  ;;  %v4785_v28 = vpack.c.bf16 %v452_v22, %v449_v21  ;;  %v455_v31 = vld [vmem:[#allocation12 + $0x98] sm:$0xff]  ;;  %v458_v32 = vld [vmem:[#allocation12 + $0xb0] sm:$0xff]  ;;  %v4787_v35 = vpack.c.bf16 %v451_v30, %v448_v29 }
  0x93   :  { %4760 = vmatpush3.bf16.msra.mxu1 %v4757_v50  ;;  %v138_v26 = vld [vmem:[#allocation4 + $0x8] sm:$0xff]  ;;  %v4809_v33 = vpack.c.bf16 %v441_v25, %v438_v24  ;;  %v139_v34 = vld [vmem:[#allocation4 + $0x10] sm:$0xff]  ;;  %v447_v37 = vld [vmem:[#allocation12 + $0x58] sm:$0xff]  ;;  %v4789_v38 = vpack.c.bf16 %v458_v32, %v455_v31 }
  0x94   :  { %4762 = vmatprep.subr.bf16.mxu1 %v4761_v59  ;;  %v454_v39 = vld [vmem:[#allocation12 + $0x90] sm:$0xff]  ;;  %v457_v40 = vld [vmem:[#allocation12 + $0xa8] sm:$0xff]  ;;  %v464_v42 = vld [vmem:[#allocation12 + $0xe0] sm:$0xff] }
  0x95   :  { %4736 = vmatpush1.bf16.msra.mxu0 %v4735_v53  ;;  %v461_v41 = vld [vmem:[#allocation12 + $0xc8] sm:$0xff]  ;;  %v140_v44 = vld [vmem:[#allocation4 + $0x18] sm:$0xff]  ;;  %v4791_v45 = vpack.c.bf16 %v457_v40, %v454_v39  ;;  %v450_v46 = vld [vmem:[#allocation12 + $0x70] sm:$0xff] }
  0x96   :  { %4738 = vmatprep.subr.bf16.mxu0 %v4737_v54  ;;  %v453_v47 = vld [vmem:[#allocation12 + $0x88] sm:$0xff]  ;;  %v4793_v48 = vpack.c.bf16 %v464_v42, %v461_v41  ;;  %v460_v49 = vld [vmem:[#allocation12 + $0xc0] sm:$0xff]  ;;  %v463_v50 = vld [vmem:[#allocation12 + $0xd8] sm:$0xff] }
  0x97   :  { %4764 = vmatpush3.bf16.msra.mxu1 %v4761_v59  ;;  %v467_v51 = vld [vmem:[#allocation12 + $0xf8] sm:$0xff]  ;;  %v470_v52 = vld [vmem:[#allocation12 + $0x110] sm:$0xff]  ;;  %v4817_v53 = vpack.c.bf16 %v453_v47, %v450_v46  ;;  %v141_v54 = vld [vmem:[#allocation4 + $0x20] sm:$0xff]  ;;  %v4795_v55 = vpack.c.bf16 %v463_v50, %v460_v49 }
  0x98   :  { %4766 = vmatprep.subr.bf16.mxu1 %v4765_v5  ;;  %v456_v56 = vld [vmem:[#allocation12 + $0xa0] sm:$0xff]  ;;  %v459_v57 = vld [vmem:[#allocation12 + $0xb8] sm:$0xff]  ;;  %v4797_v58 = vpack.c.bf16 %v470_v52, %v467_v51  ;;  %v466_v59 = vld [vmem:[#allocation12 + $0xf0] sm:$0xff] }
  0x99   :  { %4740 = vmatpush1.bf16.msra.mxu0 %v4739_v62  ;;  %v469_v60 = vld [vmem:[#allocation12 + $0x108] sm:$0xff]  ;;  %v476_v62 = vld [vmem:[#allocation12 + $0x140] sm:$0xff]  ;;  %v462_v3 = vld [vmem:[#allocation12 + $0xd0] sm:$0xff] }
  0x9a   :  { %4742 = vmatprep.subr.bf16.mxu0 %v4741_v63  ;;  %v473_v61 = vld [vmem:[#allocation12 + $0x128] sm:$0xff]  ;;  %v4821_v63 = vpack.c.bf16 %v459_v57, %v456_v56  ;;  %v4799_v2 = vpack.c.bf16 %v469_v60, %v466_v59  ;;  %v472_v7 = vld [vmem:[#allocation12 + $0x120] sm:$0xff]  ;;  %v482_v10 = vld [vmem:[#allocation12 + $0x170] sm:$0xff] }
  0x9b   :  { %4768 = vmatpush3.bf16.msra.mxu1 %v4765_v5  ;;  %v142_v1 = vld [vmem:[#allocation4 + $0x28] sm:$0xff]  ;;  %v143_v5 = vld [vmem:[#allocation4 + $0x30] sm:$0xff]  ;;  %v4801_v6 = vpack.c.bf16 %v476_v62, %v473_v61  ;;  %v144_v13 = vld [vmem:[#allocation4 + $0x38] sm:$0xff] }
  0x9c   :  { %4770 = vmatprep.subr.bf16.mxu1 %v4769_v14  ;;  %v465_v4 = vld [vmem:[#allocation12 + $0xe8] sm:$0xff]  ;;  %v471_v15 = vld [vmem:[#allocation12 + $0x118] sm:$0xff]  ;;  %v145_v19 = vld [vmem:[#allocation7] sm:$0xff] }
  0x9d   :  { %4744 = vmatpush1.bf16.msra.mxu0 %v4743_v8  ;;  %v475_v8 = vld [vmem:[#allocation12 + $0x138] sm:$0xff]  ;;  %v4825_v11 = vpack.c.bf16 %v465_v4, %v462_v3  ;;  %v768_v20 = vld [vmem:[#allocation10 + $0x8] sm:$0xff]  ;;  %v771_v21 = vld [vmem:[#allocation10 + $0x20] sm:$0xff] }
  0x9e   :  { %4778 = vmatprep.subr.bf16.mxu0 %v4777_v9  ;;  %v479_v9 = vld [vmem:[#allocation12 + $0x158] sm:$0xff]  ;;  %v4803_v12 = vpack.c.bf16 %v475_v8, %v472_v7  ;;  %v474_v24 = vld [vmem:[#allocation12 + $0x130] sm:$0xff]  ;;  %v477_v25 = vld [vmem:[#allocation12 + $0x148] sm:$0xff] }
  0x9f   :  { %4772 = vmatpush3.bf16.msra.mxu1 %v4769_v14  ;;  %v468_v14 = vld [vmem:[#allocation12 + $0x100] sm:$0xff]  ;;  %v4805_v16 = vpack.c.bf16 %v482_v10, %v479_v9  ;;  %v774_v29 = vld [vmem:[#allocation10 + $0x38] sm:$0xff]  ;;  %v777_v30 = vld [vmem:[#allocation10 + $0x50] sm:$0xff]  ;;  %v4833_v31 = vpack.c.bf16 %v477_v25, %v474_v24 }
  0xa0   :  { %283 = vmatmul.mubr.f32.vlgmr.msra.gmra.mrb[0].mxu0 %v6382_v36  ;;  %4774 = vmatprep.subr.bf16.mxu1 %v4773_v23  ;;  %v444_v36 = vld [vmem:[#allocation12 + $0x40] sm:$0xff]  ;;  %v4829_v22 = vpack.c.bf16 %v471_v15, %v468_v14  ;;  %v146_v41 = vld [vmem:[#allocation7 + $0x8] sm:$0xff]  ;;  %v786_v46 = vld [vmem:[#allocation10 + $0x98] sm:$0xff] }
  0xa1   :  { %4780 = vmatpush1.bf16.msra.mxu0 %v4779_v17  ;;  %288 = vmatprep.mubr.f32.mxu0 %v7301_v0  ;;  %v4813_v43 = vpack.c.bf16 %v447_v37, %v444_v36  ;;  %v478_v17 = vld [vmem:[#allocation12 + $0x150] sm:$0xff]  ;;  %v776_v37 = vld [vmem:[#allocation10 + $0x48] sm:$0xff]  ;;  %v783_v39 = vld [vmem:[#allocation10 + $0x80] sm:$0xff] }
  0xa2   :  { %4782 = vmatprep.subr.bf16.mxu0 %v4781_v18  ;;  %v481_v18 = vld [vmem:[#allocation12 + $0x168] sm:$0xff]  ;;  %v773_v36 = vld [vmem:[#allocation10 + $0x30] sm:$0xff]  ;;  %v795_v56 = vld [vmem:[#allocation10 + $0xe0] sm:$0xff] }
  0xa3   :  { %4776 = vmatpush3.bf16.msra.mxu1 %v4773_v23  ;;  %v4807_v23 = vpack.c.bf16 %v481_v18, %v478_v17  ;;  %v6403_v42 = vpack.c.bf16 %v776_v37, %v773_v36  ;;  %v789_v47 = vld [vmem:[#allocation10 + $0xb0] sm:$0xff]  ;;  %v772_v49 = vld [vmem:[#allocation10 + $0x28] sm:$0xff]  ;;  %v775_v59 = vld [vmem:[#allocation10 + $0x40] sm:$0xff] }
  0xa4   :  { %289 = vmatmul.mubr.f32.gmra.mrb[2].mxu0 %v138_v26  ;;  %4810 = vmatprep.subr.bf16.mxu1 %v4809_v33  ;;  %v147_v50 = vld [vmem:[#allocation7 + $0x10] sm:$0xff]  ;;  %v6413_v52 = vpack.c.bf16 %v789_v47, %v786_v46  ;;  %v778_v60 = vld [vmem:[#allocation10 + $0x58] sm:$0xff]  ;;  %v784_v7 = vld [vmem:[#allocation10 + $0x88] sm:$0xff] }
  0xa5   :  { %4784 = vmatpush1.bf16.msra.mxu0 %v4783_v27  ;;  %294 = vmatprep.mubr.f32.mxu0 %v7301_v0  ;;  %v767_v27 = vld [vmem:[#allocation10] sm:$0xff]  ;;  %v148_v61 = vld [vmem:[#allocation7 + $0x18] sm:$0xff]  ;;  %v801_v4 = vld [vmem:[#allocation10 + $0x110] sm:$0xff] }
  0xa6   :  { %4786 = vmatprep.subr.bf16.mxu0 %v4785_v28  ;;  %4098 = vmatmul.mubr.f32.vlgmr.msra.gmra.mrb[0].mxu1 %v138_v26  ;;  %v6393_v26 = vpack.c.bf16 %v771_v21, %v768_v20  ;;  %v770_v28 = vld [vmem:[#allocation10 + $0x18] sm:$0xff]  ;;  %v149_v8 = vld [vmem:[#allocation7 + $0x20] sm:$0xff]  ;;  %v150_v18 = vld [vmem:[#allocation7 + $0x28] sm:$0xff] }
  0xa7   :  { %4812 = vmatpush3.bf16.msra.mxu1 %v4809_v33  ;;  %4100 = vmatprep.mubr.f32.mxu1 %v139_v34  ;;  %v6396_v32 = vpack.c.bf16 %v770_v28, %v767_v27  ;;  %v480_v33 = vld [vmem:[#allocation12 + $0x160] sm:$0xff]  ;;  %v798_v3 = vld [vmem:[#allocation10 + $0xf8] sm:$0xff]  ;;  %v151_v20 = vld [vmem:[#allocation7 + $0x30] sm:$0xff] }
  0xa8   :  { %295 = vmatmul.mubr.f32.gmra.mrb[4].mxu0 %v139_v34  ;;  %4814 = vmatprep.subr.bf16.mxu1 %v4813_v43  ;;  %v483_v34 = vld [vmem:[#allocation12 + $0x178] sm:$0xff]  ;;  %v6434_v10 = vpack.c.bf16 %v801_v4, %v798_v3  ;;  %v807_v14 = vld [vmem:[#allocation10 + $0x140] sm:$0xff]  ;;  %v813_v25 = vld [vmem:[#allocation10 + $0x170] sm:$0xff] }
  0xa9   :  { %4788 = vmatpush1.bf16.msra.mxu0 %v4787_v35  ;;  %300 = vmatprep.mubr.f32.mxu0 %v7301_v0  ;;  %v6399_v35 = vpack.c.bf16 %v777_v30, %v774_v29  ;;  %v4837_v40 = vpack.c.bf16 %v483_v34, %v480_v33  ;;  %v790_v17 = vld [vmem:[#allocation10 + $0xb8] sm:$0xff]  ;;  %v793_v28 = vld [vmem:[#allocation10 + $0xd0] sm:$0xff]  ;;  %v796_v29 = vld [vmem:[#allocation10 + $0xe8] sm:$0xff] }
  0xaa   :  { %4790 = vmatprep.subr.bf16.mxu0 %v4789_v38  ;;  %4101 = vmatmul.mubr.f32.gmra.mrb[2].mxu1 %v140_v44  ;;  %v780_v38 = vld [vmem:[#allocation10 + $0x68] sm:$0xff]  ;;  %7332 = vst [vmem:[#allocation22_spill] sm:$0xff] %v6434_v10  ;;  %v810_v24 = vld [vmem:[#allocation10 + $0x158] sm:$0xff]  ;;  %v809_v34 = vld [vmem:[#allocation10 + $0x150] sm:$0xff] }
  0xab   :  { %4816 = vmatpush3.bf16.msra.mxu1 %v4813_v43  ;;  %4103 = vmatprep.mubr.f32.mxu1 %v141_v54  ;;  %v6406_v43 = vpack.c.bf16 %v783_v39, %v780_v38  ;;  %v6456_v33 = vpack.c.bf16 %v813_v25, %v810_v24  ;;  %v812_v36 = vld [vmem:[#allocation10 + $0x168] sm:$0xff]  ;;  %v819_v38 = vld [vmem:[#allocation13 + $0x20] sm:$0xff]  ;;  %v6459_v39 = vpack.c.bf16 %v796_v29, %v793_v28  ;;  %v818_v47 = vld [vmem:[#allocation13 + $0x18] sm:$0xff] }
  0xac   :  { %301 = vmatmul.mubr.f32.gmra.mrb[6].mxu0 %v140_v44  ;;  %4818 = vmatprep.subr.bf16.mxu1 %v4817_v53  ;;  %v779_v44 = vld [vmem:[#allocation10 + $0x60] sm:$0xff]  ;;  %v816_v37 = vld [vmem:[#allocation13 + $0x8] sm:$0xff]  ;;  %v814_v4 = vld [vmem:[#allocation10 + $0x178] sm:$0xff] }
  0xad   :  { %4792 = vmatpush1.bf16.msra.mxu0 %v4791_v45  ;;  %306 = vmatprep.mubr.f32.mxu0 %v7301_v0  ;;  %v782_v45 = vld [vmem:[#allocation10 + $0x78] sm:$0xff]  ;;  %7336 = vst [vmem:[#allocation26_spill] sm:$0xff] %v6456_v33  ;;  %v815_v46 = vld [vmem:[#allocation13] sm:$0xff]  ;;  %v840_v24 = vld [vmem:[#allocation13 + $0xc8] sm:$0xff] }
  0xae   :  { %4794 = vmatprep.subr.bf16.mxu0 %v4793_v48  ;;  %4104 = vmatmul.mubr.f32.gmra.mrb[4].mxu1 %v142_v1  ;;  %v769_v48 = vld [vmem:[#allocation10 + $0x10] sm:$0xff]  ;;  %v6410_v51 = vpack.c.bf16 %v782_v45, %v779_v44  ;;  %v6466_v44 = vpack.c.bf16 %v812_v36, %v809_v34  ;;  %v6469_v45 = vpack.c.bf16 %v819_v38, %v816_v37  ;;  %v811_v3 = vld [vmem:[#allocation10 + $0x160] sm:$0xff]  ;;  %v842_v38 = vld [vmem:[#allocation13 + $0xd8] sm:$0xff] }
  0xaf   :  { %4820 = vmatpush3.bf16.msra.mxu1 %v4817_v53  ;;  %4106 = vmatprep.mubr.f32.mxu1 %v143_v5  ;;  %v785_v53 = vld [vmem:[#allocation10 + $0x90] sm:$0xff]  ;;  %v6415_v57 = vpack.c.bf16 %v772_v49, %v769_v48  ;;  %v822_v48 = vld [vmem:[#allocation13 + $0x38] sm:$0xff]  ;;  %v843_v25 = vld [vmem:[#allocation13 + $0xe0] sm:$0xff] }
  0xb0   :  { %307 = vmatmul.mubr.f32.gmra.mrb[8].mxu0 %v141_v54  ;;  %4822 = vmatprep.subr.bf16.mxu1 %v4821_v63  ;;  %v788_v54 = vld [vmem:[#allocation10 + $0xa8] sm:$0xff]  ;;  %7337 = vst [vmem:[#allocation27_spill] sm:$0xff] %v6466_v44  ;;  %7338 = vst [vmem:[#allocation28_spill] sm:$0xff] %v6469_v45  ;;  %v825_v49 = vld [vmem:[#allocation13 + $0x50] sm:$0xff]  ;;  %v6512_v36 = vpack.c.bf16 %v843_v25, %v840_v24 }
  0xb1   :  { %4796 = vmatpush1.bf16.msra.mxu0 %v4795_v55  ;;  %312 = vmatprep.mubr.f32.mxu0 %v7301_v0  ;;  %v792_v55 = vld [vmem:[#allocation10 + $0xc8] sm:$0xff]  ;;  %v6420_v62 = vpack.c.bf16 %v788_v54, %v785_v53  ;;  %v805_v53 = vld [vmem:[#allocation10 + $0x130] sm:$0xff]  ;;  %v823_v29 = vld [vmem:[#allocation13 + $0x40] sm:$0xff] }
  0xb2   :  { %4798 = vmatprep.subr.bf16.mxu0 %v4797_v58  ;;  %4107 = vmatmul.mubr.f32.gmra.mrb[6].mxu1 %v144_v13  ;;  %v7303_v58 = vmov 0.0|0.0   ;;  %v808_v54 = vld [vmem:[#allocation10 + $0x148] sm:$0xff]  ;;  %v839_v37 = vld [vmem:[#allocation13 + $0xc0] sm:$0xff] }
  0xb3   :  { %4824 = vmatpush3.bf16.msra.mxu1 %v4821_v63  ;;  %4141 = vmatprep.mubr.f32.mxu1 %v145_v19  ;;  %v6423_v63 = vpack.c.bf16 %v795_v56, %v792_v55  ;;  %v6477_v55 = vpack.c.bf16 %v818_v47, %v815_v46  ;;  %v6480_v56 = vpack.c.bf16 %v825_v49, %v822_v48  ;;  %v829_v47 = vld [vmem:[#allocation13 + $0x70] sm:$0xff]  ;;  %v832_v48 = vld [vmem:[#allocation13 + $0x88] sm:$0xff] }
  0xb4   :  { %313 = vmatmul.mubr.f32.gmra.mrb[10].mxu0 %v142_v1  ;;  %4826 = vmatprep.subr.bf16.mxu1 %v4825_v11  ;;  %v791_v1 = vld [vmem:[#allocation10 + $0xc0] sm:$0xff]  ;;  %v6522_v49 = vpack.c.bf16 %v842_v38, %v839_v37  ;;  %v844_v24 = vld [vmem:[#allocation13 + $0xe8] sm:$0xff] }
  0xb5   :  { %4800 = vmatpush1.bf16.msra.mxu0 %v4799_v2  ;;  %318 = vmatprep.mubr.f32.mxu0 %v7301_v0  ;;  %v794_v2 = vld [vmem:[#allocation10 + $0xd8] sm:$0xff]  ;;  %v860_v37 = vld [vmem:[#allocation13 + $0x168] sm:$0xff] }
  0xb6   :  { %4802 = vmatprep.subr.bf16.mxu0 %v4801_v6  ;;  %v781_v6 = vld [vmem:[#allocation10 + $0x70] sm:$0xff]  ;;  %v6431_v9 = vpack.c.bf16 %v794_v2, %v791_v1  ;;  %v831_v1 = vld [vmem:[#allocation13 + $0x80] sm:$0xff]  ;;  %v6483_v2 = vpack.c.bf16 %v808_v54, %v805_v53 }
  0xb7   :  { %4828 = vmatpush3.bf16.msra.mxu1 %v4825_v11  ;;  %v797_v11 = vld [vmem:[#allocation10 + $0xf0] sm:$0xff]  ;;  %v6437_v15 = vpack.c.bf16 %v784_v7, %v781_v6 }
  0xb8   :  { %319 = vmatmul.mubr.f32.gmra.mrb[12].mxu0 %v143_v5  ;;  %4830 = vmatprep.subr.bf16.mxu1 %v4829_v22  ;;  %v6426_v5 = vpack.c.bf16 %v778_v60, %v775_v59  ;;  %v821_v59 = vld [vmem:[#allocation13 + $0x30] sm:$0xff]  ;;  %v824_v60 = vld [vmem:[#allocation13 + $0x48] sm:$0xff]  ;;  %7340 = vst [vmem:[#allocation30_spill] sm:$0xff] %v6483_v2 }
  0xb9   :  { %4804 = vmatpush1.bf16.msra.mxu0 %v4803_v12  ;;  %324 = vmatprep.mubr.f32.mxu0 %v7301_v0  ;;  %v800_v12 = vld [vmem:[#allocation10 + $0x108] sm:$0xff]  ;;  %v6488_v6 = vpack.c.bf16 %v824_v60, %v821_v59  ;;  %v845_v54 = vld [vmem:[#allocation13 + $0xf0] sm:$0xff] }
  0xba   :  { %4806 = vmatprep.subr.bf16.mxu0 %v4805_v16  ;;  %v787_v16 = vld [vmem:[#allocation10 + $0xa0] sm:$0xff]  ;;  %v848_v59 = vld [vmem:[#allocation13 + $0x108] sm:$0xff] }
  0xbb   :  { %4832 = vmatpush3.bf16.msra.mxu1 %v4829_v22  ;;  %v803_v22 = vld [vmem:[#allocation10 + $0x120] sm:$0xff]  ;;  %v6448_v27 = vpack.c.bf16 %v790_v17, %v787_v16  ;;  %v817_v16 = vld [vmem:[#allocation13 + $0x10] sm:$0xff]  ;;  %v820_v17 = vld [vmem:[#allocation13 + $0x28] sm:$0xff] }
  0xbc   :  { %325 = vmatmul.mubr.f32.gmra.mrb[14].mxu0 %v144_v13  ;;  %4834 = vmatprep.subr.bf16.mxu1 %v4833_v31  ;;  %v804_v13 = vld [vmem:[#allocation10 + $0x128] sm:$0xff]  ;;  %v6505_v28 = vpack.c.bf16 %v820_v17, %v817_v16  ;;  %v858_v16 = vld [vmem:[#allocation13 + $0x158] sm:$0xff]  ;;  %v861_v17 = vld [vmem:[#allocation13 + $0x170] sm:$0xff] }
  0xbd   :  { %4808 = vmatpush1.bf16.msra.mxu0 %v4807_v23  ;;  %565 = vmatprep.mubr.f32.mxu0 %v7301_v0  ;;  %v6445_v21 = vpack.c.bf16 %v807_v14, %v804_v13  ;;  %v806_v23 = vld [vmem:[#allocation10 + $0x138] sm:$0xff]  ;;  %v837_v13 = vld [vmem:[#allocation13 + $0xb0] sm:$0xff]  ;;  %v6495_v14 = vpack.c.bf16 %v814_v4, %v811_v3  ;;  %v852_v60 = vld [vmem:[#allocation13 + $0x128] sm:$0xff] }
  0xbe   :  { %4842 = vmatprep.subr.bf16.mxu0 %v6393_v26  ;;  %v6453_v30 = vpack.c.bf16 %v806_v23, %v803_v22  ;;  %v833_v22 = vld [vmem:[#allocation13 + $0x90] sm:$0xff]  ;;  %v836_v23 = vld [vmem:[#allocation13 + $0xa8] sm:$0xff]  ;;  %v835_v3 = vld [vmem:[#allocation13 + $0xa0] sm:$0xff] }
  0xbf   :  { %4836 = vmatpush3.bf16.msra.mxu1 %v4833_v31  ;;  %7334 = vst [vmem:[#allocation24_spill] sm:$0xff] %v6445_v21  ;;  %v152_v31 = vld [vmem:[#allocation7 + $0x38] sm:$0xff]  ;;  %7341 = vst [vmem:[#allocation31_spill] sm:$0xff] %v6495_v14  ;;  %v6509_v34 = vpack.c.bf16 %v836_v23, %v833_v22  ;;  %v841_v23 = vld [vmem:[#allocation13 + $0xd0] sm:$0xff] }
  0xc0   :  { %566 = vmatmul.mubr.f32.vlgmr.msra.gmra.mrb[16].mxu0 %v145_v19  ;;  %4838 = vmatprep.subr.bf16.mxu1 %v4837_v40  ;;  %v6442_v19 = vpack.c.bf16 %v800_v12, %v797_v11  ;;  %7335 = vst [vmem:[#allocation25_spill] sm:$0xff] %v6453_v30  ;;  %v830_v11 = vld [vmem:[#allocation13 + $0x78] sm:$0xff]  ;;  %v6548_v38 = vpack.c.bf16 %v844_v24, %v841_v23 }
  0xc1   :  { %4844 = vmatpush1.bf16.msra.mxu0 %v6396_v32  ;;  %571 = vmatprep.mubr.f32.mxu0 %v7301_v0  ;;  %v834_v12 = vld [vmem:[#allocation13 + $0x98] sm:$0xff] }
  0xc2   :  { %4846 = vmatprep.subr.bf16.mxu0 %v6399_v35  ;;  %7333 = vst [vmem:[#allocation23_spill] sm:$0xff] %v6442_v19  ;;  %v838_v4 = vld [vmem:[#allocation13 + $0xb8] sm:$0xff] }
  0xc3   :  { %4840 = vmatpush3.bf16.msra.mxu1 %v4837_v40  ;;  %v799_v40 = vld [vmem:[#allocation10 + $0x100] sm:$0xff]  ;;  %v6538_v22 = vpack.c.bf16 %v838_v4, %v835_v3  ;;  %v862_v3 = vld [vmem:[#allocation13 + $0x178] sm:$0xff] }
  0xc4   :  { %572 = vmatmul.mubr.f32.gmra.mrb[18].mxu0 %v146_v41  ;;  %4873 = vmatprep.subr.bf16.mxu1 %v7303_v58 }
  0xc5   :  { %4848 = vmatpush1.bf16.msra.mxu0 %v6403_v42  ;;  %577 = vmatprep.mubr.f32.mxu0 %v7301_v0 }
  0xc6   :  { %4850 = vmatprep.subr.bf16.mxu0 %v6406_v43  ;;  %4142 = vmatmul.mubr.f32.vlgmr.msra.gmra.mrb[8].mxu1 %v146_v41  ;;  %v802_v41 = vld [vmem:[#allocation10 + $0x118] sm:$0xff] }
  0xc7   :  { %4875 = vmatpush3.bf16.msra.mxu1 %v6415_v57  ;;  %4144 = vmatprep.mubr.f32.mxu1 %v147_v50 }
  0xc8   :  { %578 = vmatmul.mubr.f32.gmra.mrb[20].mxu0 %v147_v50  ;;  %4876 = vmatprep.subr.bf16.mxu1 %v7303_v58  ;;  %v6472_v50 = vpack.c.bf16 %v802_v41, %v799_v40  ;;  %v846_v40 = vld [vmem:[#allocation13 + $0xf8] sm:$0xff]  ;;  %v849_v41 = vld [vmem:[#allocation13 + $0x110] sm:$0xff] }
  0xc9   :  { %4852 = vmatpush1.bf16.msra.mxu0 %v6410_v51  ;;  %583 = vmatprep.mubr.f32.mxu0 %v7301_v0  ;;  %v6525_v53 = vpack.c.bf16 %v849_v41, %v846_v40  ;;  %v847_v40 = vld [vmem:[#allocation13 + $0x100] sm:$0xff]  ;;  %v850_v41 = vld [vmem:[#allocation13 + $0x118] sm:$0xff] }
  0xca   :  { %4854 = vmatprep.subr.bf16.mxu0 %v6413_v52  ;;  %4145 = vmatmul.mubr.f32.gmra.mrb[10].mxu1 %v148_v61  ;;  %7339 = vst [vmem:[#allocation29_spill] sm:$0xff] %v6472_v50 }
  0xcb   :  { %4878 = vmatpush3.bf16.msra.mxu1 %v6426_v5  ;;  %4147 = vmatprep.mubr.f32.mxu1 %v149_v8 }
  0xcc   :  { %584 = vmatmul.mubr.f32.gmra.mrb[22].mxu0 %v148_v61  ;;  %4879 = vmatprep.subr.bf16.mxu1 %v7303_v58  ;;  %v828_v61 = vld [vmem:[#allocation13 + $0x68] sm:$0xff] }
  0xcd   :  { %4856 = vmatpush1.bf16.msra.mxu0 %v6420_v62  ;;  %589 = vmatprep.mubr.f32.mxu0 %v7301_v0  ;;  %v6492_v7 = vpack.c.bf16 %v831_v1, %v828_v61  ;;  %v855_v61 = vld [vmem:[#allocation13 + $0x140] sm:$0xff]  ;;  %v6528_v1 = vpack.c.bf16 %v832_v48, %v829_v47  ;;  %v6556_v48 = vpack.c.bf16 %v850_v41, %v847_v40 }
  0xce   :  { %4858 = vmatprep.subr.bf16.mxu0 %v6423_v63  ;;  %4148 = vmatmul.mubr.f32.gmra.mrb[12].mxu1 %v150_v18 }
  0xcf   :  { %4881 = vmatpush3.bf16.msra.mxu1 %v6437_v15  ;;  %4150 = vmatprep.mubr.f32.mxu1 %v151_v20 }
  0xd0   :  { %590 = vmatmul.mubr.f32.gmra.mrb[24].mxu0 %v149_v8  ;;  %4882 = vmatprep.subr.bf16.mxu1 %v7303_v58  ;;  %v827_v8 = vld [vmem:[#allocation13 + $0x60] sm:$0xff] }
  0xd1   :  { %4860 = vmatpush1.bf16.msra.mxu0 %v6431_v9  ;;  %595 = vmatprep.mubr.f32.mxu0 %v7301_v0 }
  0xd2   :  { %4862 = vmatprep.subr.bf16.mxu0 %v6434_v10  ;;  %4151 = vmatmul.mubr.f32.gmra.mrb[14].mxu1 %v152_v31 }
  0xd3   :  { %4884 = vmatpush3.bf16.msra.mxu1 %v6448_v27  ;;  %4185 = vmatprep.mubr.msk.f32.mxu1 %vm6209_vm0, %v7301_v0 }
  0xd4   :  { %596 = vmatmul.mubr.f32.gmra.mrb[26].mxu0 %v150_v18  ;;  %4885 = vmatprep.subr.bf16.mxu1 %v7303_v58  ;;  %v6499_v18 = vpack.c.bf16 %v830_v11, %v827_v8  ;;  %v6532_v8 = vpack.c.bf16 %v848_v59, %v845_v54  ;;  %v6535_v11 = vpack.c.bf16 %v855_v61, %v852_v60  ;;  %v853_v54 = vld [vmem:[#allocation13 + $0x130] sm:$0xff]  ;;  %v856_v59 = vld [vmem:[#allocation13 + $0x148] sm:$0xff]  ;;  %v859_v61 = vld [vmem:[#allocation13 + $0x160] sm:$0xff] }
  0xd5   :  { %4864 = vmatpush1.bf16.msra.mxu0 %v6442_v19  ;;  %601 = vmatprep.mubr.f32.mxu0 %v7301_v0  ;;  %v6562_v60 = vpack.c.bf16 %v856_v59, %v853_v54  ;;  %v6570_v4 = vpack.c.bf16 %v862_v3, %v859_v61 }
  0xd6   :  { %4866 = vmatprep.subr.bf16.mxu0 %v6445_v21 }
  0xd7   :  { %4887 = vmatpush3.bf16.msra.mxu1 %v6459_v39 }
  0xd8   :  { %602 = vmatmul.mubr.f32.gmra.mrb[28].mxu0 %v151_v20  ;;  %4888 = vmatprep.subr.bf16.mxu1 %v7303_v58  ;;  %v6502_v20 = vpack.c.bf16 %v837_v13, %v834_v12  ;;  %v851_v12 = vld [vmem:[#allocation13 + $0x120] sm:$0xff]  ;;  %v854_v13 = vld [vmem:[#allocation13 + $0x138] sm:$0xff] }
  0xd9   :  { %4868 = vmatpush1.bf16.msra.mxu0 %v6453_v30  ;;  %607 = vmatprep.mubr.f32.mxu0 %v7301_v0  ;;  %v6542_v25 = vpack.c.bf16 %v854_v13, %v851_v12  ;;  %v203_v12 = vlaneseq }
  0xda   :  { %4870 = vmatprep.subr.bf16.mxu0 %v6456_v33 }
  0xdb   :  { %4890 = vmatpush3.bf16.msra.mxu1 %v6472_v50  ;;  %v6608_v13 = vshrl.u32 %v203_v12, 7 }
  0xdc   :  { %608 = vmatmul.mubr.f32.gmra.mrb[30].mxu0 %v152_v31  ;;  %4891 = vmatprep.subr.bf16.mxu1 %v7303_v58  ;;  %v826_v31 = vld [vmem:[#allocation13 + $0x58] sm:$0xff] }
  0xdd   :  { %4872 = vmatpush1.bf16.msra.mxu0 %v6466_v44  ;;  %944 = vmatprep.mubr.f32.mxu0 %v7301_v0  ;;  %v6516_v46 = vpack.c.bf16 %v826_v31, %v823_v29  ;;  %v6545_v29 = vpack.c.bf16 %v861_v17, %v858_v16  ;;  %v857_v31 = vld [vmem:[#allocation13 + $0x150] sm:$0xff]  ;;  %v213_v16 = vsub.s32 2, %v6608_v13  ;;  %v201_v17 = vld [vmem:[%s7292_s4] sm:$0x7] }
  0xde   :  { %4898 = vmatprep.subr.bf16.mxu0 %v6469_v45  ;;  %v6552_v47 = vpack.c.bf16 %v860_v37, %v857_v31 }
  0xdf   :  { %4893 = vmatpush3.bf16.msra.mxu1 %v6483_v2  ;;  %v214_v23 = vrot.slane %v201_v17, %v213_v16 }
  0xe0   :  { %945 = vmatmul.mubr.f32.vlgmr.msra.gmra.mrb[0].mxu0 %v7301_v0  ;;  %4894 = vmatprep.subr.bf16.mxu1 %v7303_v58 }
  0xe1   :  { %4900 = vmatpush1.bf16.msra.mxu0 %v6477_v55  ;;  %1110 = vmatprep.mubr.f32.mxu0 %v7301_v0 }
  0xe2   :  { %4902 = vmatprep.subr.bf16.mxu0 %v6480_v56 }
  0xe3   :  { %4896 = vmatpush3.bf16.msra.mxu1 %v6495_v14 }
  0xe4   :  { %4929 = vmatprep.subr.bf16.mxu1 %v7303_v58 }
  0xe5   :  { %4904 = vmatpush1.bf16.msra.mxu0 %v6488_v6 }
  0xe6   :  { %4906 = vmatprep.subr.bf16.mxu0 %v6492_v7  ;;  %4186 = vmatmul.mubr.f32.vlgmr.msra.gmra.mrb[16].mxu1 %v7301_v0 }
  0xe7   :  { %4931 = vmatpush3.bf16.msra.mxu1 %v6505_v28  ;;  %4220 = vmatprep.mubr.msk.f32.mxu1 %vm6209_vm0, %v7301_v0 }
  0xe8   :  { %4932 = vmatprep.subr.bf16.mxu1 %v7303_v58 }
  0xe9   :  { %4908 = vmatpush1.bf16.msra.mxu0 %v6499_v18 }
  0xea   :  { %4910 = vmatprep.subr.bf16.mxu0 %v6502_v20 }
  0xeb   :  { %4934 = vmatpush3.bf16.msra.mxu1 %v6516_v46 }
  0xec   :  { %4935 = vmatprep.subr.bf16.mxu1 %v7303_v58 }
  0xed   :  { %4912 = vmatpush1.bf16.msra.mxu0 %v6509_v34 }
  0xee   :  { %4914 = vmatprep.subr.bf16.mxu0 %v6512_v36 }
  0xef   :  { %4937 = vmatpush3.bf16.msra.mxu1 %v6528_v1 }
  0xf0   :  { %4938 = vmatprep.subr.bf16.mxu1 %v7303_v58 }
  0xf1   :  { %4916 = vmatpush1.bf16.msra.mxu0 %v6522_v49 }
  0xf2   :  { %4918 = vmatprep.subr.bf16.mxu0 %v6525_v53 }
  0xf3   :  { %4940 = vmatpush3.bf16.msra.mxu1 %v6538_v22 }
  0xf4   :  { %4941 = vmatprep.subr.bf16.mxu1 %v7303_v58 }
  0xf5   :  { %4920 = vmatpush1.bf16.msra.mxu0 %v6532_v8 }
  0xf6   :  { %4922 = vmatprep.subr.bf16.mxu0 %v6535_v11 }
  0xf7   :  { %4943 = vmatpush3.bf16.msra.mxu1 %v6548_v38 }
  0xf8   :  { %4944 = vmatprep.subr.bf16.mxu1 %v7303_v58 }
  0xf9   :  { %4924 = vmatpush1.bf16.msra.mxu0 %v6542_v25 }
  0xfa   :  { %4926 = vmatprep.subr.bf16.mxu0 %v6545_v29 }
  0xfb   :  { %4946 = vmatpush3.bf16.msra.mxu1 %v6556_v48 }
  0xfc   :  { %4947 = vmatprep.subr.bf16.mxu1 %v7303_v58 }
  0xfd   :  { %4928 = vmatpush1.bf16.msra.mxu0 %v6552_v47 }
  0xfe   :  { %4954 = vmatprep.subr.bf16.mxu0 %v6393_v26 }
  0xff   :  { %4949 = vmatpush3.bf16.msra.mxu1 %v6562_v60 }
 0x100   :  { %1111 = vmatmul.mubr.f32.vlgmr.msra.gmra.mrb[16].mxu0 %v7301_v0  ;;  %4950 = vmatprep.subr.bf16.mxu1 %v7303_v58 }
 0x101   :  { %4956 = vmatpush1.bf16.msra.mxu0 %v6396_v32  ;;  %1277 = vmatprep.mubr.f32.mxu0 %v7301_v0 }
 0x102   :  { %4958 = vmatprep.subr.bf16.mxu0 %v6399_v35 }
 0x103   :  { %4952 = vmatpush3.bf16.msra.mxu1 %v6570_v4 }
 0x104   :  { %4985 = vmatprep.subr.bf16.mxu1 %v7303_v58 }
 0x105   :  { %4960 = vmatpush1.bf16.msra.mxu0 %v6403_v42 }
 0x106   :  { %4962 = vmatprep.subr.bf16.mxu0 %v6406_v43  ;;  %4221 = vmatmul.mubr.f32.vlgmr.msra.gmra.mrb[18].mxu1 %v7301_v0 }
 0x107   :  { %4987 = vmatpush3.bf16.msra.mxu1 %v6415_v57  ;;  %4255 = vmatprep.mubr.msk.f32.mxu1 %vm6209_vm0, %v7301_v0 }
 0x108   :  { %4988 = vmatprep.subr.bf16.mxu1 %v7303_v58 }
 0x109   :  { %4964 = vmatpush1.bf16.msra.mxu0 %v6410_v51 }
 0x10a   :  { %4966 = vmatprep.subr.bf16.mxu0 %v6413_v52 }
 0x10b   :  { %4990 = vmatpush3.bf16.msra.mxu1 %v6426_v5 }
 0x10c   :  { %4991 = vmatprep.subr.bf16.mxu1 %v7303_v58 }
 0x10d   :  { %4968 = vmatpush1.bf16.msra.mxu0 %v6420_v62 }
 0x10e   :  { %4970 = vmatprep.subr.bf16.mxu0 %v6423_v63 }
 0x10f   :  { %4993 = vmatpush3.bf16.msra.mxu1 %v6437_v15 }
 0x110   :  { %4994 = vmatprep.subr.bf16.mxu1 %v7303_v58 }
 0x111   :  { %4972 = vmatpush1.bf16.msra.mxu0 %v6431_v9 }
 0x112   :  { %4974 = vmatprep.subr.bf16.mxu0 %v6434_v10 }
 0x113   :  { %4996 = vmatpush3.bf16.msra.mxu1 %v6448_v27 }
 0x114   :  { %4997 = vmatprep.subr.bf16.mxu1 %v7303_v58 }
 0x115   :  { %4976 = vmatpush1.bf16.msra.mxu0 %v6442_v19 }
 0x116   :  { %4978 = vmatprep.subr.bf16.mxu0 %v6445_v21 }
 0x117   :  { %4999 = vmatpush3.bf16.msra.mxu1 %v6459_v39 }
 0x118   :  { %5000 = vmatprep.subr.bf16.mxu1 %v7303_v58 }
 0x119   :  { %4980 = vmatpush1.bf16.msra.mxu0 %v6453_v30 }
 0x11a   :  { %4982 = vmatprep.subr.bf16.mxu0 %v6456_v33 }
 0x11b   :  { %5002 = vmatpush3.bf16.msra.mxu1 %v6472_v50 }
 0x11c   :  { %5003 = vmatprep.subr.bf16.mxu1 %v7303_v58 }
 0x11d   :  { %4984 = vmatpush1.bf16.msra.mxu0 %v6466_v44 }
 0x11e   :  { %5010 = vmatprep.subr.bf16.mxu0 %v6469_v45 }
 0x11f   :  { %5005 = vmatpush3.bf16.msra.mxu1 %v6483_v2 }
 0x120   :  { %5006 = vmatprep.subr.bf16.mxu1 %v7303_v58 }
 0x123   :  { %5008 = vmatpush3.bf16.msra.mxu1 %v6495_v14 }
 0x124   :  { %5041 = vmatprep.subr.bf16.mxu1 %v7303_v58 }
 0x179   :  { %v4099_v24 = vpop.f32.mrb[0].mxu1 }
 0x17a   :  { %v6614_v31 = vadd.f32 %v4099_v24, %v214_v23  ;;  %v397_v37 = vpop.f32.mrb[1].mxu1  ;;  %v484_v24 = vld [vmem:[%s7296_s8] sm:$0x7] }
 0x17c   :  { %7342 = vst [vmem:[#allocation32_spill] sm:$0xff] %v6614_v31 }
 0x17d   :  { %v4102_v40 = vpop.f32.mrb[2].mxu1 }
 0x17e   :  { %v6616_v41 = vadd.f32 %v4102_v40, %v214_v23  ;;  %v407_v54 = vpop.f32.mrb[3].mxu1  ;;  %v6631_v40 = vrot.slane %v484_v24, %v213_v16 }
 0x17f   :  { %v6618_v59 = vadd.f32 %v407_v54, %v214_v23 }
 0x180   :  { %7343 = vst [vmem:[#allocation33_spill] sm:$0xff] %v6616_v41 }
 0x181   :  { %7344 = vst [vmem:[#allocation34_spill] sm:$0xff] %v6618_v59  ;;  %v4105_v61 = vpop.f32.mrb[4].mxu1 }
 0x182   :  { %v6620_v3 = vadd.f32 %v4105_v61, %v214_v23  ;;  %v417_v12 = vpop.f32.mrb[5].mxu1 }
 0x183   :  { %v6622_v0 = vadd.f32 %v417_v12, %v214_v23 }
 0x184   :  { %7345 = vst [vmem:[#allocation35_spill] sm:$0xff] %v6620_v3 }
 0x185   :  { %7346 = vst [vmem:[#allocation36_spill] sm:$0xff] %v6622_v0  ;;  %v4108_v58 = vpop.f32.mrb[6].mxu1 }
 0x186   :  { %v6624_v45 = vadd.f32 %v4108_v58, %v214_v23  ;;  %v427_v14 = vpop.f32.mrb[7].mxu1 }
 0x187   :  { %v6626_v44 = vadd.f32 %v427_v14, %v214_v23 }
 0x188   :  { %7347 = vst [vmem:[#allocation37_spill] sm:$0xff] %v6624_v45 }
 0x189   :  { %7348 = vst [vmem:[#allocation38_spill] sm:$0xff] %v6626_v44 }
 0x199   :  { %v4143_v54 = vpop.f32.mrb[8].mxu1 }
 0x19a   :  { %v6634_v41 = vadd.f32 %v4143_v54, %v6631_v40  ;;  %v6636_v61 = vpop.f32.mrb[9].mxu1 }
 0x19c   :  { %7349 = vst [vmem:[#allocation39_spill] sm:$0xff] %v6634_v41 }
 0x19d   :  { %v4146_v12 = vpop.f32.mrb[10].mxu1 }
 0x19e   :  { %v6639_v3 = vadd.f32 %v4146_v12, %v6631_v40  ;;  %v690_v58 = vpop.f32.mrb[11].mxu1 }
 0x19f   :  { %v6642_v14 = vadd.f32 %v690_v58, %v6631_v40  ;;  %v209_v58 = vsub.s32 1, %v6608_v13 }
 0x1a0   :  { %7350 = vst [vmem:[#allocation40_spill] sm:$0xff] %v6639_v3  ;;  %v205_v3 = vsub.s32 0, %v6608_v13 }
 0x1a1   :  { %7351 = vst [vmem:[#allocation41_spill] sm:$0xff] %v6642_v14  ;;  %v4149_v45 = vpop.f32.mrb[12].mxu1 }
 0x1a2   :  { %v6645_v44 = vadd.f32 %v4149_v45, %v6631_v40  ;;  %v700_v16 = vpop.f32.mrb[13].mxu1  ;;  %v6658_v14 = vrot.slane %v201_v17, %v205_v3 }
 0x1a3   :  { %v6648_v0 = vadd.f32 %v700_v16, %v6631_v40 }
 0x1a4   :  { %7352 = vst [vmem:[#allocation42_spill] sm:$0xff] %v6645_v44  ;;  %7356 = vst [vmem:[#allocation46_spill] sm:$0xff] %v6658_v14  ;;  %v6660_v44 = vrot.slane %v201_v17, %v209_v58  ;;  %v6667_v17 = vld [vmem:[%s7293_s5] ss:$0 sm:$0xff] }
 0x1a5   :  { %7353 = vst [vmem:[#allocation43_spill] sm:$0xff] %v6648_v0  ;;  %v4152_v54 = vpop.f32.mrb[14].mxu1  ;;  %7358 = vst [vmem:[#allocation48_spill] sm:$0xff] %v6667_v17 }
 0x1a6   :  { %v6651_v59 = vadd.f32 %v4152_v54, %v6631_v40  ;;  %v710_v41 = vpop.f32.mrb[15].mxu1  ;;  %7357 = vst [vmem:[#allocation47_spill] sm:$0xff] %v6660_v44 }
 0x1a7   :  { %v6654_v12 = vadd.f32 %v710_v41, %v6631_v40 }
 0x1a8   :  { %7354 = vst [vmem:[#allocation44_spill] sm:$0xff] %v6651_v59 }
 0x1a9   :  { %7355 = vst [vmem:[#allocation45_spill] sm:$0xff] %v6654_v12 }
 0x1b3   :  { %v946_v45 = vpop.f32.mrb[0].mxu0 }
 0x1b4   :  { %v5769_v16 = vadd.f32 %v946_v45, %v6658_v14  ;;  %v948_v0 = vpop.f32.mrb[1].mxu0  ;;  %v398_v14 = vadd.f32 %v397_v37, %v214_v23 }
 0x1b5   :  { %v5770_v54 = vadd.f32 %v948_v0, %v6660_v44 }
 0x1b6   :  { %v3677_v31 = vmul.f32 -1.442695, %v5769_v16 }
 0x1b7   :  { %v3678_v59 = vmul.f32 -1.442695, %v5770_v54 }
 0x1b8   :  { %5848 = vpow2.f32 %v3677_v31  ;;  %v6670_v31 = vrot.slane %v484_v24, %v205_v3 }
 0x1b9   :  { %v1017_v33 = vpop.f32.mrb[16].mxu1  ;;  %5850 = vpow2.f32 %v3678_v59 }
 0x1ba   :  { %v4187_v41 = vpop.f32.mrb[17].mxu1  ;;  %v1035_v45 = vadd.f32 %v6667_v17, %v1017_v33 }
 0x1bb   :  { %v6672_v41 = vrot.slane %v484_v24, %v209_v58 }
 0x1c2   :  { %v5849_v12 = vpop.eup %5848 }
 0x1c3   :  { %v1025_v2 = vadd.f32 1.0, %v5849_v12  ;;  %v5851_v13 = vpop.eup %5850 }
 0x1c4   :  { %v1032_v30 = vadd.f32 1.0, %v5851_v13 }
 0x1c5   :  { %5852 = vrcp.f32 %v1025_v2 }
 0x1c6   :  { %5854 = vrcp.f32 %v1032_v30 }
 0x1cf   :  { %v5853_v16 = vpop.eup %5852 }
 0x1d0   :  { %v1036_v0 = vmul.f32 %v5853_v16, %v1035_v45  ;;  %v5855_v13 = vpop.eup %5854  ;;  %v6694_v16 = vld [vmem:[%s7297_s9] ss:$0 sm:$0xff] }
 0x1d1   :  { %v1039_v17 = vsub.f32 1.0, %v5855_v13 }
 0x1d2   :  { %v1037_v54 = vadd.f32 %v1036_v0, %v398_v14  ;;  %v1041_v14 = vmul.f32 0.0, %v5855_v13 }
 0x1d3   :  { %v1112_v59 = vpop.f32.mrb[16].mxu0 }
 0x1d4   :  { %5856 = vtanh.f32 %v1037_v54  ;;  %v5785_v2 = vadd.f32 %v1112_v59, %v6670_v31  ;;  %v1114_v12 = vpop.f32.mrb[17].mxu0 }
 0x1d5   :  { %v5786_v21 = vadd.f32 %v1114_v12, %v6672_v41 }
 0x1d6   :  { %v3679_v44 = vmul.f32 -1.442695, %v5785_v2  ;;  %v681_v2 = vadd.f32 %v6636_v61, %v6631_v40 }
 0x1d7   :  { %v3680_v33 = vmul.f32 -1.442695, %v5786_v21  ;;  %v7359_v21 = vmov 0.0|0.0  }
 0x1d8   :  { %5858 = vpow2.f32 %v3679_v44  ;;  %v7360_v44 = vmov 0.0  }
 0x1d9   :  { %v1183_v23 = vpop.f32.mrb[18].mxu1  ;;  %5860 = vpow2.f32 %v3680_v33 }
 0x1da   :  { %v4222_v37 = vpop.f32.mrb[19].mxu1  ;;  %v1201_v54 = vadd.f32 %v6694_v16, %v1183_v23 }
 0x1de   :  { %v5857_v30 = vpop.eup %5856 }
 0x1df   :  { %v1040_v3 = vmul.f32 %v5857_v30, %v1039_v17 }
 0x1e1   :  { %v6676_v45 = vadd.f32 %v1041_v14, %v1040_v3  ;;  %v7361_v3 = vld [vmem:[#allocation24_spill] sm:$0xff]  ;;  %v7362_v14 = vld [vmem:[#allocation25_spill] sm:$0xff] }
 0x1e2   :  { %v5859_v24 = vpop.eup %5858 }
 0x1e3   :  { %v1191_v58 = vadd.f32 1.0, %v5859_v24  ;;  %1278 = vmatmul.mubr.f32.vlgmr.msra.gmra.mrb[2].mxu0 %v6676_v45  ;;  %4256 = vmatmul.mubr.f32.vlgmr.msra.gmra.mrb[20].mxu1 %v6676_v45  ;;  %v5861_v17 = vpop.eup %5860  ;;  %v7363_v24 = vld [vmem:[#allocation30_spill] sm:$0xff] }
 0x1e4   :  { %5012 = vmatpush1.bf16.msra.mxu0 %v6477_v55  ;;  %5043 = vmatpush3.bf16.msra.mxu1 %v6505_v28  ;;  %v1198_v0 = vadd.f32 1.0, %v5861_v17  ;;  %v7365_v17 = vld [vmem:[#allocation27_spill] sm:$0xff] }
 0x1e5   :  { %5862 = vrcp.f32 %v1191_v58  ;;  %5014 = vmatprep.subr.bf16.mxu0 %v6480_v56  ;;  %5044 = vmatprep.subr.bf16.mxu1 %v7359_v21  ;;  %v7364_v58 = vld [vmem:[#allocation26_spill] sm:$0xff] }
 0x1e6   :  { %1444 = vmatprep.mubr.f32.mxu0 %v7360_v44  ;;  %4290 = vmatprep.mubr.msk.f32.mxu1 %vm6209_vm0, %v7360_v44  ;;  %5864 = vrcp.f32 %v1198_v0  ;;  %v7366_v0 = vld [vmem:[#allocation31_spill] sm:$0xff] }
 0x1e8   :  { %5016 = vmatpush1.bf16.msra.mxu0 %v6488_v6  ;;  %5046 = vmatpush3.bf16.msra.mxu1 %v6516_v46 }
 0x1e9   :  { %5018 = vmatprep.subr.bf16.mxu0 %v6492_v7  ;;  %5047 = vmatprep.subr.bf16.mxu1 %v7359_v21 }
 0x1ec   :  { %5020 = vmatpush1.bf16.msra.mxu0 %v6499_v18  ;;  %5049 = vmatpush3.bf16.msra.mxu1 %v6528_v1 }
 0x1ed   :  { %5022 = vmatprep.subr.bf16.mxu0 %v6502_v20  ;;  %5050 = vmatprep.subr.bf16.mxu1 %v7359_v21 }
 0x1ef   :  { %v5863_v59 = vpop.eup %5862 }
 0x1f0   :  { %v1202_v12 = vmul.f32 %v5863_v59, %v1201_v54  ;;  %5024 = vmatpush1.bf16.msra.mxu0 %v6509_v34  ;;  %5052 = vmatpush3.bf16.msra.mxu1 %v6538_v22  ;;  %v5865_v40 = vpop.eup %5864  ;;  %v7367_v54 = vld [vmem:[#allocation28_spill] sm:$0xff] }
 0x1f1   :  { %5026 = vmatprep.subr.bf16.mxu0 %v6512_v36  ;;  %5053 = vmatprep.subr.bf16.mxu1 %v7359_v21  ;;  %v1205_v61 = vsub.f32 1.0, %v5865_v40  ;;  %v1207_v30 = vmul.f32 0.0, %v5865_v40 }
 0x1f2   :  { %v1203_v13 = vadd.f32 %v1202_v12, %v681_v2  ;;  %v7368_v12 = vld [vmem:[#allocation46_spill] sm:$0xff] }
 0x1f4   :  { %5866 = vtanh.f32 %v1203_v13  ;;  %5028 = vmatpush1.bf16.msra.mxu0 %v6522_v49  ;;  %5055 = vmatpush3.bf16.msra.mxu1 %v6548_v38 }
 0x1f5   :  { %5030 = vmatprep.subr.bf16.mxu0 %v6525_v53  ;;  %5056 = vmatprep.subr.bf16.mxu1 %v7359_v21 }
 0x1f8   :  { %5032 = vmatpush1.bf16.msra.mxu0 %v6532_v8  ;;  %5058 = vmatpush3.bf16.msra.mxu1 %v6556_v48 }
 0x1f9   :  { %5034 = vmatprep.subr.bf16.mxu0 %v6535_v11  ;;  %5059 = vmatprep.subr.bf16.mxu1 %v7359_v21 }
 0x1fc   :  { %5036 = vmatpush1.bf16.msra.mxu0 %v6542_v25  ;;  %5061 = vmatpush3.bf16.msra.mxu1 %v6562_v60 }
 0x1fd   :  { %5038 = vmatprep.subr.bf16.mxu0 %v6545_v29  ;;  %5062 = vmatprep.subr.bf16.mxu1 %v7359_v21 }
 0x1fe   :  { %v5867_v33 = vpop.eup %5866 }
 0x1ff   :  { %v1206_v23 = vmul.f32 %v5867_v33, %v1205_v61 }
 0x200   :  { %5040 = vmatpush1.bf16.msra.mxu0 %v6552_v47  ;;  %5064 = vmatpush3.bf16.msra.mxu1 %v6570_v4 }
 0x201   :  { %v6721_v37 = vadd.f32 %v1207_v30, %v1206_v23  ;;  %5066 = vmatprep.subr.bf16.mxu0 %v6393_v26  ;;  %5097 = vmatprep.subr.bf16.mxu1 %v7359_v21  ;;  %v7369_v23 = vld [vmem:[#allocation47_spill] sm:$0xff] }
 0x203   :  { %1445 = vmatmul.mubr.f32.vlgmr.msra.gmra.mrb[18].mxu0 %v6721_v37  ;;  %4291 = vmatmul.mubr.f32.vlgmr.msra.gmra.mrb[22].mxu1 %v6721_v37 }
 0x204   :  { %5068 = vmatpush1.bf16.msra.mxu0 %v6396_v32  ;;  %5099 = vmatpush3.bf16.msra.mxu1 %v6415_v57 }
 0x205   :  { %5070 = vmatprep.subr.bf16.mxu0 %v6399_v35  ;;  %5100 = vmatprep.subr.bf16.mxu1 %v7359_v21 }
 0x206   :  { %1611 = vmatprep.mubr.f32.mxu0 %v7360_v44  ;;  %4325 = vmatprep.mubr.msk.f32.mxu1 %vm6209_vm0, %v7360_v44 }
 0x208   :  { %5072 = vmatpush1.bf16.msra.mxu0 %v6403_v42  ;;  %5102 = vmatpush3.bf16.msra.mxu1 %v6426_v5 }
 0x209   :  { %5074 = vmatprep.subr.bf16.mxu0 %v6406_v43  ;;  %5103 = vmatprep.subr.bf16.mxu1 %v7359_v21 }
 0x20c   :  { %5076 = vmatpush1.bf16.msra.mxu0 %v6410_v51  ;;  %5105 = vmatpush3.bf16.msra.mxu1 %v6437_v15 }
 0x20d   :  { %5078 = vmatprep.subr.bf16.mxu0 %v6413_v52  ;;  %5106 = vmatprep.subr.bf16.mxu1 %v7359_v21 }
 0x210   :  { %5080 = vmatpush1.bf16.msra.mxu0 %v6420_v62  ;;  %5108 = vmatpush3.bf16.msra.mxu1 %v6448_v27 }
 0x211   :  { %5082 = vmatprep.subr.bf16.mxu0 %v6423_v63  ;;  %5109 = vmatprep.subr.bf16.mxu1 %v7359_v21 }
 0x214   :  { %5084 = vmatpush1.bf16.msra.mxu0 %v6431_v9  ;;  %5111 = vmatpush3.bf16.msra.mxu1 %v6459_v39 }
 0x215   :  { %5086 = vmatprep.subr.bf16.mxu0 %v6434_v10  ;;  %5112 = vmatprep.subr.bf16.mxu1 %v7359_v21  ;;  %v7371_v10 = vld [vmem:[#allocation32_spill] sm:$0xff] }
 0x218   :  { %5088 = vmatpush1.bf16.msra.mxu0 %v6442_v19  ;;  %5114 = vmatpush3.bf16.msra.mxu1 %v6472_v50 }
 0x219   :  { %5090 = vmatprep.subr.bf16.mxu0 %v7361_v3  ;;  %5115 = vmatprep.subr.bf16.mxu1 %v7359_v21 }
 0x21c   :  { %5092 = vmatpush1.bf16.msra.mxu0 %v7362_v14  ;;  %5117 = vmatpush3.bf16.msra.mxu1 %v7363_v24 }
 0x21d   :  { %5094 = vmatprep.subr.bf16.mxu0 %v7364_v58  ;;  %5118 = vmatprep.subr.bf16.mxu1 %v7359_v21 }
 0x220   :  { %5096 = vmatpush1.bf16.msra.mxu0 %v7365_v17  ;;  %5120 = vmatpush3.bf16.msra.mxu1 %v7366_v0 }
 0x221   :  { %5122 = vmatprep.subr.bf16.mxu0 %v7367_v54  ;;  %5153 = vmatprep.subr.bf16.mxu1 %v7359_v21  ;;  %v7370_v54 = vld [vmem:[#allocation48_spill] sm:$0xff] }
 0x2b6   :  { %v1279_v59 = vpop.f32.mrb[2].mxu0  ;;  %v1350_v2 = vpop.f32.mrb[20].mxu1 }
 0x2b7   :  { %v5771_v13 = vadd.f32 %v1279_v59, %v7368_v12  ;;  %v1281_v40 = vpop.f32.mrb[3].mxu0  ;;  %v4257_v61 = vpop.f32.mrb[21].mxu1  ;;  %v1368_v3 = vadd.f32 %v7370_v54, %v1350_v2 }
 0x2b8   :  { %v5772_v30 = vadd.f32 %v1281_v40, %v7369_v23 }
 0x2b9   :  { %v3681_v33 = vmul.f32 -1.442695, %v5771_v13 }
 0x2ba   :  { %v3682_v58 = vmul.f32 -1.442695, %v5772_v30 }
 0x2bb   :  { %5868 = vpow2.f32 %v3681_v33 }
 0x2bc   :  { %5870 = vpow2.f32 %v3682_v58 }
 0x2c5   :  { %v5869_v24 = vpop.eup %5868 }
 0x2c6   :  { %v1358_v17 = vadd.f32 1.0, %v5869_v24  ;;  %v5871_v0 = vpop.eup %5870 }
 0x2c7   :  { %v1365_v14 = vadd.f32 1.0, %v5871_v0 }
 0x2c8   :  { %5872 = vrcp.f32 %v1358_v17 }
 0x2c9   :  { %5874 = vrcp.f32 %v1365_v14 }
 0x2d2   :  { %v5873_v50 = vpop.eup %5872 }
 0x2d3   :  { %v1369_v19 = vmul.f32 %v5873_v50, %v1368_v3  ;;  %v5875_v17 = vpop.eup %5874 }
 0x2d4   :  { %v1372_v30 = vsub.f32 1.0, %v5875_v17  ;;  %v1374_v3 = vmul.f32 %v5875_v17, %v6676_v45 }
 0x2d5   :  { %v1370_v59 = vadd.f32 %v1369_v19, %v7371_v10 }
 0x2d6   :  { %v1446_v12 = vpop.f32.mrb[18].mxu0  ;;  %v1517_v61 = vpop.f32.mrb[22].mxu1 }
 0x2d7   :  { %5876 = vtanh.f32 %v1370_v59  ;;  %v5787_v13 = vadd.f32 %v1446_v12, %v6670_v31  ;;  %v1448_v40 = vpop.f32.mrb[19].mxu0  ;;  %v4292_v33 = vpop.f32.mrb[23].mxu1  ;;  %v1535_v59 = vadd.f32 %v6694_v16, %v1517_v61 }
 0x2d8   :  { %v5788_v24 = vadd.f32 %v1448_v40, %v6672_v41  ;;  %v7372_v33 = vld [vmem:[#allocation39_spill] sm:$0xff] }
 0x2d9   :  { %v3683_v58 = vmul.f32 -1.442695, %v5787_v13 }
 0x2da   :  { %v3684_v0 = vmul.f32 -1.442695, %v5788_v24 }
 0x2db   :  { %5878 = vpow2.f32 %v3683_v58 }
 0x2dc   :  { %5880 = vpow2.f32 %v3684_v0 }
 0x2e1   :  { %v5877_v2 = vpop.eup %5876 }
 0x2e2   :  { %v1373_v50 = vmul.f32 %v5877_v2, %v1372_v30 }
 0x2e4   :  { %v6769_v10 = vadd.f32 %v1374_v3, %v1373_v50  ;;  %v7374_v50 = vld [vmem:[#allocation23_spill] sm:$0xff]  ;;  %v7375_v3 = vld [vmem:[#allocation29_spill] sm:$0xff] }
 0x2e5   :  { %v5879_v19 = vpop.eup %5878 }
 0x2e6   :  { %v1525_v14 = vadd.f32 1.0, %v5879_v19  ;;  %1612 = vmatmul.mubr.f32.vlgmr.msra.gmra.mrb[4].mxu0 %v6769_v10  ;;  %4326 = vmatmul.mubr.f32.vlgmr.msra.gmra.mrb[24].mxu1 %v6769_v10  ;;  %v5881_v45 = vpop.eup %5880  ;;  %v7376_v19 = vld [vmem:[#allocation24_spill] sm:$0xff] }
 0x2e7   :  { %5124 = vmatpush1.bf16.msra.mxu0 %v6477_v55  ;;  %5155 = vmatpush3.bf16.msra.mxu1 %v6505_v28  ;;  %v1532_v12 = vadd.f32 1.0, %v5881_v45  ;;  %v7378_v45 = vld [vmem:[#allocation30_spill] sm:$0xff] }
 0x2e8   :  { %5882 = vrcp.f32 %v1525_v14  ;;  %5126 = vmatprep.subr.bf16.mxu0 %v6480_v56  ;;  %5156 = vmatprep.subr.bf16.mxu1 %v7359_v21  ;;  %v7377_v14 = vld [vmem:[#allocation25_spill] sm:$0xff] }
 0x2e9   :  { %1778 = vmatprep.mubr.f32.mxu0 %v7360_v44  ;;  %4360 = vmatprep.mubr.msk.f32.mxu1 %vm6209_vm0, %v7360_v44  ;;  %5884 = vrcp.f32 %v1532_v12  ;;  %v7379_v12 = vld [vmem:[#allocation26_spill] sm:$0xff] }
 0x2eb   :  { %5128 = vmatpush1.bf16.msra.mxu0 %v6488_v6  ;;  %5158 = vmatpush3.bf16.msra.mxu1 %v6516_v46 }
 0x2ec   :  { %5130 = vmatprep.subr.bf16.mxu0 %v6492_v7  ;;  %5159 = vmatprep.subr.bf16.mxu1 %v7359_v21 }
 0x2ef   :  { %5132 = vmatpush1.bf16.msra.mxu0 %v6499_v18  ;;  %5161 = vmatpush3.bf16.msra.mxu1 %v6528_v1 }
 0x2f0   :  { %5134 = vmatprep.subr.bf16.mxu0 %v6502_v20  ;;  %5162 = vmatprep.subr.bf16.mxu1 %v7359_v21 }
 0x2f2   :  { %v5883_v13 = vpop.eup %5882 }
 0x2f3   :  { %v1536_v40 = vmul.f32 %v5883_v13, %v1535_v59  ;;  %5136 = vmatpush1.bf16.msra.mxu0 %v6509_v34  ;;  %5164 = vmatpush3.bf16.msra.mxu1 %v6538_v22  ;;  %v5885_v61 = vpop.eup %5884  ;;  %v7380_v59 = vld [vmem:[#allocation27_spill] sm:$0xff] }
 0x2f4   :  { %5138 = vmatprep.subr.bf16.mxu0 %v6512_v36  ;;  %5165 = vmatprep.subr.bf16.mxu1 %v7359_v21  ;;  %v1539_v24 = vsub.f32 1.0, %v5885_v61  ;;  %v1541_v30 = vmul.f32 %v5885_v61, %v6721_v37  ;;  %v7373_v37 = vld [vmem:[#allocation22_spill] sm:$0xff]  ;;  %v7381_v13 = vld [vmem:[#allocation31_spill] sm:$0xff] }
 0x2f5   :  { %v1537_v58 = vadd.f32 %v1536_v40, %v7372_v33  ;;  %v7382_v40 = vld [vmem:[#allocation28_spill] sm:$0xff]  ;;  %v7383_v61 = vld [vmem:[#allocation46_spill] sm:$0xff] }
 0x2f7   :  { %5886 = vtanh.f32 %v1537_v58  ;;  %5140 = vmatpush1.bf16.msra.mxu0 %v6522_v49  ;;  %5167 = vmatpush3.bf16.msra.mxu1 %v6548_v38 }
 0x2f8   :  { %5142 = vmatprep.subr.bf16.mxu0 %v6525_v53  ;;  %5168 = vmatprep.subr.bf16.mxu1 %v7359_v21 }
 0x2fb   :  { %5144 = vmatpush1.bf16.msra.mxu0 %v6532_v8  ;;  %5170 = vmatpush3.bf16.msra.mxu1 %v6556_v48 }
 0x2fc   :  { %5146 = vmatprep.subr.bf16.mxu0 %v6535_v11  ;;  %5171 = vmatprep.subr.bf16.mxu1 %v7359_v21 }
 0x2ff   :  { %5148 = vmatpush1.bf16.msra.mxu0 %v6542_v25  ;;  %5173 = vmatpush3.bf16.msra.mxu1 %v6562_v60 }
 0x300   :  { %5150 = vmatprep.subr.bf16.mxu0 %v6545_v29  ;;  %5174 = vmatprep.subr.bf16.mxu1 %v7359_v21 }
 0x301   :  { %v5887_v17 = vpop.eup %5886 }
 0x302   :  { %v1540_v0 = vmul.f32 %v5887_v17, %v1539_v24 }
 0x303   :  { %5152 = vmatpush1.bf16.msra.mxu0 %v6552_v47  ;;  %5176 = vmatpush3.bf16.msra.mxu1 %v6570_v4 }
 0x304   :  { %v6809_v2 = vadd.f32 %v1541_v30, %v1540_v0  ;;  %5178 = vmatprep.subr.bf16.mxu0 %v6393_v26  ;;  %5209 = vmatprep.subr.bf16.mxu1 %v7359_v21 }
 0x306   :  { %1779 = vmatmul.mubr.f32.vlgmr.msra.gmra.mrb[20].mxu0 %v6809_v2  ;;  %4361 = vmatmul.mubr.f32.vlgmr.msra.gmra.mrb[26].mxu1 %v6809_v2 }
 0x307   :  { %5180 = vmatpush1.bf16.msra.mxu0 %v6396_v32  ;;  %5211 = vmatpush3.bf16.msra.mxu1 %v6415_v57 }
 0x308   :  { %5182 = vmatprep.subr.bf16.mxu0 %v6399_v35  ;;  %5212 = vmatprep.subr.bf16.mxu1 %v7359_v21 }
 0x309   :  { %1945 = vmatprep.mubr.f32.mxu0 %v7360_v44  ;;  %4395 = vmatprep.mubr.msk.f32.mxu1 %vm6209_vm0, %v7360_v44 }
 0x30b   :  { %5184 = vmatpush1.bf16.msra.mxu0 %v6403_v42  ;;  %5214 = vmatpush3.bf16.msra.mxu1 %v6426_v5 }
 0x30c   :  { %5186 = vmatprep.subr.bf16.mxu0 %v6406_v43  ;;  %5215 = vmatprep.subr.bf16.mxu1 %v7359_v21 }
 0x30f   :  { %5188 = vmatpush1.bf16.msra.mxu0 %v6410_v51  ;;  %5217 = vmatpush3.bf16.msra.mxu1 %v6437_v15 }
 0x310   :  { %5190 = vmatprep.subr.bf16.mxu0 %v6413_v52  ;;  %5218 = vmatprep.subr.bf16.mxu1 %v7359_v21 }
 0x313   :  { %5192 = vmatpush1.bf16.msra.mxu0 %v6420_v62  ;;  %5220 = vmatpush3.bf16.msra.mxu1 %v6448_v27 }
 0x314   :  { %5194 = vmatprep.subr.bf16.mxu0 %v6423_v63  ;;  %5221 = vmatprep.subr.bf16.mxu1 %v7359_v21 }
 0x317   :  { %5196 = vmatpush1.bf16.msra.mxu0 %v6431_v9  ;;  %5223 = vmatpush3.bf16.msra.mxu1 %v6459_v39 }
 0x318   :  { %5198 = vmatprep.subr.bf16.mxu0 %v7373_v37  ;;  %5224 = vmatprep.subr.bf16.mxu1 %v7359_v21  ;;  %v7384_v37 = vld [vmem:[#allocation34_spill] sm:$0xff] }
 0x31b   :  { %5200 = vmatpush1.bf16.msra.mxu0 %v7374_v50  ;;  %5226 = vmatpush3.bf16.msra.mxu1 %v7375_v3 }
 0x31c   :  { %5202 = vmatprep.subr.bf16.mxu0 %v7376_v19  ;;  %5227 = vmatprep.subr.bf16.mxu1 %v7359_v21 }
 0x31f   :  { %5204 = vmatpush1.bf16.msra.mxu0 %v7377_v14  ;;  %5229 = vmatpush3.bf16.msra.mxu1 %v7378_v45 }
 0x320   :  { %5206 = vmatprep.subr.bf16.mxu0 %v7379_v12  ;;  %5230 = vmatprep.subr.bf16.mxu1 %v7359_v21 }
 0x323   :  { %5208 = vmatpush1.bf16.msra.mxu0 %v7380_v59  ;;  %5232 = vmatpush3.bf16.msra.mxu1 %v7381_v13 }
 0x324   :  { %5234 = vmatprep.subr.bf16.mxu0 %v7382_v40  ;;  %5265 = vmatprep.subr.bf16.mxu1 %v7359_v21 }
 0x3b9   :  { %v1613_v33 = vpop.f32.mrb[4].mxu0  ;;  %v1684_v58 = vpop.f32.mrb[24].mxu1 }
 0x3ba   :  { %v5773_v24 = vadd.f32 %v1613_v33, %v7383_v61  ;;  %v1615_v17 = vpop.f32.mrb[5].mxu0  ;;  %v4327_v0 = vpop.f32.mrb[25].mxu1  ;;  %v1702_v40 = vadd.f32 %v7370_v54, %v1684_v58 }
 0x3bb   :  { %v5774_v45 = vadd.f32 %v1615_v17, %v7369_v23 }
 0x3bc   :  { %v3685_v30 = vmul.f32 -1.442695, %v5773_v24 }
 0x3bd   :  { %v3686_v12 = vmul.f32 -1.442695, %v5774_v45 }
 0x3be   :  { %5888 = vpow2.f32 %v3685_v30 }
 0x3bf   :  { %5890 = vpow2.f32 %v3686_v12 }
 0x3c8   :  { %v5889_v14 = vpop.eup %5888 }
 0x3c9   :  { %v1692_v59 = vadd.f32 1.0, %v5889_v14  ;;  %v5891_v13 = vpop.eup %5890 }
 0x3ca   :  { %v1699_v19 = vadd.f32 1.0, %v5891_v13 }
 0x3cb   :  { %5892 = vrcp.f32 %v1692_v59 }
 0x3cc   :  { %5894 = vrcp.f32 %v1699_v19 }
 0x3d5   :  { %v5893_v3 = vpop.eup %5892 }
 0x3d6   :  { %v1703_v50 = vmul.f32 %v5893_v3, %v1702_v40  ;;  %v5895_v59 = vpop.eup %5894 }
 0x3d7   :  { %v1706_v30 = vsub.f32 1.0, %v5895_v59  ;;  %v1708_v19 = vmul.f32 %v5895_v59, %v6769_v10 }
 0x3d8   :  { %v1704_v33 = vadd.f32 %v1703_v50, %v7384_v37 }
 0x3d9   :  { %v1780_v61 = vpop.f32.mrb[20].mxu0  ;;  %v1851_v0 = vpop.f32.mrb[26].mxu1 }
 0x3da   :  { %5896 = vtanh.f32 %v1704_v33  ;;  %v5789_v24 = vadd.f32 %v1780_v61, %v6670_v31  ;;  %v1782_v17 = vpop.f32.mrb[21].mxu0  ;;  %v4362_v45 = vpop.f32.mrb[27].mxu1  ;;  %v1869_v33 = vadd.f32 %v6694_v16, %v1851_v0 }
 0x3db   :  { %v5790_v14 = vadd.f32 %v1782_v17, %v6672_v41  ;;  %v7385_v45 = vld [vmem:[#allocation41_spill] sm:$0xff] }
 0x3dc   :  { %v3687_v12 = vmul.f32 -1.442695, %v5789_v24 }
 0x3dd   :  { %v3688_v13 = vmul.f32 -1.442695, %v5790_v14 }
 0x3de   :  { %5898 = vpow2.f32 %v3687_v12 }
 0x3df   :  { %5900 = vpow2.f32 %v3688_v13 }
 0x3e4   :  { %v5897_v58 = vpop.eup %5896 }
 0x3e5   :  { %v1707_v3 = vmul.f32 %v5897_v58, %v1706_v30 }
 0x3e7   :  { %v6857_v37 = vadd.f32 %v1708_v19, %v1707_v3  ;;  %v7387_v3 = vld [vmem:[#allocation23_spill] sm:$0xff]  ;;  %v7388_v19 = vld [vmem:[#allocation29_spill] sm:$0xff] }
 0x3e8   :  { %v5899_v50 = vpop.eup %5898 }
 0x3e9   :  { %v1859_v40 = vadd.f32 1.0, %v5899_v50  ;;  %1946 = vmatmul.mubr.f32.vlgmr.msra.gmra.mrb[6].mxu0 %v6857_v37  ;;  %4396 = vmatmul.mubr.f32.vlgmr.msra.gmra.mrb[28].mxu1 %v6857_v37  ;;  %v5901_v10 = vpop.eup %5900  ;;  %v7389_v50 = vld [vmem:[#allocation24_spill] sm:$0xff] }
 0x3ea   :  { %5236 = vmatpush1.bf16.msra.mxu0 %v6477_v55  ;;  %5267 = vmatpush3.bf16.msra.mxu1 %v6505_v28  ;;  %v1866_v61 = vadd.f32 1.0, %v5901_v10  ;;  %v7391_v10 = vld [vmem:[#allocation30_spill] sm:$0xff] }
 0x3eb   :  { %5902 = vrcp.f32 %v1859_v40  ;;  %5238 = vmatprep.subr.bf16.mxu0 %v6480_v56  ;;  %5268 = vmatprep.subr.bf16.mxu1 %v7359_v21  ;;  %v7390_v40 = vld [vmem:[#allocation25_spill] sm:$0xff] }
 0x3ec   :  { %2112 = vmatprep.mubr.f32.mxu0 %v7360_v44  ;;  %4430 = vmatprep.mubr.msk.f32.mxu1 %vm6209_vm0, %v7360_v44  ;;  %5904 = vrcp.f32 %v1866_v61  ;;  %v7392_v61 = vld [vmem:[#allocation26_spill] sm:$0xff] }
 0x3ee   :  { %5240 = vmatpush1.bf16.msra.mxu0 %v6488_v6  ;;  %5270 = vmatpush3.bf16.msra.mxu1 %v6516_v46 }
 0x3ef   :  { %5242 = vmatprep.subr.bf16.mxu0 %v6492_v7  ;;  %5271 = vmatprep.subr.bf16.mxu1 %v7359_v21 }
 0x3f2   :  { %5244 = vmatpush1.bf16.msra.mxu0 %v6499_v18  ;;  %5273 = vmatpush3.bf16.msra.mxu1 %v6528_v1 }
 0x3f3   :  { %5246 = vmatprep.subr.bf16.mxu0 %v6502_v20  ;;  %5274 = vmatprep.subr.bf16.mxu1 %v7359_v21 }
 0x3f5   :  { %v5903_v24 = vpop.eup %5902 }
 0x3f6   :  { %v1870_v17 = vmul.f32 %v5903_v24, %v1869_v33  ;;  %5248 = vmatpush1.bf16.msra.mxu0 %v6509_v34  ;;  %5276 = vmatpush3.bf16.msra.mxu1 %v6538_v22  ;;  %v5905_v0 = vpop.eup %5904  ;;  %v7393_v33 = vld [vmem:[#allocation27_spill] sm:$0xff] }
 0x3f7   :  { %5250 = vmatprep.subr.bf16.mxu0 %v6512_v36  ;;  %5277 = vmatprep.subr.bf16.mxu1 %v7359_v21  ;;  %v1873_v14 = vsub.f32 1.0, %v5905_v0  ;;  %v1875_v30 = vmul.f32 %v5905_v0, %v6809_v2  ;;  %v7386_v2 = vld [vmem:[#allocation22_spill] sm:$0xff]  ;;  %v7394_v24 = vld [vmem:[#allocation31_spill] sm:$0xff] }
 0x3f8   :  { %v1871_v12 = vadd.f32 %v1870_v17, %v7385_v45  ;;  %v7395_v17 = vld [vmem:[#allocation28_spill] sm:$0xff]  ;;  %v7396_v0 = vld [vmem:[#allocation46_spill] sm:$0xff] }
 0x3fa   :  { %5906 = vtanh.f32 %v1871_v12  ;;  %5252 = vmatpush1.bf16.msra.mxu0 %v6522_v49  ;;  %5279 = vmatpush3.bf16.msra.mxu1 %v6548_v38 }
 0x3fb   :  { %5254 = vmatprep.subr.bf16.mxu0 %v6525_v53  ;;  %5280 = vmatprep.subr.bf16.mxu1 %v7359_v21 }
 0x3fe   :  { %5256 = vmatpush1.bf16.msra.mxu0 %v6532_v8  ;;  %5282 = vmatpush3.bf16.msra.mxu1 %v6556_v48 }
 0x3ff   :  { %5258 = vmatprep.subr.bf16.mxu0 %v6535_v11  ;;  %5283 = vmatprep.subr.bf16.mxu1 %v7359_v21 }
 0x402   :  { %5260 = vmatpush1.bf16.msra.mxu0 %v6542_v25  ;;  %5285 = vmatpush3.bf16.msra.mxu1 %v6562_v60 }
 0x403   :  { %5262 = vmatprep.subr.bf16.mxu0 %v6545_v29  ;;  %5286 = vmatprep.subr.bf16.mxu1 %v7359_v21 }
 0x404   :  { %v5907_v59 = vpop.eup %5906 }
 0x405   :  { %v1874_v13 = vmul.f32 %v5907_v59, %v1873_v14 }
 0x406   :  { %5264 = vmatpush1.bf16.msra.mxu0 %v6552_v47  ;;  %5288 = vmatpush3.bf16.msra.mxu1 %v6570_v4 }
 0x407   :  { %v6897_v58 = vadd.f32 %v1875_v30, %v1874_v13  ;;  %5290 = vmatprep.subr.bf16.mxu0 %v6393_v26  ;;  %5321 = vmatprep.subr.bf16.mxu1 %v7359_v21 }
 0x409   :  { %2113 = vmatmul.mubr.f32.vlgmr.msra.gmra.mrb[22].mxu0 %v6897_v58  ;;  %4431 = vmatmul.mubr.f32.vlgmr.msra.gmra.mrb[30].mxu1 %v6897_v58 }
 0x40a   :  { %5292 = vmatpush1.bf16.msra.mxu0 %v6396_v32  ;;  %5323 = vmatpush3.bf16.msra.mxu1 %v6415_v57 }
 0x40b   :  { %5294 = vmatprep.subr.bf16.mxu0 %v6399_v35  ;;  %5324 = vmatprep.subr.bf16.mxu1 %v7359_v21 }
 0x40c   :  { %2279 = vmatprep.mubr.f32.mxu0 %v7360_v44  ;;  %4465 = vmatprep.mubr.msk.f32.mxu1 %vm6209_vm0, %v7360_v44 }
 0x40e   :  { %5296 = vmatpush1.bf16.msra.mxu0 %v6403_v42  ;;  %5326 = vmatpush3.bf16.msra.mxu1 %v6426_v5 }
 0x40f   :  { %5298 = vmatprep.subr.bf16.mxu0 %v6406_v43  ;;  %5327 = vmatprep.subr.bf16.mxu1 %v7359_v21 }
 0x412   :  { %5300 = vmatpush1.bf16.msra.mxu0 %v6410_v51  ;;  %5329 = vmatpush3.bf16.msra.mxu1 %v6437_v15 }
 0x413   :  { %5302 = vmatprep.subr.bf16.mxu0 %v6413_v52  ;;  %5330 = vmatprep.subr.bf16.mxu1 %v7359_v21 }
 0x416   :  { %5304 = vmatpush1.bf16.msra.mxu0 %v6420_v62  ;;  %5332 = vmatpush3.bf16.msra.mxu1 %v6448_v27 }
 0x417   :  { %5306 = vmatprep.subr.bf16.mxu0 %v6423_v63  ;;  %5333 = vmatprep.subr.bf16.mxu1 %v7359_v21 }
 0x41a   :  { %5308 = vmatpush1.bf16.msra.mxu0 %v6431_v9  ;;  %5335 = vmatpush3.bf16.msra.mxu1 %v6459_v39 }
 0x41b   :  { %5310 = vmatprep.subr.bf16.mxu0 %v7386_v2  ;;  %5336 = vmatprep.subr.bf16.mxu1 %v7359_v21  ;;  %v7397_v2 = vld [vmem:[#allocation33_spill] sm:$0xff] }
 0x41e   :  { %5312 = vmatpush1.bf16.msra.mxu0 %v7387_v3  ;;  %5338 = vmatpush3.bf16.msra.mxu1 %v7388_v19 }
 0x41f   :  { %5314 = vmatprep.subr.bf16.mxu0 %v7389_v50  ;;  %5339 = vmatprep.subr.bf16.mxu1 %v7359_v21 }
 0x422   :  { %5316 = vmatpush1.bf16.msra.mxu0 %v7390_v40  ;;  %5341 = vmatpush3.bf16.msra.mxu1 %v7391_v10 }
 0x423   :  { %5318 = vmatprep.subr.bf16.mxu0 %v7392_v61  ;;  %5342 = vmatprep.subr.bf16.mxu1 %v7359_v21 }
 0x426   :  { %5320 = vmatpush1.bf16.msra.mxu0 %v7393_v33  ;;  %5344 = vmatpush3.bf16.msra.mxu1 %v7394_v24 }
 0x427   :  { %5346 = vmatprep.subr.bf16.mxu0 %v7395_v17  ;;  %5377 = vmatprep.subr.bf16.mxu1 %v7359_v21 }
 0x4bc   :  { %v1947_v45 = vpop.f32.mrb[6].mxu0  ;;  %v2018_v12 = vpop.f32.mrb[28].mxu1 }
 0x4bd   :  { %v5775_v14 = vadd.f32 %v1947_v45, %v7396_v0  ;;  %v1949_v59 = vpop.f32.mrb[7].mxu0  ;;  %v4397_v13 = vpop.f32.mrb[29].mxu1  ;;  %v2036_v17 = vadd.f32 %v7370_v54, %v2018_v12 }
 0x4be   :  { %v5776_v10 = vadd.f32 %v1949_v59, %v7369_v23 }
 0x4bf   :  { %v3689_v30 = vmul.f32 -1.442695, %v5775_v14 }
 0x4c0   :  { %v3690_v61 = vmul.f32 -1.442695, %v5776_v10 }
 0x4c1   :  { %5908 = vpow2.f32 %v3689_v30 }
 0x4c2   :  { %5910 = vpow2.f32 %v3690_v61 }
 0x4cb   :  { %v5909_v40 = vpop.eup %5908 }
 0x4cc   :  { %v2026_v33 = vadd.f32 1.0, %v5909_v40  ;;  %v5911_v24 = vpop.eup %5910 }
 0x4cd   :  { %v2033_v50 = vadd.f32 1.0, %v5911_v24 }
 0x4ce   :  { %5912 = vrcp.f32 %v2026_v33 }
 0x4cf   :  { %5914 = vrcp.f32 %v2033_v50 }
 0x4d8   :  { %v5913_v19 = vpop.eup %5912 }
 0x4d9   :  { %v2037_v3 = vmul.f32 %v5913_v19, %v2036_v17  ;;  %v5915_v33 = vpop.eup %5914 }
 0x4da   :  { %v2040_v30 = vsub.f32 1.0, %v5915_v33  ;;  %v2042_v50 = vmul.f32 %v5915_v33, %v6857_v37 }
 0x4db   :  { %v2038_v45 = vadd.f32 %v2037_v3, %v7397_v2 }
 0x4dc   :  { %v2114_v0 = vpop.f32.mrb[22].mxu0  ;;  %v2185_v13 = vpop.f32.mrb[30].mxu1 }
 0x4dd   :  { %5916 = vtanh.f32 %v2038_v45  ;;  %v5791_v14 = vadd.f32 %v2114_v0, %v6670_v31  ;;  %v2116_v59 = vpop.f32.mrb[23].mxu0  ;;  %v4432_v10 = vpop.f32.mrb[31].mxu1  ;;  %v2203_v45 = vadd.f32 %v6694_v16, %v2185_v13 }
 0x4de   :  { %v5792_v40 = vadd.f32 %v2116_v59, %v6672_v41  ;;  %v7398_v10 = vld [vmem:[#allocation40_spill] sm:$0xff] }
 0x4df   :  { %v3691_v61 = vmul.f32 -1.442695, %v5791_v14 }
 0x4e0   :  { %v3692_v24 = vmul.f32 -1.442695, %v5792_v40 }
 0x4e1   :  { %5918 = vpow2.f32 %v3691_v61 }
 0x4e2   :  { %5920 = vpow2.f32 %v3692_v24 }
 0x4e7   :  { %v5917_v12 = vpop.eup %5916 }
 0x4e8   :  { %v2041_v19 = vmul.f32 %v5917_v12, %v2040_v30 }
 0x4ea   :  { %v6945_v2 = vadd.f32 %v2042_v50, %v2041_v19  ;;  %v7400_v19 = vld [vmem:[#allocation23_spill] sm:$0xff]  ;;  %v7401_v50 = vld [vmem:[#allocation29_spill] sm:$0xff] }
 0x4eb   :  { %v5919_v3 = vpop.eup %5918 }
 0x4ec   :  { %v2193_v17 = vadd.f32 1.0, %v5919_v3  ;;  %2280 = vmatmul.mubr.f32.vlgmr.msra.gmra.mrb[8].mxu0 %v6945_v2  ;;  %4466 = vmatmul.mubr.f32.vlgmr.msra.gmra.mrb[32].mxu1 %v6945_v2  ;;  %v5921_v37 = vpop.eup %5920  ;;  %v7402_v3 = vld [vmem:[#allocation24_spill] sm:$0xff] }
 0x4ed   :  { %5348 = vmatpush1.bf16.msra.mxu0 %v6477_v55  ;;  %5379 = vmatpush3.bf16.msra.mxu1 %v6505_v28  ;;  %v2200_v0 = vadd.f32 1.0, %v5921_v37  ;;  %v7404_v37 = vld [vmem:[#allocation30_spill] sm:$0xff] }
 0x4ee   :  { %5922 = vrcp.f32 %v2193_v17  ;;  %5350 = vmatprep.subr.bf16.mxu0 %v6480_v56  ;;  %5380 = vmatprep.subr.bf16.mxu1 %v7359_v21  ;;  %v7403_v17 = vld [vmem:[#allocation25_spill] sm:$0xff] }
 0x4ef   :  { %2446 = vmatprep.mubr.f32.mxu0 %v7360_v44  ;;  %4500 = vmatprep.mubr.msk.f32.mxu1 %vm6209_vm0, %v7360_v44  ;;  %5924 = vrcp.f32 %v2200_v0  ;;  %v7405_v0 = vld [vmem:[#allocation26_spill] sm:$0xff] }
 0x4f1   :  { %5352 = vmatpush1.bf16.msra.mxu0 %v6488_v6  ;;  %5382 = vmatpush3.bf16.msra.mxu1 %v6516_v46 }
 0x4f2   :  { %5354 = vmatprep.subr.bf16.mxu0 %v6492_v7  ;;  %5383 = vmatprep.subr.bf16.mxu1 %v7359_v21 }
 0x4f5   :  { %5356 = vmatpush1.bf16.msra.mxu0 %v6499_v18  ;;  %5385 = vmatpush3.bf16.msra.mxu1 %v6528_v1 }
 0x4f6   :  { %5358 = vmatprep.subr.bf16.mxu0 %v6502_v20  ;;  %5386 = vmatprep.subr.bf16.mxu1 %v7359_v21 }
 0x4f8   :  { %v5923_v14 = vpop.eup %5922 }
 0x4f9   :  { %v2204_v59 = vmul.f32 %v5923_v14, %v2203_v45  ;;  %5360 = vmatpush1.bf16.msra.mxu0 %v6509_v34  ;;  %5388 = vmatpush3.bf16.msra.mxu1 %v6538_v22  ;;  %v5925_v13 = vpop.eup %5924  ;;  %v7406_v45 = vld [vmem:[#allocation27_spill] sm:$0xff] }
 0x4fa   :  { %5362 = vmatprep.subr.bf16.mxu0 %v6512_v36  ;;  %5389 = vmatprep.subr.bf16.mxu1 %v7359_v21  ;;  %v2207_v40 = vsub.f32 1.0, %v5925_v13  ;;  %v2209_v30 = vmul.f32 %v5925_v13, %v6897_v58  ;;  %v7399_v58 = vld [vmem:[#allocation22_spill] sm:$0xff]  ;;  %v7407_v14 = vld [vmem:[#allocation31_spill] sm:$0xff] }
 0x4fb   :  { %v2205_v61 = vadd.f32 %v2204_v59, %v7398_v10  ;;  %v7408_v59 = vld [vmem:[#allocation28_spill] sm:$0xff]  ;;  %v7409_v13 = vld [vmem:[#allocation46_spill] sm:$0xff] }
 0x4fd   :  { %5926 = vtanh.f32 %v2205_v61  ;;  %5364 = vmatpush1.bf16.msra.mxu0 %v6522_v49  ;;  %5391 = vmatpush3.bf16.msra.mxu1 %v6548_v38 }
 0x4fe   :  { %5366 = vmatprep.subr.bf16.mxu0 %v6525_v53  ;;  %5392 = vmatprep.subr.bf16.mxu1 %v7359_v21 }
 0x501   :  { %5368 = vmatpush1.bf16.msra.mxu0 %v6532_v8  ;;  %5394 = vmatpush3.bf16.msra.mxu1 %v6556_v48 }
 0x502   :  { %5370 = vmatprep.subr.bf16.mxu0 %v6535_v11  ;;  %5395 = vmatprep.subr.bf16.mxu1 %v7359_v21 }
 0x505   :  { %5372 = vmatpush1.bf16.msra.mxu0 %v6542_v25  ;;  %5397 = vmatpush3.bf16.msra.mxu1 %v6562_v60 }
 0x506   :  { %5374 = vmatprep.subr.bf16.mxu0 %v6545_v29  ;;  %5398 = vmatprep.subr.bf16.mxu1 %v7359_v21 }
 0x507   :  { %v5927_v33 = vpop.eup %5926 }
 0x508   :  { %v2208_v24 = vmul.f32 %v5927_v33, %v2207_v40 }
 0x509   :  { %5376 = vmatpush1.bf16.msra.mxu0 %v6552_v47  ;;  %5400 = vmatpush3.bf16.msra.mxu1 %v6570_v4 }
 0x50a   :  { %v6985_v12 = vadd.f32 %v2209_v30, %v2208_v24  ;;  %5402 = vmatprep.subr.bf16.mxu0 %v6393_v26  ;;  %5433 = vmatprep.subr.bf16.mxu1 %v7359_v21 }
 0x50c   :  { %2447 = vmatmul.mubr.f32.vlgmr.msra.gmra.mrb[24].mxu0 %v6985_v12  ;;  %4501 = vmatmul.mubr.f32.vlgmr.msra.gmra.mrb[34].mxu1 %v6985_v12 }
 0x50d   :  { %5404 = vmatpush1.bf16.msra.mxu0 %v6396_v32  ;;  %5435 = vmatpush3.bf16.msra.mxu1 %v6415_v57 }
 0x50e   :  { %5406 = vmatprep.subr.bf16.mxu0 %v6399_v35  ;;  %5436 = vmatprep.subr.bf16.mxu1 %v7359_v21 }
 0x50f   :  { %2613 = vmatprep.mubr.f32.mxu0 %v7360_v44  ;;  %4535 = vmatprep.mubr.msk.f32.mxu1 %vm6209_vm0, %v7360_v44 }
 0x511   :  { %5408 = vmatpush1.bf16.msra.mxu0 %v6403_v42  ;;  %5438 = vmatpush3.bf16.msra.mxu1 %v6426_v5 }
 0x512   :  { %5410 = vmatprep.subr.bf16.mxu0 %v6406_v43  ;;  %5439 = vmatprep.subr.bf16.mxu1 %v7359_v21 }
 0x515   :  { %5412 = vmatpush1.bf16.msra.mxu0 %v6410_v51  ;;  %5441 = vmatpush3.bf16.msra.mxu1 %v6437_v15 }
 0x516   :  { %5414 = vmatprep.subr.bf16.mxu0 %v6413_v52  ;;  %5442 = vmatprep.subr.bf16.mxu1 %v7359_v21 }
 0x519   :  { %5416 = vmatpush1.bf16.msra.mxu0 %v6420_v62  ;;  %5444 = vmatpush3.bf16.msra.mxu1 %v6448_v27 }
 0x51a   :  { %5418 = vmatprep.subr.bf16.mxu0 %v6423_v63  ;;  %5445 = vmatprep.subr.bf16.mxu1 %v7359_v21 }
 0x51d   :  { %5420 = vmatpush1.bf16.msra.mxu0 %v6431_v9  ;;  %5447 = vmatpush3.bf16.msra.mxu1 %v6459_v39 }
 0x51e   :  { %5422 = vmatprep.subr.bf16.mxu0 %v7399_v58  ;;  %5448 = vmatprep.subr.bf16.mxu1 %v7359_v21  ;;  %v7410_v58 = vld [vmem:[#allocation36_spill] sm:$0xff] }
 0x521   :  { %5424 = vmatpush1.bf16.msra.mxu0 %v7400_v19  ;;  %5450 = vmatpush3.bf16.msra.mxu1 %v7401_v50 }
 0x522   :  { %5426 = vmatprep.subr.bf16.mxu0 %v7402_v3  ;;  %5451 = vmatprep.subr.bf16.mxu1 %v7359_v21 }
 0x525   :  { %5428 = vmatpush1.bf16.msra.mxu0 %v7403_v17  ;;  %5453 = vmatpush3.bf16.msra.mxu1 %v7404_v37 }
 0x526   :  { %5430 = vmatprep.subr.bf16.mxu0 %v7405_v0  ;;  %5454 = vmatprep.subr.bf16.mxu1 %v7359_v21 }
 0x529   :  { %5432 = vmatpush1.bf16.msra.mxu0 %v7406_v45  ;;  %5456 = vmatpush3.bf16.msra.mxu1 %v7407_v14 }
 0x52a   :  { %5458 = vmatprep.subr.bf16.mxu0 %v7408_v59  ;;  %5489 = vmatprep.subr.bf16.mxu1 %v7359_v21 }
 0x5bf   :  { %v2281_v10 = vpop.f32.mrb[8].mxu0  ;;  %v2352_v61 = vpop.f32.mrb[32].mxu1 }
 0x5c0   :  { %v5777_v40 = vadd.f32 %v2281_v10, %v7409_v13  ;;  %v2283_v33 = vpop.f32.mrb[9].mxu0  ;;  %v4467_v24 = vpop.f32.mrb[33].mxu1  ;;  %v2370_v59 = vadd.f32 %v7370_v54, %v2352_v61 }
 0x5c1   :  { %v5778_v37 = vadd.f32 %v2283_v33, %v7369_v23 }
 0x5c2   :  { %v3693_v30 = vmul.f32 -1.442695, %v5777_v40 }
 0x5c3   :  { %v3694_v0 = vmul.f32 -1.442695, %v5778_v37 }
 0x5c4   :  { %5928 = vpow2.f32 %v3693_v30 }
 0x5c5   :  { %5930 = vpow2.f32 %v3694_v0 }
 0x5ce   :  { %v5929_v17 = vpop.eup %5928 }
 0x5cf   :  { %v2360_v45 = vadd.f32 1.0, %v5929_v17  ;;  %v5931_v14 = vpop.eup %5930 }
 0x5d0   :  { %v2367_v3 = vadd.f32 1.0, %v5931_v14 }
 0x5d1   :  { %5932 = vrcp.f32 %v2360_v45 }
 0x5d2   :  { %5934 = vrcp.f32 %v2367_v3 }
 0x5db   :  { %v5933_v50 = vpop.eup %5932 }
 0x5dc   :  { %v2371_v19 = vmul.f32 %v5933_v50, %v2370_v59  ;;  %v5935_v45 = vpop.eup %5934 }
 0x5dd   :  { %v2374_v30 = vsub.f32 1.0, %v5935_v45  ;;  %v2376_v3 = vmul.f32 %v5935_v45, %v6945_v2 }
 0x5de   :  { %v2372_v10 = vadd.f32 %v2371_v19, %v7410_v58 }
 0x5df   :  { %v2448_v13 = vpop.f32.mrb[24].mxu0  ;;  %v2519_v24 = vpop.f32.mrb[34].mxu1 }
 0x5e0   :  { %5936 = vtanh.f32 %v2372_v10  ;;  %v5793_v40 = vadd.f32 %v2448_v13, %v6670_v31  ;;  %v2450_v33 = vpop.f32.mrb[25].mxu0  ;;  %v4502_v37 = vpop.f32.mrb[35].mxu1  ;;  %v2537_v13 = vadd.f32 %v6694_v16, %v2519_v24 }
 0x5e1   :  { %v5794_v17 = vadd.f32 %v2450_v33, %v6672_v41  ;;  %v7411_v33 = vld [vmem:[#allocation43_spill] sm:$0xff] }
 0x5e2   :  { %v3695_v0 = vmul.f32 -1.442695, %v5793_v40 }
 0x5e3   :  { %v3696_v14 = vmul.f32 -1.442695, %v5794_v17 }
 0x5e4   :  { %5938 = vpow2.f32 %v3695_v0 }
 0x5e5   :  { %5940 = vpow2.f32 %v3696_v14 }
 0x5ea   :  { %v5937_v54 = vpop.eup %5936 }
 0x5eb   :  { %v2375_v50 = vmul.f32 %v5937_v54, %v2374_v30  ;;  %v7413_v30 = vld [vmem:[#allocation23_spill] sm:$0xff]  ;;  %v7414_v54 = vld [vmem:[#allocation29_spill] sm:$0xff] }
 0x5ed   :  { %v7033_v58 = vadd.f32 %v2376_v3, %v2375_v50  ;;  %v7415_v50 = vld [vmem:[#allocation24_spill] sm:$0xff]  ;;  %v7416_v3 = vld [vmem:[#allocation25_spill] sm:$0xff] }
 0x5ee   :  { %v5939_v19 = vpop.eup %5938 }
 0x5ef   :  { %v2527_v59 = vadd.f32 1.0, %v5939_v19  ;;  %2614 = vmatmul.mubr.f32.vlgmr.msra.gmra.mrb[10].mxu0 %v7033_v58  ;;  %4536 = vmatmul.mubr.f32.vlgmr.msra.gmra.mrb[36].mxu1 %v7033_v58  ;;  %v5941_v2 = vpop.eup %5940  ;;  %v7417_v19 = vld [vmem:[#allocation30_spill] sm:$0xff] }
 0x5f0   :  { %5460 = vmatpush1.bf16.msra.mxu0 %v6477_v55  ;;  %5491 = vmatpush3.bf16.msra.mxu1 %v6505_v28  ;;  %v2534_v61 = vadd.f32 1.0, %v5941_v2  ;;  %v7419_v2 = vld [vmem:[#allocation27_spill] sm:$0xff] }
 0x5f1   :  { %5942 = vrcp.f32 %v2527_v59  ;;  %5462 = vmatprep.subr.bf16.mxu0 %v6480_v56  ;;  %5492 = vmatprep.subr.bf16.mxu1 %v7359_v21  ;;  %v7418_v59 = vld [vmem:[#allocation26_spill] sm:$0xff] }
 0x5f2   :  { %2780 = vmatprep.mubr.f32.mxu0 %v7360_v44  ;;  %4570 = vmatprep.mubr.msk.f32.mxu1 %vm6209_vm0, %v7360_v44  ;;  %5944 = vrcp.f32 %v2534_v61  ;;  %v7420_v61 = vld [vmem:[#allocation31_spill] sm:$0xff] }
 0x5f4   :  { %5464 = vmatpush1.bf16.msra.mxu0 %v6488_v6  ;;  %5494 = vmatpush3.bf16.msra.mxu1 %v6516_v46 }
 0x5f5   :  { %5466 = vmatprep.subr.bf16.mxu0 %v6492_v7  ;;  %5495 = vmatprep.subr.bf16.mxu1 %v7359_v21 }
 0x5f8   :  { %5468 = vmatpush1.bf16.msra.mxu0 %v6499_v18  ;;  %5497 = vmatpush3.bf16.msra.mxu1 %v6528_v1 }
 0x5f9   :  { %5470 = vmatprep.subr.bf16.mxu0 %v6502_v20  ;;  %5498 = vmatprep.subr.bf16.mxu1 %v7359_v21 }
 0x5fb   :  { %v5943_v10 = vpop.eup %5942 }
 0x5fc   :  { %v2538_v40 = vmul.f32 %v5943_v10, %v2537_v13  ;;  %5472 = vmatpush1.bf16.msra.mxu0 %v6509_v34  ;;  %5500 = vmatpush3.bf16.msra.mxu1 %v6538_v22  ;;  %v5945_v16 = vpop.eup %5944  ;;  %v7421_v13 = vld [vmem:[#allocation28_spill] sm:$0xff] }
 0x5fd   :  { %5474 = vmatprep.subr.bf16.mxu0 %v6512_v36  ;;  %5501 = vmatprep.subr.bf16.mxu1 %v7359_v21  ;;  %v2541_v24 = vsub.f32 1.0, %v5945_v16  ;;  %v2543_v45 = vmul.f32 %v5945_v16, %v6985_v12  ;;  %v7412_v12 = vld [vmem:[#allocation22_spill] sm:$0xff] }
 0x5fe   :  { %v2539_v37 = vadd.f32 %v2538_v40, %v7411_v33  ;;  %v7422_v33 = vld [vmem:[#allocation46_spill] sm:$0xff] }
 0x600   :  { %5946 = vtanh.f32 %v2539_v37  ;;  %5476 = vmatpush1.bf16.msra.mxu0 %v6522_v49  ;;  %5503 = vmatpush3.bf16.msra.mxu1 %v6548_v38 }
 0x601   :  { %5478 = vmatprep.subr.bf16.mxu0 %v6525_v53  ;;  %5504 = vmatprep.subr.bf16.mxu1 %v7359_v21 }
 0x604   :  { %5480 = vmatpush1.bf16.msra.mxu0 %v6532_v8  ;;  %5506 = vmatpush3.bf16.msra.mxu1 %v6556_v48 }
 0x605   :  { %5482 = vmatprep.subr.bf16.mxu0 %v6535_v11  ;;  %5507 = vmatprep.subr.bf16.mxu1 %v7359_v21 }
 0x608   :  { %5484 = vmatpush1.bf16.msra.mxu0 %v6542_v25  ;;  %5509 = vmatpush3.bf16.msra.mxu1 %v6562_v60 }
 0x609   :  { %5486 = vmatprep.subr.bf16.mxu0 %v6545_v29  ;;  %5510 = vmatprep.subr.bf16.mxu1 %v7359_v21 }
 0x60a   :  { %v5947_v0 = vpop.eup %5946 }
 0x60b   :  { %v2542_v17 = vmul.f32 %v5947_v0, %v2541_v24 }
 0x60c   :  { %5488 = vmatpush1.bf16.msra.mxu0 %v6552_v47  ;;  %5512 = vmatpush3.bf16.msra.mxu1 %v6570_v4 }
 0x60d   :  { %v7073_v14 = vadd.f32 %v2543_v45, %v2542_v17  ;;  %5514 = vmatprep.subr.bf16.mxu0 %v6393_v26  ;;  %5545 = vmatprep.subr.bf16.mxu1 %v7359_v21 }
 0x60f   :  { %2781 = vmatmul.mubr.f32.vlgmr.msra.gmra.mrb[26].mxu0 %v7073_v14  ;;  %4571 = vmatmul.mubr.f32.vlgmr.msra.gmra.mrb[38].mxu1 %v7073_v14 }
 0x610   :  { %5516 = vmatpush1.bf16.msra.mxu0 %v6396_v32  ;;  %5547 = vmatpush3.bf16.msra.mxu1 %v6415_v57 }
 0x611   :  { %5518 = vmatprep.subr.bf16.mxu0 %v6399_v35  ;;  %5548 = vmatprep.subr.bf16.mxu1 %v7359_v21 }
 0x612   :  { %2947 = vmatprep.mubr.f32.mxu0 %v7360_v44  ;;  %4605 = vmatprep.mubr.msk.f32.mxu1 %vm6209_vm0, %v7360_v44 }
 0x614   :  { %5520 = vmatpush1.bf16.msra.mxu0 %v6403_v42  ;;  %5550 = vmatpush3.bf16.msra.mxu1 %v6426_v5 }
 0x615   :  { %5522 = vmatprep.subr.bf16.mxu0 %v6406_v43  ;;  %5551 = vmatprep.subr.bf16.mxu1 %v7359_v21 }
 0x618   :  { %5524 = vmatpush1.bf16.msra.mxu0 %v6410_v51  ;;  %5553 = vmatpush3.bf16.msra.mxu1 %v6437_v15 }
 0x619   :  { %5526 = vmatprep.subr.bf16.mxu0 %v6413_v52  ;;  %5554 = vmatprep.subr.bf16.mxu1 %v7359_v21 }
 0x61c   :  { %5528 = vmatpush1.bf16.msra.mxu0 %v6420_v62  ;;  %5556 = vmatpush3.bf16.msra.mxu1 %v6448_v27 }
 0x61d   :  { %5530 = vmatprep.subr.bf16.mxu0 %v6423_v63  ;;  %5557 = vmatprep.subr.bf16.mxu1 %v7359_v21 }
 0x620   :  { %5532 = vmatpush1.bf16.msra.mxu0 %v6431_v9  ;;  %5559 = vmatpush3.bf16.msra.mxu1 %v6459_v39 }
 0x621   :  { %5534 = vmatprep.subr.bf16.mxu0 %v7412_v12  ;;  %5560 = vmatprep.subr.bf16.mxu1 %v7359_v21 }
 0x624   :  { %5536 = vmatpush1.bf16.msra.mxu0 %v7413_v30  ;;  %5562 = vmatpush3.bf16.msra.mxu1 %v7414_v54 }
 0x625   :  { %5538 = vmatprep.subr.bf16.mxu0 %v7415_v50  ;;  %5563 = vmatprep.subr.bf16.mxu1 %v7359_v21 }
 0x628   :  { %5540 = vmatpush1.bf16.msra.mxu0 %v7416_v3  ;;  %5565 = vmatpush3.bf16.msra.mxu1 %v7417_v19 }
 0x629   :  { %5542 = vmatprep.subr.bf16.mxu0 %v7418_v59  ;;  %5566 = vmatprep.subr.bf16.mxu1 %v7359_v21 }
 0x62c   :  { %5544 = vmatpush1.bf16.msra.mxu0 %v7419_v2  ;;  %5568 = vmatpush3.bf16.msra.mxu1 %v7420_v61 }
 0x62d   :  { %5570 = vmatprep.subr.bf16.mxu0 %v7421_v13  ;;  %5601 = vmatprep.subr.bf16.mxu1 %v7359_v21  ;;  %v7119_v13 = vld [vmem:[%s7293_s5] ss:$0 sm:$0xff] }
 0x6c2   :  { %v2615_v10 = vpop.f32.mrb[10].mxu0  ;;  %v2686_v40 = vpop.f32.mrb[36].mxu1 }
 0x6c3   :  { %v5779_v37 = vadd.f32 %v2615_v10, %v7422_v33  ;;  %v2617_v16 = vpop.f32.mrb[11].mxu0  ;;  %v4537_v24 = vpop.f32.mrb[37].mxu1  ;;  %v2704_v10 = vadd.f32 %v7119_v13, %v2686_v40 }
 0x6c4   :  { %v5780_v17 = vadd.f32 %v2617_v16, %v7369_v23 }
 0x6c5   :  { %v3697_v0 = vmul.f32 -1.442695, %v5779_v37  ;;  %v7423_v37 = vld [vmem:[#allocation35_spill] sm:$0xff] }
 0x6c6   :  { %v3698_v45 = vmul.f32 -1.442695, %v5780_v17 }
 0x6c7   :  { %5948 = vpow2.f32 %v3697_v0 }
 0x6c8   :  { %5950 = vpow2.f32 %v3698_v45 }
 0x6d1   :  { %v5949_v59 = vpop.eup %5948 }
 0x6d2   :  { %v2694_v2 = vadd.f32 1.0, %v5949_v59  ;;  %v5951_v61 = vpop.eup %5950 }
 0x6d3   :  { %v2701_v19 = vadd.f32 1.0, %v5951_v61 }
 0x6d4   :  { %5952 = vrcp.f32 %v2694_v2 }
 0x6d5   :  { %5954 = vrcp.f32 %v2701_v19 }
 0x6de   :  { %v5953_v33 = vpop.eup %5952 }
 0x6df   :  { %v2705_v24 = vmul.f32 %v5953_v33, %v2704_v10  ;;  %v5955_v3 = vpop.eup %5954 }
 0x6e0   :  { %v2708_v54 = vsub.f32 1.0, %v5955_v3  ;;  %v2710_v19 = vmul.f32 %v5955_v3, %v7033_v58 }
 0x6e1   :  { %v2706_v16 = vadd.f32 %v2705_v24, %v7423_v37 }
 0x6e2   :  { %v2782_v0 = vpop.f32.mrb[26].mxu0  ;;  %v2853_v17 = vpop.f32.mrb[38].mxu1 }
 0x6e3   :  { %5956 = vtanh.f32 %v2706_v16  ;;  %v5795_v59 = vadd.f32 %v2782_v0, %v6670_v31  ;;  %v2784_v2 = vpop.f32.mrb[27].mxu0  ;;  %v4572_v45 = vpop.f32.mrb[39].mxu1  ;;  %v7424_v0 = vld [vmem:[#allocation42_spill] sm:$0xff] }
 0x6e4   :  { %v5796_v23 = vadd.f32 %v2784_v2, %v6672_v41 }
 0x6e5   :  { %v3699_v61 = vmul.f32 -1.442695, %v5795_v59 }
 0x6e6   :  { %v3700_v50 = vmul.f32 -1.442695, %v5796_v23 }
 0x6e7   :  { %5958 = vpow2.f32 %v3699_v61 }
 0x6e8   :  { %5960 = vpow2.f32 %v3700_v50 }
 0x6ed   :  { %v5957_v40 = vpop.eup %5956 }
 0x6ee   :  { %v2709_v33 = vmul.f32 %v5957_v40, %v2708_v54  ;;  %v7148_v54 = vld [vmem:[%s7297_s9] ss:$0 sm:$0xff] }
 0x6ef   :  { %v2871_v50 = vadd.f32 %v7148_v54, %v2853_v17 }
 0x6f0   :  { %v7126_v10 = vadd.f32 %v2710_v19, %v2709_v33 }
 0x6f1   :  { %v5959_v24 = vpop.eup %5958 }
 0x6f2   :  { %v2861_v37 = vadd.f32 1.0, %v5959_v24  ;;  %2948 = vmatmul.mubr.f32.vlgmr.msra.gmra.mrb[12].mxu0 %v7126_v10  ;;  %4606 = vmatmul.mubr.f32.vlgmr.msra.gmra.mrb[40].mxu1 %v7126_v10  ;;  %v5961_v23 = vpop.eup %5960 }
 0x6f3   :  { %5572 = vmatpush1.bf16.msra.mxu0 %v6477_v55  ;;  %5603 = vmatpush3.bf16.msra.mxu1 %v6505_v28  ;;  %v2868_v58 = vadd.f32 1.0, %v5961_v23 }
 0x6f4   :  { %5962 = vrcp.f32 %v2861_v37  ;;  %5574 = vmatprep.subr.bf16.mxu0 %v6480_v56  ;;  %5604 = vmatprep.subr.bf16.mxu1 %v7359_v21 }
 0x6f5   :  { %3114 = vmatprep.mubr.f32.mxu0 %v7360_v44  ;;  %4640 = vmatprep.mubr.msk.f32.mxu1 %vm6209_vm0, %v7360_v44  ;;  %5964 = vrcp.f32 %v2868_v58 }
 0x6f7   :  { %5576 = vmatpush1.bf16.msra.mxu0 %v6488_v6  ;;  %5606 = vmatpush3.bf16.msra.mxu1 %v6516_v46 }
 0x6f8   :  { %5578 = vmatprep.subr.bf16.mxu0 %v6492_v7  ;;  %5607 = vmatprep.subr.bf16.mxu1 %v7359_v21 }
 0x6fb   :  { %5580 = vmatpush1.bf16.msra.mxu0 %v6499_v18  ;;  %5609 = vmatpush3.bf16.msra.mxu1 %v6528_v1 }
 0x6fc   :  { %5582 = vmatprep.subr.bf16.mxu0 %v6502_v20  ;;  %5610 = vmatprep.subr.bf16.mxu1 %v7359_v21 }
 0x6fe   :  { %v5963_v3 = vpop.eup %5962 }
 0x6ff   :  { %v2872_v16 = vmul.f32 %v5963_v3, %v2871_v50  ;;  %5584 = vmatpush1.bf16.msra.mxu0 %v6509_v34  ;;  %5612 = vmatpush3.bf16.msra.mxu1 %v6538_v22  ;;  %v5965_v17 = vpop.eup %5964 }
 0x700   :  { %5586 = vmatprep.subr.bf16.mxu0 %v6512_v36  ;;  %5613 = vmatprep.subr.bf16.mxu1 %v7359_v21  ;;  %v2875_v2 = vsub.f32 1.0, %v5965_v17  ;;  %v2877_v40 = vmul.f32 %v5965_v17, %v7073_v14  ;;  %v7434_v14 = vld [vmem:[#allocation47_spill] sm:$0xff] }
 0x701   :  { %v2873_v59 = vadd.f32 %v2872_v16, %v7424_v0  ;;  %v7435_v16 = vld [vmem:[#allocation38_spill] sm:$0xff] }
 0x703   :  { %5966 = vtanh.f32 %v2873_v59  ;;  %5588 = vmatpush1.bf16.msra.mxu0 %v6522_v49  ;;  %5615 = vmatpush3.bf16.msra.mxu1 %v6548_v38 }
 0x704   :  { %5590 = vmatprep.subr.bf16.mxu0 %v6525_v53  ;;  %5616 = vmatprep.subr.bf16.mxu1 %v7359_v21 }
 0x707   :  { %5592 = vmatpush1.bf16.msra.mxu0 %v6532_v8  ;;  %5618 = vmatpush3.bf16.msra.mxu1 %v6556_v48 }
 0x708   :  { %5594 = vmatprep.subr.bf16.mxu0 %v6535_v11  ;;  %5619 = vmatprep.subr.bf16.mxu1 %v7359_v21 }
 0x70b   :  { %5596 = vmatpush1.bf16.msra.mxu0 %v6542_v25  ;;  %5621 = vmatpush3.bf16.msra.mxu1 %v6562_v60 }
 0x70c   :  { %5598 = vmatprep.subr.bf16.mxu0 %v6545_v29  ;;  %5622 = vmatprep.subr.bf16.mxu1 %v7359_v21 }
 0x70d   :  { %v5967_v45 = vpop.eup %5966 }
 0x70e   :  { %v2876_v61 = vmul.f32 %v5967_v45, %v2875_v2 }
 0x70f   :  { %5600 = vmatpush1.bf16.msra.mxu0 %v6552_v47  ;;  %5624 = vmatpush3.bf16.msra.mxu1 %v6570_v4 }
 0x710   :  { %v7171_v33 = vadd.f32 %v2877_v40, %v2876_v61  ;;  %5626 = vmatprep.subr.bf16.mxu0 %v6393_v26  ;;  %5657 = vmatprep.subr.bf16.mxu1 %v7359_v21  ;;  %v7425_v26 = vld [vmem:[#allocation29_spill] sm:$0xff] }
 0x712   :  { %3115 = vmatmul.mubr.f32.vlgmr.msra.gmra.mrb[28].mxu0 %v7171_v33  ;;  %4641 = vmatmul.mubr.f32.vlgmr.msra.gmra.mrb[42].mxu1 %v7171_v33 }
 0x713   :  { %5628 = vmatpush1.bf16.msra.mxu0 %v6396_v32  ;;  %5659 = vmatpush3.bf16.msra.mxu1 %v6415_v57  ;;  %v7426_v32 = vld [vmem:[#allocation24_spill] sm:$0xff] }
 0x714   :  { %5630 = vmatprep.subr.bf16.mxu0 %v6399_v35  ;;  %5660 = vmatprep.subr.bf16.mxu1 %v7359_v21  ;;  %v7427_v35 = vld [vmem:[#allocation25_spill] sm:$0xff]  ;;  %v7432_v57 = vld [vmem:[#allocation28_spill] sm:$0xff] }
 0x715   :  { %3281 = vmatprep.mubr.f32.mxu0 %v7360_v44  ;;  %4675 = vmatprep.mubr.msk.f32.mxu1 %vm6209_vm0, %v7360_v44 }
 0x717   :  { %5632 = vmatpush1.bf16.msra.mxu0 %v6403_v42  ;;  %5662 = vmatpush3.bf16.msra.mxu1 %v6426_v5  ;;  %v7428_v42 = vld [vmem:[#allocation30_spill] sm:$0xff] }
 0x718   :  { %5634 = vmatprep.subr.bf16.mxu0 %v6406_v43  ;;  %5663 = vmatprep.subr.bf16.mxu1 %v7359_v21  ;;  %v7429_v43 = vld [vmem:[#allocation26_spill] sm:$0xff] }
 0x719   :  { %v7433_v5 = vld [vmem:[#allocation46_spill] sm:$0xff] }
 0x71b   :  { %5636 = vmatpush1.bf16.msra.mxu0 %v6410_v51  ;;  %5665 = vmatpush3.bf16.msra.mxu1 %v6437_v15  ;;  %v7430_v51 = vld [vmem:[#allocation27_spill] sm:$0xff] }
 0x71c   :  { %5638 = vmatprep.subr.bf16.mxu0 %v6413_v52  ;;  %5666 = vmatprep.subr.bf16.mxu1 %v7359_v21  ;;  %v7431_v52 = vld [vmem:[#allocation31_spill] sm:$0xff] }
 0x71f   :  { %5640 = vmatpush1.bf16.msra.mxu0 %v6420_v62  ;;  %5668 = vmatpush3.bf16.msra.mxu1 %v6448_v27 }
 0x720   :  { %5642 = vmatprep.subr.bf16.mxu0 %v6423_v63  ;;  %5669 = vmatprep.subr.bf16.mxu1 %v7359_v21 }
 0x723   :  { %5644 = vmatpush1.bf16.msra.mxu0 %v6431_v9  ;;  %5671 = vmatpush3.bf16.msra.mxu1 %v6459_v39 }
 0x724   :  { %5646 = vmatprep.subr.bf16.mxu0 %v7412_v12  ;;  %5672 = vmatprep.subr.bf16.mxu1 %v7359_v21 }
 0x727   :  { %5648 = vmatpush1.bf16.msra.mxu0 %v7413_v30  ;;  %5674 = vmatpush3.bf16.msra.mxu1 %v7425_v26 }
 0x728   :  { %5650 = vmatprep.subr.bf16.mxu0 %v7426_v32  ;;  %5675 = vmatprep.subr.bf16.mxu1 %v7359_v21 }
 0x72b   :  { %5652 = vmatpush1.bf16.msra.mxu0 %v7427_v35  ;;  %5677 = vmatpush3.bf16.msra.mxu1 %v7428_v42 }
 0x72c   :  { %5654 = vmatprep.subr.bf16.mxu0 %v7429_v43  ;;  %5678 = vmatprep.subr.bf16.mxu1 %v7359_v21 }
 0x72f   :  { %5656 = vmatpush1.bf16.msra.mxu0 %v7430_v51  ;;  %5680 = vmatpush3.bf16.msra.mxu1 %v7431_v52 }
 0x730   :  { %5682 = vmatprep.subr.bf16.mxu0 %v7432_v57  ;;  %5713 = vmatprep.subr.bf16.mxu1 %v7359_v21 }
 0x7c5   :  { %v2949_v62 = vpop.f32.mrb[12].mxu0  ;;  %v3020_v63 = vpop.f32.mrb[40].mxu1 }
 0x7c6   :  { %v5781_v9 = vadd.f32 %v2949_v62, %v7433_v5  ;;  %v2951_v15 = vpop.f32.mrb[13].mxu0  ;;  %v4607_v27 = vpop.f32.mrb[41].mxu1  ;;  %v3038_v58 = vadd.f32 %v7119_v13, %v3020_v63 }
 0x7c7   :  { %v5782_v12 = vadd.f32 %v2951_v15, %v7434_v14  ;;  %v3551_v15 = vld [vmem:[#allocation15 + $0x20] sm:$0xff]  ;;  %v3552_v27 = vld [vmem:[#allocation15 + $0x28] sm:$0xff] }
 0x7c8   :  { %v3701_v39 = vmul.f32 -1.442695, %v5781_v9 }
 0x7c9   :  { %v3702_v30 = vmul.f32 -1.442695, %v5782_v12  ;;  %v3569_v12 = vld [vmem:[#allocation15 + $0xb0] sm:$0xff] }
 0x7ca   :  { %5968 = vpow2.f32 %v3701_v39  ;;  %v5747_v39 = vpack.c.bf16 %v3552_v27, %v3551_v15 }
 0x7cb   :  { %5970 = vpow2.f32 %v3702_v30  ;;  %v3570_v30 = vld [vmem:[#allocation15 + $0xb8] sm:$0xff] }
 0x7d4   :  { %v5969_v19 = vpop.eup %5968 }
 0x7d5   :  { %v3028_v24 = vadd.f32 1.0, %v5969_v19  ;;  %v5971_v37 = vpop.eup %5970  ;;  %v5749_v19 = vpack.c.bf16 %v3570_v30, %v3569_v12 }
 0x7d6   :  { %v3035_v23 = vadd.f32 1.0, %v5971_v37  ;;  %v3554_v37 = vld [vmem:[#allocation15 + $0x38] sm:$0xff] }
 0x7d7   :  { %5972 = vrcp.f32 %v3028_v24  ;;  %v3553_v24 = vld [vmem:[#allocation15 + $0x30] sm:$0xff] }
 0x7d8   :  { %5974 = vrcp.f32 %v3035_v23  ;;  %v5751_v23 = vpack.c.bf16 %v3554_v37, %v3553_v24 }
 0x7e1   :  { %v5973_v50 = vpop.eup %5972 }
 0x7e2   :  { %v3039_v3 = vmul.f32 %v5973_v50, %v3038_v58  ;;  %v5975_v32 = vpop.eup %5974  ;;  %v3571_v58 = vld [vmem:[#allocation15 + $0xc0] sm:$0xff]  ;;  %v3572_v50 = vld [vmem:[#allocation15 + $0xc8] sm:$0xff] }
 0x7e3   :  { %v3042_v42 = vsub.f32 1.0, %v5975_v32  ;;  %v3044_v52 = vmul.f32 %v5975_v32, %v7126_v10  ;;  %v3576_v32 = vld [vmem:[#allocation15 + $0xe8] sm:$0xff] }
 0x7e4   :  { %v3040_v0 = vadd.f32 %v3039_v3, %v7435_v16  ;;  %v5753_v3 = vpack.c.bf16 %v3572_v50, %v3571_v58  ;;  %v3555_v16 = vld [vmem:[#allocation15 + $0x40] sm:$0xff]  ;;  %v7438_v50 = vld [vmem:[#allocation44_spill] sm:$0xff] }
 0x7e5   :  { %v3116_v59 = vpop.f32.mrb[28].mxu0  ;;  %v3187_v17 = vpop.f32.mrb[42].mxu1 }
 0x7e6   :  { %5976 = vtanh.f32 %v3040_v0  ;;  %v5797_v2 = vadd.f32 %v3116_v59, %v6670_v31  ;;  %v3118_v45 = vpop.f32.mrb[29].mxu0  ;;  %v4642_v61 = vpop.f32.mrb[43].mxu1  ;;  %v3556_v0 = vld [vmem:[#allocation15 + $0x48] sm:$0xff] }
 0x7e7   :  { %v5798_v26 = vadd.f32 %v3118_v45, %v6672_v41  ;;  %v5755_v59 = vpack.c.bf16 %v3556_v0, %v3555_v16  ;;  %v3557_v45 = vld [vmem:[#allocation15 + $0x50] sm:$0xff] }
 0x7e8   :  { %v3703_v40 = vmul.f32 -1.442695, %v5797_v2  ;;  %v3574_v2 = vld [vmem:[#allocation15 + $0xd8] sm:$0xff] }
 0x7e9   :  { %v3704_v35 = vmul.f32 -1.442695, %v5798_v26  ;;  %v3575_v26 = vld [vmem:[#allocation15 + $0xe0] sm:$0xff] }
 0x7ea   :  { %5978 = vpow2.f32 %v3703_v40  ;;  %v3558_v40 = vld [vmem:[#allocation15 + $0x58] sm:$0xff] }
 0x7eb   :  { %5980 = vpow2.f32 %v3704_v35  ;;  %v5759_v35 = vpack.c.bf16 %v3558_v40, %v3557_v45 }
 0x7f0   :  { %v5977_v43 = vpop.eup %5976 }
 0x7f1   :  { %v3043_v51 = vmul.f32 %v5977_v43, %v3042_v42  ;;  %v5761_v42 = vpack.c.bf16 %v3576_v32, %v3575_v26  ;;  %v3559_v43 = vld [vmem:[#allocation15 + $0x60] sm:$0xff] }
 0x7f3   :  { %v7219_v57 = vadd.f32 %v3044_v52, %v3043_v51  ;;  %v3560_v51 = vld [vmem:[#allocation15 + $0x68] sm:$0xff]  ;;  %v3577_v52 = vld [vmem:[#allocation15 + $0xf0] sm:$0xff] }
 0x7f4   :  { %v5979_v62 = vpop.eup %5978 }
 0x7f5   :  { %v3195_v63 = vadd.f32 1.0, %v5979_v62  ;;  %3282 = vmatmul.mubr.f32.vlgmr.msra.gmra.mrb[14].mxu0 %v7219_v57  ;;  %4676 = vmatmul.mubr.f32.vlgmr.msra.gmra.mrb[44].mxu1 %v7219_v57  ;;  %v5981_v10 = vpop.eup %5980  ;;  %v3578_v62 = vld [vmem:[#allocation15 + $0xf8] sm:$0xff] }
 0x7f6   :  { %5684 = vmatpush1.bf16.msra.mxu0 %v6477_v55  ;;  %5715 = vmatpush3.bf16.msra.mxu1 %v6505_v28  ;;  %v3202_v55 = vadd.f32 1.0, %v5981_v10  ;;  %v5765_v10 = vpack.c.bf16 %v3578_v62, %v3577_v52 }
 0x7f7   :  { %5982 = vrcp.f32 %v3195_v63  ;;  %5686 = vmatprep.subr.bf16.mxu0 %v6480_v56  ;;  %5716 = vmatprep.subr.bf16.mxu1 %v7359_v21  ;;  %v3205_v56 = vadd.f32 %v7148_v54, %v3187_v17  ;;  %v3573_v17 = vld [vmem:[#allocation15 + $0xd0] sm:$0xff]  ;;  %v5763_v63 = vpack.c.bf16 %v3560_v51, %v3559_v43 }
 0x7f8   :  { %3448 = vmatprep.mubr.f32.mxu0 %v7360_v44  ;;  %4710 = vmatprep.mubr.msk.f32.mxu1 %vm6209_vm0, %v7360_v44  ;;  %5984 = vrcp.f32 %v3202_v55  ;;  %v3567_v44 = vld [vmem:[#allocation15 + $0xa0] sm:$0xff]  ;;  %v5757_v61 = vpack.c.bf16 %v3574_v2, %v3573_v17  ;;  %v3561_v55 = vld [vmem:[#allocation15 + $0x70] sm:$0xff] }
 0x7fa   :  { %5688 = vmatpush1.bf16.msra.mxu0 %v6488_v6  ;;  %5718 = vmatpush3.bf16.msra.mxu1 %v6516_v46 }
 0x7fb   :  { %5690 = vmatprep.subr.bf16.mxu0 %v6492_v7  ;;  %5719 = vmatprep.subr.bf16.mxu1 %v7359_v21  ;;  %v7436_v7 = vld [vmem:[#allocation45_spill] sm:$0xff] }
 0x7fe   :  { %5692 = vmatpush1.bf16.msra.mxu0 %v6499_v18  ;;  %5721 = vmatpush3.bf16.msra.mxu1 %v6528_v1  ;;  %v3563_v1 = vld [vmem:[#allocation15 + $0x80] sm:$0xff] }
 0x7ff   :  { %5694 = vmatprep.subr.bf16.mxu0 %v6502_v20  ;;  %5722 = vmatprep.subr.bf16.mxu1 %v7359_v21 }
 0x801   :  { %v5983_v28 = vpop.eup %5982 }
 0x802   :  { %v3206_v6 = vmul.f32 %v5983_v28, %v3205_v56  ;;  %5696 = vmatpush1.bf16.msra.mxu0 %v6509_v34  ;;  %5724 = vmatpush3.bf16.msra.mxu1 %v6538_v22  ;;  %v5985_v20 = vpop.eup %5984  ;;  %v3547_v22 = vld [vmem:[#allocation15] sm:$0xff]  ;;  %v3562_v56 = vld [vmem:[#allocation15 + $0x78] sm:$0xff] }
 0x803   :  { %5698 = vmatprep.subr.bf16.mxu0 %v6512_v36  ;;  %5725 = vmatprep.subr.bf16.mxu1 %v7359_v21  ;;  %v3209_v34 = vsub.f32 1.0, %v5985_v20  ;;  %v5767_v28 = vpack.c.bf16 %v3562_v56, %v3561_v55 }
 0x804   :  { %v3207_v18 = vadd.f32 %v3206_v6, %v7436_v7 }
 0x806   :  { %5986 = vtanh.f32 %v3207_v18  ;;  %5700 = vmatpush1.bf16.msra.mxu0 %v6522_v49  ;;  %5727 = vmatpush3.bf16.msra.mxu1 %v6548_v38  ;;  %v3211_v49 = vmul.f32 %v5985_v20, %v7171_v33  ;;  %v3565_v38 = vld [vmem:[#allocation15 + $0x90] sm:$0xff]  ;;  %v3568_v33 = vld [vmem:[#allocation15 + $0xa8] sm:$0xff] }
 0x807   :  { %5702 = vmatprep.subr.bf16.mxu0 %v6525_v53  ;;  %5728 = vmatprep.subr.bf16.mxu1 %v7359_v21  ;;  %v5745_v9 = vpack.c.bf16 %v3568_v33, %v3567_v44 }
 0x80a   :  { %5704 = vmatpush1.bf16.msra.mxu0 %v6532_v8  ;;  %5730 = vmatpush3.bf16.msra.mxu1 %v6556_v48  ;;  %v3564_v8 = vld [vmem:[#allocation15 + $0x88] sm:$0xff]  ;;  %v3566_v48 = vld [vmem:[#allocation15 + $0x98] sm:$0xff] }
 0x80b   :  { %5706 = vmatprep.subr.bf16.mxu0 %v6535_v11  ;;  %5731 = vmatprep.subr.bf16.mxu1 %v7359_v21  ;;  %v5737_v11 = vpack.c.bf16 %v3564_v8, %v3563_v1 }
 0x80e   :  { %5708 = vmatpush1.bf16.msra.mxu0 %v6542_v25  ;;  %5733 = vmatpush3.bf16.msra.mxu1 %v6562_v60  ;;  %v3548_v25 = vld [vmem:[#allocation15 + $0x8] sm:$0xff]  ;;  %v5741_v60 = vpack.c.bf16 %v3566_v48, %v3565_v38  ;;  %v7437_v48 = vld [vmem:[#allocation37_spill] sm:$0xff] }
 0x80f   :  { %5710 = vmatprep.subr.bf16.mxu0 %v6545_v29  ;;  %5734 = vmatprep.subr.bf16.mxu1 %v7359_v21  ;;  %v5739_v29 = vpack.c.bf16 %v3548_v25, %v3547_v22  ;;  %v3550_v21 = vld [vmem:[#allocation15 + $0x18] sm:$0xff] }
 0x810   :  { %v5987_v36 = vpop.eup %5986 }
 0x811   :  { %v3210_v46 = vmul.f32 %v5987_v36, %v3209_v34 }
 0x812   :  { %5712 = vmatpush1.bf16.msra.mxu0 %v6552_v47  ;;  %5736 = vmatpush3.bf16.msra.mxu1 %v6570_v4  ;;  %v3549_v47 = vld [vmem:[#allocation15 + $0x10] sm:$0xff] }
 0x813   :  { %v7259_v53 = vadd.f32 %v3211_v49, %v3210_v46  ;;  %5738 = vmatprep.subr.bf16.mxu0 %v5737_v11  ;;  %v5743_v4 = vpack.c.bf16 %v3550_v21, %v3549_v47 }
 0x815   :  { %3449 = vmatmul.mubr.f32.vlgmr.msra.gmra.mrb[30].mxu0 %v7259_v53  ;;  %4711 = vmatmul.mubr.f32.vlgmr.msra.gmra.mrb[46].mxu1 %v7259_v53 }
 0x816   :  { %5740 = vmatpush3.bf16.msra.mxu0 %v5739_v29 }
 0x817   :  { %5742 = vmatprep.subr.bf16.mxu0 %v5741_v60 }
 0x81a   :  { %5744 = vmatpush3.bf16.msra.mxu0 %v5743_v4 }
 0x81b   :  { %5746 = vmatprep.subr.bf16.mxu0 %v5745_v9 }
 0x81e   :  { %5748 = vmatpush3.bf16.msra.mxu0 %v5747_v39 }
 0x81f   :  { %5750 = vmatprep.subr.bf16.mxu0 %v5749_v19 }
 0x822   :  { %5752 = vmatpush3.bf16.msra.mxu0 %v5751_v23 }
 0x823   :  { %5754 = vmatprep.subr.bf16.mxu0 %v5753_v3 }
 0x826   :  { %5756 = vmatpush3.bf16.msra.mxu0 %v5755_v59 }
 0x827   :  { %5758 = vmatprep.subr.bf16.mxu0 %v5757_v61  ;;  %v3709_v61 = vld [vmem:[%s7299_s11] ss:$0 sm:$0xff] }
 0x82a   :  { %5760 = vmatpush3.bf16.msra.mxu0 %v5759_v35 }
 0x82b   :  { %5762 = vmatprep.subr.bf16.mxu0 %v5761_v42 }
 0x82e   :  { %5764 = vmatpush3.bf16.msra.mxu0 %v5763_v63 }
 0x82f   :  { %5766 = vmatprep.subr.bf16.mxu0 %v5765_v10 }
 0x832   :  { %5768 = vmatpush3.bf16.msra.mxu0 %v5767_v28 }
 0x8c8   :  { %v3283_v6 = vpop.f32.mrb[14].mxu0  ;;  %v3354_v7 = vpop.f32.mrb[44].mxu1 }
 0x8c9   :  { %v5783_v18 = vadd.f32 %v3283_v6, %v7433_v5  ;;  %v3285_v20 = vpop.f32.mrb[15].mxu0  ;;  %v4677_v34 = vpop.f32.mrb[45].mxu1  ;;  %v3372_v25 = vadd.f32 %v7119_v13, %v3354_v7 }
 0x8ca   :  { %v5784_v46 = vadd.f32 %v3285_v20, %v7434_v14 }
 0x8cb   :  { %v3705_v36 = vmul.f32 -1.442695, %v5783_v18 }
 0x8cc   :  { %v3706_v49 = vmul.f32 -1.442695, %v5784_v46 }
 0x8cd   :  { %5988 = vpow2.f32 %v3705_v36 }
 0x8ce   :  { %5990 = vpow2.f32 %v3706_v49 }
 0x8d7   :  { %v5989_v1 = vpop.eup %5988 }
 0x8d8   :  { %v3362_v8 = vadd.f32 1.0, %v5989_v1  ;;  %v5991_v11 = vpop.eup %5990 }
 0x8d9   :  { %v3369_v22 = vadd.f32 1.0, %v5991_v11 }
 0x8da   :  { %5992 = vrcp.f32 %v3362_v8 }
 0x8db   :  { %5994 = vrcp.f32 %v3369_v22 }
 0x8e4   :  { %v5993_v29 = vpop.eup %5992 }
 0x8e5   :  { %v3373_v38 = vmul.f32 %v5993_v29, %v3372_v25  ;;  %v5995_v9 = vpop.eup %5994 }
 0x8e6   :  { %v3376_v27 = vsub.f32 1.0, %v5995_v9  ;;  %v3378_v12 = vmul.f32 %v5995_v9, %v7219_v57 }
 0x8e7   :  { %v3374_v5 = vadd.f32 %v3373_v38, %v7437_v48 }
 0x8e8   :  { %v3450_v60 = vpop.f32.mrb[30].mxu0  ;;  %v3521_v47 = vpop.f32.mrb[46].mxu1 }
 0x8e9   :  { %5996 = vtanh.f32 %v3374_v5  ;;  %v5799_v14 = vadd.f32 %v3450_v60, %v6670_v31  ;;  %v3452_v21 = vpop.f32.mrb[31].mxu0  ;;  %v4712_v4 = vpop.f32.mrb[47].mxu1  ;;  %v3539_v23 = vadd.f32 %v7148_v54, %v3521_v47 }
 0x8ea   :  { %v5800_v33 = vadd.f32 %v3452_v21, %v6672_v41 }
 0x8eb   :  { %v3707_v44 = vmul.f32 -1.442695, %v5799_v14 }
 0x8ec   :  { %v3708_v15 = vmul.f32 -1.442695, %v5800_v33 }
 0x8ed   :  { %5998 = vpow2.f32 %v3707_v44 }
 0x8ee   :  { %6000 = vpow2.f32 %v3708_v15 }
 0x8f3   :  { %v5997_v13 = vpop.eup %5996 }
 0x8f4   :  { %v3377_v39 = vmul.f32 %v5997_v13, %v3376_v27 }
 0x8f6   :  { %v3379_v30 = vadd.f32 %v3378_v12, %v3377_v39 }
 0x8f7   :  { %v5999_v19 = vpop.eup %5998 }
 0x8f8   :  { %v3529_v24 = vadd.f32 1.0, %v5999_v19  ;;  %3650 = vmatprep.mubr.f32.mxu0 %v3379_v30  ;;  %v6001_v31 = vpop.eup %6000 }
 0x8f9   :  { %v3536_v37 = vadd.f32 1.0, %v6001_v31 }
 0x8fa   :  { %6002 = vrcp.f32 %v3529_v24 }
 0x8fb   :  { %6004 = vrcp.f32 %v3536_v37 }
 0x904   :  { %v6003_v58 = vpop.eup %6002 }
 0x905   :  { %v3540_v41 = vmul.f32 %v6003_v58, %v3539_v23  ;;  %v6005_v16 = vpop.eup %6004 }
 0x906   :  { %v3543_v0 = vsub.f32 1.0, %v6005_v16  ;;  %v3545_v57 = vmul.f32 %v6005_v16, %v7259_v53 }
 0x907   :  { %v3541_v3 = vadd.f32 %v3540_v41, %v7438_v50 }
 0x909   :  { %6006 = vtanh.f32 %v3541_v3 }
 0x913   :  { %v6007_v59 = vpop.eup %6006 }
 0x914   :  { %v3544_v17 = vmul.f32 %v6007_v59, %v3543_v0 }
 0x916   :  { %v3546_v2 = vadd.f32 %v3545_v57, %v3544_v17 }
 0x918   :  { %3651 = vmatmul.mubr.f32.vlgmr.msra.gmra.mrb[32].mxu0 %v3546_v2 }
 0x9eb   :  { %v4062_v45 = vpop.f32.mrb[32].mxu0 }
 0x9ec   :  { %v4063_v54 = vpop.f32.mrb[33].mxu0 }
 0x9ed   :  { %v4064_v40 = vadd.f32 %v4063_v54, %v4062_v45 }
 0x9ef   :  { %v3653_v26 = vadd.f32 %v4064_v40, %v3709_v61 }
 0x9f1   :  { %3656 = vst [vmem:[#allocation16] sm:$0xff] %v3653_v26 }
 0x9f2   :  { %6175 = shalt.err (!%p6172_p4)
}
 0x9f3   :  { %s6176_s15 = scalar_lea.hbm %s7300_s12, 128 }
 0x9f4   :  { %p6177_p5 = scmp.ne.s32.totalorder %s7300_s12, %s6176_s15  ;;  %p6180_p6 = scmp.lt.u32.totalorder %s6176_s15, %s7300_s12 }
 0x9f6   :  { %p6182_p7 = pnand %p6180_p6, %p6177_p5 }
 0x9f8   :  { %6185 = shalt.err (!%p6182_p7)
}
 0x9f9   :  { %3666 = dma.vmem_to_hbm [thread:$0]  %s3664_s27, 128, %s7300_s12, [#allocation6]  }
 0x9fa   :  { %6194 = dma.done.wait [#allocation6], 128  }
 0x9fb   :  { %6195 = vsyncadd [#allocation6], 4294967168 }
 0x9fc   :  { %3670 = vsyncpa [#allocation5], 1 }
 0x9fd   :  { %3671 = vsyncpa [#allocation8], 1 }
 0x9fe   :  { %3672 = vsyncpa [#allocation11], 1 }
 0x9ff   :  { %3673 = vsyncpa [#allocation14], 1 }
 0xa00   :  { %3674 = vsyncpa [#allocation6], 1 }

</bundles_post_ra>
